<compile_context>
chip_gen: v7x
topology: tpu7x:2x2x1
jax: 0.10.0
libtpu: 0.0.40
codegen_flags: <defaults>
</compile_context>

<pallas_src>
import numpy as np
import jax
import jax.numpy as jnp
from jax.experimental import pallas as pl
from jax.experimental.pallas import tpu as pltpu

BOARD_ROWS = 3
BOARD_COLS = 3
HW = BOARD_ROWS * BOARD_COLS          # 9
C1 = 32 * HW                          # 288  (conv1 output, flattened)
C2 = 64 * HW                          # 576  (conv2 output, flattened)
TB_MAX = 1024                         # batch-tile cap (multiple of 256)


def _cdiv(a, b):
    return -(-a // b)


# -----------------------------------------------------------------------------
# Parameter-setup glue: fold padded 3x3 convs on a 3x3 board into dense mats.
# -----------------------------------------------------------------------------
def conv_to_dense(w):
    """w: (C_out, C_in, 3, 3) -> dense M of shape (C_in*9, C_out*9) such that
    flat_out = flat_in @ M reproduces conv2d(pad=1, stride=1) on a 3x3 grid,
    with NCHW-order flattening on both sides."""
    w = np.asarray(w, dtype=np.float32)
    c_out, c_in, _, _ = w.shape
    M = np.zeros((c_in * HW, c_out * HW), dtype=np.float32)
    for co in range(c_out):
        for ci in range(c_in):
            for ho in range(BOARD_ROWS):
                for wo in range(BOARD_COLS):
                    for kh in range(3):
                        for kw in range(3):
                            hi = ho + kh - 1
                            wi = wo + kw - 1
                            if 0 <= hi < BOARD_ROWS and 0 <= wi < BOARD_COLS:
                                M[ci * HW + hi * BOARD_COLS + wi,
                                  co * HW + ho * BOARD_COLS + wo] = w[co, ci, kh, kw]
    return M


# -----------------------------------------------------------------------------
# Pallas kernel: one batch tile of `tb` rows per grid step.
# -----------------------------------------------------------------------------
def tictactoe_kernel(x_ref, m1_ref, b1_ref, m2_ref, b2_ref, wfc_ref, bfc_ref, o_ref):
    # Layer 1 (conv1 folded): (tb, 9) @ (9, 288) — bf16 MXU feeds, f32 accum.
    # NOTE: if a bundle dump ever shows the MXU slot saturated, this K=9 matmul
    # can be moved off the MXU as 9 VPU broadcast multiply-adds against M1 rows.
    x = x_ref[...].astype(jnp.bfloat16)
    h1 = jnp.dot(x, m1_ref[...], preferred_element_type=jnp.float32)
    h1 = jnp.maximum(h1 + b1_ref[...], 0.0)                            # f32 VPU

    # Layer 2 (conv2 folded): (tb, 288) @ (288, 576) — the dominant matmul.
    h2 = jnp.dot(h1.astype(jnp.bfloat16), m2_ref[...],
                 preferred_element_type=jnp.float32)
    h2 = jnp.maximum(h2 + b2_ref[...], 0.0)                            # f32 VPU

    # fc (576 -> 1): VPU multiply + XLU lane reduce; keepdims gives a (tb, 1)
    # result so the output store is layout-natural (no sublane->lane transpose).
    z = jnp.sum(h2 * wfc_ref[...], axis=-1, keepdims=True) + bfc_ref[0]

    # Exact f32 sigmoid: exp on the EUP + f32 divide.  Elementwise units are
    # not the binding slot here, so no approximate reciprocal.
    o_ref[...] = 1.0 / (1.0 + jnp.exp(-z))


def tictactoe_forward(x, m1, b1, m2, b2, wfc, bfc):
    """x: (B, 9) float32 boards -> (B, 1) float32 win probability."""
    B = x.shape[0]

    # Batch tile: multiple of 256 (MXU-aligned on v5e/v6e/v7x), capped at
    # TB_MAX so f32 intermediates fit every generation's default scoped VMEM.
    tb = min(TB_MAX, 256 * _cdiv(B, 256))
    grid_b = _cdiv(B, tb)
    if grid_b > 1 and grid_b % 2:
        grid_b += 1              # even grid -> both v7x TensorCores get work
    PB = grid_b * tb
    if PB != B:
        x = jnp.pad(x, ((0, PB - B), (0, 0)))

    # bf16 MXU feeds; accumulation stays f32 inside the kernel.
    m1 = m1.astype(jnp.bfloat16)
    m2 = m2.astype(jnp.bfloat16)

    out = pl.pallas_call(
        tictactoe_kernel,
        grid=(grid_b,),
        out_shape=jax.ShapeDtypeStruct((PB, 1), jnp.float32),
        in_specs=[
            pl.BlockSpec((tb, HW), lambda i: (i, 0)),        # x tile (auto-pipelined)
            pl.BlockSpec((HW, C1), lambda i: (0, 0)),        # M1 (bf16), VMEM-resident
            pl.BlockSpec((1, C1), lambda i: (0, 0)),         # b1 (f32)
            pl.BlockSpec((C1, C2), lambda i: (0, 0)),        # M2 (bf16), VMEM-resident
            pl.BlockSpec((1, C2), lambda i: (0, 0)),         # b2 (f32)
            pl.BlockSpec((1, C2), lambda i: (0, 0)),         # fc weight (f32) as (1, 576)
            pl.BlockSpec(memory_space=pltpu.MemorySpace.SMEM),  # fc bias scalar
        ],
        out_specs=pl.BlockSpec((tb, 1), lambda i: (i, 0)),   # transpose-free (tb, 1) tiles
        compiler_params=pltpu.CompilerParams(
            dimension_semantics=("parallel",)),              # shard batch across TCs (v7x)
    )(x, m1, b1, m2, b2, wfc, bfc)

    return out[:B]


# -----------------------------------------------------------------------------
# Pure-JAX reference (mirrors the PyTorch forward with real convolutions, f32).
# -----------------------------------------------------------------------------
def reference_forward(x, w1, b1, w2, b2, wfc, bfc):
    xi = x.reshape(-1, 1, BOARD_ROWS, BOARD_COLS)
    y1 = jax.lax.conv_general_dilated(
        xi, w1, window_strides=(1, 1), padding=((1, 1), (1, 1)),
        dimension_numbers=("NCHW", "OIHW", "NCHW")) + b1[None, :, None, None]
    y1 = jnp.maximum(y1, 0.0)
    y2 = jax.lax.conv_general_dilated(
        y1, w2, window_strides=(1, 1), padding=((1, 1), (1, 1)),
        dimension_numbers=("NCHW", "OIHW", "NCHW")) + b2[None, :, None, None]
    y2 = jnp.maximum(y2, 0.0)
    flat = y2.reshape(-1, 64 * HW)
    return jax.nn.sigmoid(flat @ wfc.T + bfc)


if __name__ == "__main__":
    key = jax.random.PRNGKey(0)
    k = jax.random.split(key, 8)

    B = 8  # small batch of boards

    # Deterministic parameter init (PyTorch-like uniform(-1/sqrt(fan_in), ...)).
    def uni(key, shape, fan_in):
        bound = 1.0 / np.sqrt(fan_in)
        return jax.random.uniform(key, shape, jnp.float32, -bound, bound)

    w1 = uni(k[0], (32, 1, 3, 3), 1 * 9)      # conv1 weight
    b1 = uni(k[1], (32,), 1 * 9)              # conv1 bias
    w2 = uni(k[2], (64, 32, 3, 3), 32 * 9)    # conv2 weight
    b2 = uni(k[3], (64,), 32 * 9)             # conv2 bias
    wfc = uni(k[4], (1, 64 * HW), 64 * HW)    # fc weight
    bfc = uni(k[5], (1,), 64 * HW)            # fc bias

    # Fold convs into dense matrices (parameter setup glue, plain numpy/JAX).
    M1 = jnp.asarray(conv_to_dense(np.asarray(w1)))                  # (9, 288)
    B1 = jnp.repeat(jnp.asarray(b1), HW).reshape(1, C1)              # (1, 288)
    M2 = jnp.asarray(conv_to_dense(np.asarray(w2)))                  # (288, 576)
    B2 = jnp.repeat(jnp.asarray(b2), HW).reshape(1, C2)              # (1, 576)
    WFC = jnp.asarray(wfc).reshape(1, C2)                            # (1, 576)
    BFC = jnp.asarray(bfc).reshape(1)                                # (1,) -> SMEM scalar

    # Example boards: values in {-1, 0, 1}, shape (B, 9).
    x = jax.random.randint(k[6], (B, HW), -1, 2).astype(jnp.float32)

    out = tictactoe_forward(x, M1, B1, M2, B2, WFC, BFC)
    out = jax.block_until_ready(out)

    ref = jax.block_until_ready(reference_forward(x, w1, b1, w2, b2, wfc, bfc))
    # bf16 MXU feeds (f32 accumulation) + exact f32 sigmoid keep the error well
    # inside the 2e-3 tolerance for this net.
    np.testing.assert_allclose(np.asarray(out), np.asarray(ref), rtol=2e-3, atol=2e-3)

    print("KERNEL_OK")
</pallas_src>

<mosaic_0001>
module attributes {stable_mosaic.version = 11 : i64} {
  func.func @tictactoe_kernel(%arg0: i32, %arg1: memref<256x9xf32, #tpu.memory_space<vmem>>, %arg2: memref<9x288xbf16, #tpu.memory_space<vmem>>, %arg3: memref<1x288xf32, #tpu.memory_space<vmem>>, %arg4: memref<288x576xbf16, #tpu.memory_space<vmem>>, %arg5: memref<1x576xf32, #tpu.memory_space<vmem>>, %arg6: memref<1x576xf32, #tpu.memory_space<vmem>>, %arg7: memref<1xf32, #tpu.memory_space<smem>>, %arg8: memref<256x1xf32, #tpu.memory_space<vmem>>) attributes {dimension_semantics = [#tpu.dimension_semantics<parallel>], iteration_bounds = array<i64: 1>, scalar_prefetch = 0 : i64, scratch_operands = 0 : i64, tpu.core_type = #tpu.core_type<tc>, window_params = [{transform_indices = @transform_0, window_bounds = array<i64: 256, 9>}, {pipeline_mode = #tpu.pipeline_mode<synchronous>, transform_indices = @transform_1, window_bounds = array<i64: 9, 288>}, {pipeline_mode = #tpu.pipeline_mode<synchronous>, transform_indices = @transform_2, window_bounds = array<i64: 1, 288>}, {pipeline_mode = #tpu.pipeline_mode<synchronous>, transform_indices = @transform_3, window_bounds = array<i64: 288, 576>}, {pipeline_mode = #tpu.pipeline_mode<synchronous>, transform_indices = @transform_4, window_bounds = array<i64: 1, 576>}, {pipeline_mode = #tpu.pipeline_mode<synchronous>, transform_indices = @transform_5, window_bounds = array<i64: 1, 576>}, {transform_indices = @transform_6, window_bounds = array<i64: 1>}, {transform_indices = @transform_7, window_bounds = array<i64: 256, 1>}]} {
    %c0 = arith.constant 0 : index
    %c0_0 = arith.constant 0 : index
    %0 = vector.load %arg1[%c0, %c0_0] : memref<256x9xf32, #tpu.memory_space<vmem>>, vector<256x9xf32>
    %1 = arith.truncf %0 : vector<256x9xf32> to vector<256x9xbf16>
    %c0_1 = arith.constant 0 : index
    %c0_2 = arith.constant 0 : index
    %2 = vector.load %arg2[%c0_1, %c0_2] : memref<9x288xbf16, #tpu.memory_space<vmem>>, vector<9x288xbf16>
    %cst = arith.constant dense<0.000000e+00> : vector<256x288xf32>
    %3 = tpu.matmul %1, %2, %cst {dimension_numbers = #tpu.dot_dimension_numbers<[1], [0], [0], [1], [0, 0, 1, 1], [], []>} : vector<256x9xbf16>, vector<9x288xbf16>, vector<256x288xf32> -> vector<256x288xf32>
    %c0_3 = arith.constant 0 : index
    %c0_4 = arith.constant 0 : index
    %4 = vector.load %arg3[%c0_3, %c0_4] : memref<1x288xf32, #tpu.memory_space<vmem>>, vector<1x288xf32>
    %5 = vector.broadcast %4 : vector<1x288xf32> to vector<256x288xf32>
    %6 = arith.addf %3, %5 : vector<256x288xf32>
    %cst_5 = arith.constant 0.000000e+00 : f32
    %7 = vector.broadcast %cst_5 : f32 to vector<256x288xf32>
    %8 = arith.maximumf %6, %7 : vector<256x288xf32>
    %9 = arith.truncf %8 : vector<256x288xf32> to vector<256x288xbf16>
    %c0_6 = arith.constant 0 : index
    %c0_7 = arith.constant 0 : index
    %10 = vector.load %arg4[%c0_6, %c0_7] : memref<288x576xbf16, #tpu.memory_space<vmem>>, vector<288x576xbf16>
    %cst_8 = arith.constant dense<0.000000e+00> : vector<256x576xf32>
    %11 = tpu.matmul %9, %10, %cst_8 {dimension_numbers = #tpu.dot_dimension_numbers<[1], [0], [0], [1], [0, 0, 1, 1], [], []>} : vector<256x288xbf16>, vector<288x576xbf16>, vector<256x576xf32> -> vector<256x576xf32>
    %c0_9 = arith.constant 0 : index
    %c0_10 = arith.constant 0 : index
    %12 = vector.load %arg5[%c0_9, %c0_10] : memref<1x576xf32, #tpu.memory_space<vmem>>, vector<1x576xf32>
    %13 = vector.broadcast %12 : vector<1x576xf32> to vector<256x576xf32>
    %14 = arith.addf %11, %13 : vector<256x576xf32>
    %cst_11 = arith.constant 0.000000e+00 : f32
    %15 = vector.broadcast %cst_11 : f32 to vector<256x576xf32>
    %16 = arith.maximumf %14, %15 : vector<256x576xf32>
    %c0_12 = arith.constant 0 : index
    %c0_13 = arith.constant 0 : index
    %17 = vector.load %arg6[%c0_12, %c0_13] : memref<1x576xf32, #tpu.memory_space<vmem>>, vector<1x576xf32>
    %18 = vector.broadcast %17 : vector<1x576xf32> to vector<256x576xf32>
    %19 = arith.mulf %16, %18 : vector<256x576xf32>
    %cst_14 = arith.constant dense<0.000000e+00> : vector<256xf32>
    %20 = vector.multi_reduction <add>, %19, %cst_14 [1] : vector<256x576xf32> to vector<256xf32>
    %21 = vector.shape_cast %20 : vector<256xf32> to vector<256x1xf32>
    %c0_15 = arith.constant 0 : index
    %22 = memref.load %arg7[%c0_15] : memref<1xf32, #tpu.memory_space<smem>>
    %23 = vector.broadcast %22 : f32 to vector<256x1xf32>
    %24 = arith.addf %21, %23 : vector<256x1xf32>
    %cst_16 = arith.constant 0.000000e+00 : f32
    %25 = vector.broadcast %cst_16 : f32 to vector<256x1xf32>
    %26 = arith.subf %25, %24 : vector<256x1xf32>
    %27 = math.exp %26 : vector<256x1xf32>
    %cst_17 = arith.constant 1.000000e+00 : f32
    %28 = vector.broadcast %cst_17 : f32 to vector<256x1xf32>
    %29 = arith.addf %28, %27 : vector<256x1xf32>
    %cst_18 = arith.constant 1.000000e+00 : f32
    %30 = vector.broadcast %cst_18 : f32 to vector<256x1xf32>
    %31 = arith.divf %30, %29 : vector<256x1xf32>
    %c0_19 = arith.constant 0 : index
    %c0_20 = arith.constant 0 : index
    %32 = vector.load %arg8[%c0_19, %c0_20] : memref<256x1xf32, #tpu.memory_space<vmem>>, vector<256x1xf32>
    tpu.vector_store %arg8[%c0_19, %c0_20], %31 {strides = array<i32>} : memref<256x1xf32, #tpu.memory_space<vmem>>, vector<256x1xf32>,
    return
  }
  func.func @transform_0(%arg0: i32) -> (i32, i32) {
    %c0_i32 = arith.constant 0 : i32
    %c0_i32_0 = arith.constant 0 : i32
    return %arg0, %c0_i32 : i32, i32
  }
  func.func @transform_1(%arg0: i32) -> (i32, i32) {
    %c0_i32 = arith.constant 0 : i32
    %c0_i32_0 = arith.constant 0 : i32
    %c0_i32_1 = arith.constant 0 : i32
    return %c0_i32, %c0_i32_0 : i32, i32
  }
  func.func @transform_2(%arg0: i32) -> (i32, i32) {
    %c0_i32 = arith.constant 0 : i32
    %c0_i32_0 = arith.constant 0 : i32
    %c0_i32_1 = arith.constant 0 : i32
    return %c0_i32, %c0_i32_0 : i32, i32
  }
  func.func @transform_3(%arg0: i32) -> (i32, i32) {
    %c0_i32 = arith.constant 0 : i32
    %c0_i32_0 = arith.constant 0 : i32
    %c0_i32_1 = arith.constant 0 : i32
    return %c0_i32, %c0_i32_0 : i32, i32
  }
  func.func @transform_4(%arg0: i32) -> (i32, i32) {
    %c0_i32 = arith.constant 0 : i32
    %c0_i32_0 = arith.constant 0 : i32
    %c0_i32_1 = arith.constant 0 : i32
    return %c0_i32, %c0_i32_0 : i32, i32
  }
  func.func @transform_5(%arg0: i32) -> (i32, i32) {
    %c0_i32 = arith.constant 0 : i32
    %c0_i32_0 = arith.constant 0 : i32
    %c0_i32_1 = arith.constant 0 : i32
    return %c0_i32, %c0_i32_0 : i32, i32
  }
  func.func @transform_6(%arg0: i32) -> i32 {
    %c0_i32 = arith.constant 0 : i32
    %c0_i32_0 = arith.constant 0 : i32
    return %c0_i32 : i32
  }
  func.func @transform_7(%arg0: i32) -> (i32, i32) {
    %c0_i32 = arith.constant 0 : i32
    %c0_i32_0 = arith.constant 0 : i32
    return %arg0, %c0_i32 : i32, i32
  }
}

</mosaic_0001>

<bundles_post_ra>
// kernel: tpu_custom_call.1
= control target key start
LH: loop header
LB: loop body
LE: loop exit
PB: predicated region body
PF: predicated region fallthrough
CT: control target
= control target key end

     0   :  { %13 = vsyncpa [#allocation4], 0  ;;  %s4201_s24 = smov [#allocation3]   ;;  %s5603_s0 = inlined_call_operand.vmem [shape: f32[256,9], index: 0, kind: input, shape index: {}]   ;;  %s5604_s1 = inlined_call_operand.vmem [shape: bf16[9,288], index: 1, kind: input, shape index: {}]   ;;  %s5605_s2 = inlined_call_operand.vmem [shape: f32[1,288], index: 2, kind: input, shape index: {}]   ;;  %s5606_s3 = inlined_call_operand.hbm [shape: bf16[288,576], index: 3, kind: input, shape index: {}]   ;;  %s5607_s4 = inlined_call_operand.vmem [shape: f32[1,576], index: 4, kind: input, shape index: {}]   ;;  %s5608_s5 = inlined_call_operand.vmem [shape: f32[1,576], index: 5, kind: input, shape index: {}]   ;;  %s5609_s6 = inlined_call_operand.<no memory space> [shape: f32[1], index: 6, kind: input, shape index: {}]   ;;  %s5610_s7 = inlined_call_operand.vmem [shape: f32[256,1], index: 7, kind: output, shape index: {}]  }
   0x1   :  { %s25_s25 = sshll.u32 %s4201_s24, 4  ;;  %s4177_s28 = scalar_lea.hbm %s5606_s3, 11520  ;;  %s26_s25 = int_to_ptr.vmem [resolvable:$true] %s25_s25 }
   0x2   :  { %p4178_p0 = scmp.ne.s32.totalorder %s5606_s3, %s4177_s28  ;;  %p4181_p1 = scmp.lt.u32.totalorder %s4177_s28, %s5606_s3 }
   0x4   :  { %p4183_p2 = pnand %p4181_p1, %p4178_p0 }
   0x6   :  { %4186 = shalt.err (!%p4183_p2)
}
   0x7   :  { %s4187_s10 = scalar_lea.vmem %s26_s25, 11520  ;;  %p4192_p4 = scmp.lt.s32.totalorder %s26_s25, %s26_s25 }
   0x8   :  { %p4188_p3 = scmp.ne.s32.totalorder %s26_s25, %s4187_s10  ;;  %p4193_p5 = scmp.lt.s32.totalorder %s4187_s10, %s4187_s10 }
   0xa   :  { %p4194_p6 = por %p4193_p5, %p4192_p4 }
   0xc   :  { %p4195_p7 = pnand %p4194_p6, %p4188_p3 }
   0xe   :  { %4198 = shalt.err (!%p4195_p7)
}
   0xf   :  { %s4202_s11 = smov 320   ;;  %s4203_s12 = smov 20  }
  0x10   :  { %31 = dma.hbm_to_vmem [thread:$0]  %s5606_s3, 11520, %s26_s25, [#allocation4], %s4202_s11, %s4202_s11, %s4203_s12  }
  0x11   :  { %4199 = dma.done.wait [#allocation4], 11520  }
  0x12   :  { %4200 = vsyncadd [#allocation4], 4294955776  ;;  %vm173_vm0 = vcmask 1043456   ;;  %v5611_v0 = vmov 0   ;;  %vm174_vm1 = vcmask 1044480   ;;  %v4205_v1 = vmov 65535  }
  0x13   :  { %218 = vmatprep.mubr.bf16.mxu0 %v5611_v0  ;;  %v175_v2 = vsel %vm173_vm0, 4294967295, %v4205_v1  ;;  %v3917_v4 = vld [vmem:[%s5604_s1 + $0x4] ss:$12 sps:$4 sm:$0x1f]   ;;  %v43_v7 = vld [vmem:[%s5603_s0 + $0x8] sm:$0xff]  ;;  %vm124_vm2 = vcmask 72704  }
  0x14   :  { %v176_v3 = vsel %vm174_vm1, %v175_v2, 0  ;;  %v3919_v5 = vld [vmem:[%s5604_s1] ss:$12 sps:$4 sm:$0x1f]   ;;  %v44_v11 = vld [vmem:[%s5603_s0 + $0x10] sm:$0xff]  ;;  %v45_v12 = vld [vmem:[%s5603_s0 + $0x18] sm:$0xff] }
  0x15   :  { %v42_v6 = vld [vmem:[%s5603_s0] sm:$0xff]  ;;  %v181_v8 = vand.u32 %v3917_v4, %v176_v3  ;;  %v178_v10 = vand.u32 %v3919_v5, %v176_v3  ;;  %v75_v13 = vpack.c.bf16 %v45_v12, %v44_v11  ;;  %v3920_v14 = vld [vmem:[%s5604_s1 + $0x8] ss:$12 sps:$4 sm:$0x1f]   ;;  %v3938_v26 = vld [vmem:[#allocation3 + $0x5c] ss:$20 sps:$4 sm:$0xff]  }
  0x16   :  { %v74_v9 = vpack.c.bf16 %v43_v7, %v42_v6  ;;  %v3923_v15 = vld [vmem:[#allocation3 + $0x4] ss:$20 sps:$4 sm:$0xff]   ;;  %v184_v16 = vand.u32 %v3920_v14, %v176_v3  ;;  %v3924_v17 = vld [vmem:[#allocation3 + $0x8] ss:$20 sps:$4 sm:$0xff]   ;;  %v3926_v18 = vld [vmem:[#allocation3 + $0xc] ss:$20 sps:$4 sm:$0xff]  }
  0x17   :  { %186 = vmatprep.subr.bf16.mxu0 %v181_v8  ;;  %v46_v19 = vld [vmem:[%s5603_s0 + $0x20] sm:$0xff]  ;;  %v47_v20 = vld [vmem:[%s5603_s0 + $0x28] sm:$0xff]  ;;  %v48_v27 = vld [vmem:[%s5603_s0 + $0x30] sm:$0xff]  ;;  %vm1287_vm3 = vcmask 261120   ;;  %vm2780_vm4 = vcmask 523264   ;;  %vm3228_vm5 = vcmask 7168  }
  0x18   :  { %3588 = vmatprep.mubr.msk.bf16.mxu1 %vm124_vm2, %v74_v9  ;;  %187 = vmatpush1.bf16.msra.mxu0 %v178_v10  ;;  %v3921_v21 = vld [vmem:[#allocation3] ss:$20 sps:$4 sm:$0xff]   ;;  %v3930_v24 = vld [vmem:[#allocation3 + $0x30] ss:$20 sps:$4 sm:$0xff]   ;;  %v76_v25 = vpack.c.bf16 %v47_v20, %v46_v19  ;;  %v49_v28 = vld [vmem:[%s5603_s0 + $0x38] sm:$0xff] }
  0x19   :  { %3586 = vmatprep.subr.bf16.mxu1 %v184_v16  ;;  %1722 = vmatprep.subr.bf16.mxu0 %v3926_v18  ;;  %v3932_v22 = vld [vmem:[#allocation3 + $0x34] ss:$20 sps:$4 sm:$0xff]   ;;  %v3929_v23 = vld [vmem:[#allocation3 + $0x2c] ss:$20 sps:$4 sm:$0xff]   ;;  %v3944_v33 = vld [vmem:[#allocation3 + $0x84] ss:$20 sps:$4 sm:$0xff]   ;;  %v77_v36 = vpack.c.bf16 %v49_v28, %v48_v27 }
  0x1a   :  { %3587 = vmatpush3.bf16.msra.mxu1 %v184_v16  ;;  %v3927_v29 = vld [vmem:[#allocation3 + $0x28] ss:$20 sps:$4 sm:$0xff]   ;;  %v3936_v31 = vld [vmem:[#allocation3 + $0x58] ss:$20 sps:$4 sm:$0xff]   ;;  %v50_v32 = vld [vmem:[%s5603_s0 + $0x40] sm:$0xff] }
  0x1b   :  { %3269 = vmatmul.mubr.msk.bf16.vlgmr.msra.gmra.mrb[0].mxu0 %vm124_vm2, %v74_v9  ;;  %1336 = vmatprep.subr.bf16.mxu1 %v3923_v15  ;;  %v3935_v30 = vld [vmem:[#allocation3 + $0x54] ss:$20 sps:$4 sm:$0xff]   ;;  %v3933_v35 = vld [vmem:[#allocation3 + $0x50] ss:$20 sps:$4 sm:$0xff]   ;;  %v3950_v40 = vld [vmem:[#allocation3 + $0xac] ss:$20 sps:$4 sm:$0xff]  }
  0x1c   :  { %228 = vmatprep.mubr.bf16.mxu0 %v5611_v0  ;;  %1723 = vmatpush1.bf16.msra.mxu0 %v3924_v17  ;;  %v51_v34 = vld [vmem:[%s5603_s0 + $0x48] sm:$0xff]  ;;  %v3941_v37 = vld [vmem:[#allocation3 + $0x7c] ss:$20 sps:$4 sm:$0xff]   ;;  %v3942_v38 = vld [vmem:[#allocation3 + $0x80] ss:$20 sps:$4 sm:$0xff]  }
  0x1d   :  { %1724 = vmatprep.subr.bf16.mxu0 %v3932_v22  ;;  %3589 = vmatmul.mubr.msk.bf16.vlgmr.msra.gmra.mrb[0].mxu1 %vm124_vm2, %v75_v13  ;;  %v78_v39 = vpack.c.bf16 %v51_v34, %v50_v32  ;;  %v52_v41 = vld [vmem:[%s5603_s0 + $0x50] sm:$0xff]  ;;  %v53_v42 = vld [vmem:[%s5603_s0 + $0x58] sm:$0xff]  ;;  %v54_v46 = vld [vmem:[%s5603_s0 + $0x60] sm:$0xff] }
  0x1e   :  { %3592 = vmatprep.mubr.msk.bf16.mxu1 %vm124_vm2, %v76_v25  ;;  %1337 = vmatpush1.bf16.msra.mxu1 %v3921_v21  ;;  %v3939_v43 = vld [vmem:[#allocation3 + $0x78] ss:$20 sps:$4 sm:$0xff]   ;;  %v3948_v45 = vld [vmem:[#allocation3 + $0xa8] ss:$20 sps:$4 sm:$0xff]   ;;  %v3945_v49 = vld [vmem:[#allocation3 + $0xa0] ss:$20 sps:$4 sm:$0xff]   ;;  %v79_v50 = vpack.c.bf16 %v53_v42, %v52_v41 }
  0x1f   :  { %1338 = vmatprep.subr.bf16.mxu1 %v3929_v23  ;;  %v3947_v44 = vld [vmem:[#allocation3 + $0xa4] ss:$20 sps:$4 sm:$0xff]   ;;  %v3956_v47 = vld [vmem:[#allocation3 + $0xd4] ss:$20 sps:$4 sm:$0xff]   ;;  %v3953_v51 = vld [vmem:[#allocation3 + $0xcc] ss:$20 sps:$4 sm:$0xff]  }
  0x20   :  { %1725 = vmatpush1.bf16.msra.mxu0 %v3930_v24  ;;  %v55_v48 = vld [vmem:[%s5603_s0 + $0x68] sm:$0xff]  ;;  %v3954_v52 = vld [vmem:[#allocation3 + $0xd0] ss:$20 sps:$4 sm:$0xff]   ;;  %v57_v56 = vld [vmem:[%s5603_s0 + $0x78] sm:$0xff] }
  0x21   :  { %1726 = vmatprep.subr.bf16.mxu0 %v3938_v26  ;;  %v4323_v53 = vpack.c.bf16 %v55_v48, %v54_v46  ;;  %v3962_v54 = vld [vmem:[#allocation3 + $0xfc] ss:$20 sps:$4 sm:$0xff]   ;;  %v3959_v58 = vld [vmem:[#allocation3 + $0xf4] ss:$20 sps:$4 sm:$0xff]   ;;  %v3960_v59 = vld [vmem:[#allocation3 + $0xf8] ss:$20 sps:$4 sm:$0xff]  }
  0x22   :  { %1339 = vmatpush1.bf16.msra.mxu1 %v3927_v29  ;;  %v56_v55 = vld [vmem:[%s5603_s0 + $0x70] sm:$0xff]  ;;  %v3951_v57 = vld [vmem:[#allocation3 + $0xc8] ss:$20 sps:$4 sm:$0xff]   ;;  %v58_v60 = vld [vmem:[%s5603_s0 + $0x80] sm:$0xff] }
  0x23   :  { %3270 = vmatmul.mubr.msk.bf16.gmra.mrb[4].mxu0 %vm124_vm2, %v75_v13  ;;  %1340 = vmatprep.subr.bf16.mxu1 %v3935_v30  ;;  %v3968_v61 = vld [vmem:[#allocation3 + $0x124] ss:$20 sps:$4 sm:$0xff]   ;;  %v59_v62 = vld [vmem:[%s5603_s0 + $0x88] sm:$0xff]  ;;  %v4342_v1 = vpack.c.bf16 %v57_v56, %v56_v55  ;;  %v3965_v2 = vld [vmem:[#allocation3 + $0x11c] ss:$20 sps:$4 sm:$0xff]  }
  0x24   :  { %238 = vmatprep.mubr.bf16.mxu0 %v5611_v0  ;;  %1727 = vmatpush1.bf16.msra.mxu0 %v3936_v31  ;;  %v3957_v63 = vld [vmem:[#allocation3 + $0xf0] ss:$20 sps:$4 sm:$0xff]   ;;  %v3966_v3 = vld [vmem:[#allocation3 + $0x120] ss:$20 sps:$4 sm:$0xff]   ;;  %v4344_v4 = vpack.c.bf16 %v59_v62, %v58_v60  ;;  %v61_v7 = vld [vmem:[%s5603_s0 + $0x98] sm:$0xff] }
  0x25   :  { %1728 = vmatprep.subr.bf16.mxu0 %v3944_v33  ;;  %3593 = vmatmul.mubr.msk.bf16.gmra.mrb[4].mxu1 %vm124_vm2, %v77_v36  ;;  %v3974_v5 = vld [vmem:[#allocation3 + $0x14c] ss:$20 sps:$4 sm:$0xff]   ;;  %v60_v6 = vld [vmem:[%s5603_s0 + $0x90] sm:$0xff]  ;;  %v3971_v11 = vld [vmem:[#allocation3 + $0x144] ss:$20 sps:$4 sm:$0xff]  }
  0x26   :  { %3596 = vmatprep.mubr.msk.bf16.mxu1 %vm124_vm2, %v78_v39  ;;  %1341 = vmatpush1.bf16.msra.mxu1 %v3933_v35  ;;  %v3963_v8 = vld [vmem:[#allocation3 + $0x118] ss:$20 sps:$4 sm:$0xff]   ;;  %v62_v9 = vld [vmem:[%s5603_s0 + $0xa0] sm:$0xff]  ;;  %v3972_v12 = vld [vmem:[#allocation3 + $0x148] ss:$20 sps:$4 sm:$0xff]   ;;  %v4364_v18 = vpack.c.bf16 %v61_v7, %v60_v6 }
  0x27   :  { %1342 = vmatprep.subr.bf16.mxu1 %v3941_v37  ;;  %v63_v10 = vld [vmem:[%s5603_s0 + $0xa8] sm:$0xff]  ;;  %v3969_v13 = vld [vmem:[#allocation3 + $0x140] ss:$20 sps:$4 sm:$0xff]   ;;  %v3978_v16 = vld [vmem:[#allocation3 + $0x170] ss:$20 sps:$4 sm:$0xff]  }
  0x28   :  { %1729 = vmatpush1.bf16.msra.mxu0 %v3942_v38  ;;  %v3980_v14 = vld [vmem:[#allocation3 + $0x174] ss:$20 sps:$4 sm:$0xff]   ;;  %v3977_v15 = vld [vmem:[#allocation3 + $0x16c] ss:$20 sps:$4 sm:$0xff]   ;;  %v3986_v17 = vld [vmem:[#allocation3 + $0x19c] ss:$20 sps:$4 sm:$0xff]   ;;  %v4366_v19 = vpack.c.bf16 %v63_v10, %v62_v9 }
  0x29   :  { %1730 = vmatprep.subr.bf16.mxu0 %v3950_v40  ;;  %v3975_v20 = vld [vmem:[#allocation3 + $0x168] ss:$20 sps:$4 sm:$0xff]   ;;  %v3984_v22 = vld [vmem:[#allocation3 + $0x198] ss:$20 sps:$4 sm:$0xff]   ;;  %v64_v23 = vld [vmem:[%s5603_s0 + $0xb0] sm:$0xff] }
  0x2a   :  { %1343 = vmatpush1.bf16.msra.mxu1 %v3939_v43  ;;  %v3983_v21 = vld [vmem:[#allocation3 + $0x194] ss:$20 sps:$4 sm:$0xff]   ;;  %v65_v24 = vld [vmem:[%s5603_s0 + $0xb8] sm:$0xff]  ;;  %v66_v26 = vld [vmem:[%s5603_s0 + $0xc0] sm:$0xff] }
  0x2b   :  { %3271 = vmatmul.mubr.msk.bf16.gmra.mrb[8].mxu0 %vm124_vm2, %v76_v25  ;;  %1344 = vmatprep.subr.bf16.mxu1 %v3947_v44  ;;  %v3992_v25 = vld [vmem:[#allocation3 + $0x1c4] ss:$20 sps:$4 sm:$0xff]   ;;  %v67_v27 = vld [vmem:[%s5603_s0 + $0xc8] sm:$0xff]  ;;  %v3989_v29 = vld [vmem:[#allocation3 + $0x1bc] ss:$20 sps:$4 sm:$0xff]   ;;  %v85_v32 = vpack.c.bf16 %v65_v24, %v64_v23 }
  0x2c   :  { %248 = vmatprep.mubr.bf16.mxu0 %v5611_v0  ;;  %1731 = vmatpush1.bf16.msra.mxu0 %v3948_v45  ;;  %v3981_v28 = vld [vmem:[#allocation3 + $0x190] ss:$20 sps:$4 sm:$0xff]   ;;  %v3990_v30 = vld [vmem:[#allocation3 + $0x1c0] ss:$20 sps:$4 sm:$0xff]   ;;  %v86_v33 = vpack.c.bf16 %v67_v27, %v66_v26  ;;  %v3987_v34 = vld [vmem:[#allocation3 + $0x1b8] ss:$20 sps:$4 sm:$0xff]  }
  0x2d   :  { %1732 = vmatprep.subr.bf16.mxu0 %v3956_v47  ;;  %3597 = vmatmul.mubr.msk.bf16.gmra.mrb[8].mxu1 %vm124_vm2, %v79_v50  ;;  %v3998_v31 = vld [vmem:[#allocation3 + $0x1ec] ss:$20 sps:$4 sm:$0xff]   ;;  %v3995_v35 = vld [vmem:[#allocation3 + $0x1e4] ss:$20 sps:$4 sm:$0xff]   ;;  %v68_v37 = vld [vmem:[%s5603_s0 + $0xd0] sm:$0xff] }
  0x2e   :  { %3600 = vmatprep.mubr.msk.bf16.mxu1 %vm124_vm2, %v4323_v53  ;;  %1345 = vmatpush1.bf16.msra.mxu1 %v3945_v49  ;;  %v69_v38 = vld [vmem:[%s5603_s0 + $0xd8] sm:$0xff]  ;;  %v70_v40 = vld [vmem:[%s5603_s0 + $0xe0] sm:$0xff]  ;;  %v71_v41 = vld [vmem:[%s5603_s0 + $0xe8] sm:$0xff] }
  0x2f   :  { %1346 = vmatprep.subr.bf16.mxu1 %v3953_v51  ;;  %v3993_v42 = vld [vmem:[#allocation3 + $0x1e0] ss:$20 sps:$4 sm:$0xff]   ;;  %v4002_v44 = vld [vmem:[#allocation3 + $0x210] ss:$20 sps:$4 sm:$0xff]   ;;  %v87_v45 = vpack.c.bf16 %v69_v38, %v68_v37  ;;  %v88_v46 = vpack.c.bf16 %v71_v41, %v70_v40  ;;  %v3999_v47 = vld [vmem:[#allocation3 + $0x208] ss:$20 sps:$4 sm:$0xff]  }
  0x30   :  { %1733 = vmatpush1.bf16.msra.mxu0 %v3954_v52  ;;  %v4001_v43 = vld [vmem:[#allocation3 + $0x20c] ss:$20 sps:$4 sm:$0xff]   ;;  %v72_v48 = vld [vmem:[%s5603_s0 + $0xf0] sm:$0xff]  ;;  %v73_v49 = vld [vmem:[%s5603_s0 + $0xf8] sm:$0xff] }
  0x31   :  { %1734 = vmatprep.subr.bf16.mxu0 %v3962_v54  ;;  %v4007_v51 = vld [vmem:[#allocation3 + $0x234] ss:$20 sps:$4 sm:$0xff]   ;;  %v4010_v52 = vld [vmem:[#allocation3 + $0x23c] ss:$20 sps:$4 sm:$0xff]   ;;  %v4008_v54 = vld [vmem:[#allocation3 + $0x238] ss:$20 sps:$4 sm:$0xff]  }
  0x32   :  { %1347 = vmatpush1.bf16.msra.mxu1 %v3951_v57  ;;  %v4013_v55 = vld [vmem:[#allocation3 + $0x25c] ss:$20 sps:$4 sm:$0xff]   ;;  %v4016_v56 = vld [vmem:[#allocation3 + $0x264] ss:$20 sps:$4 sm:$0xff]   ;;  %v4025_v60 = vld [vmem:[#allocation3 + $0x28c] ss:$20 sps:$4 sm:$0xff]  }
  0x33   :  { %3272 = vmatmul.mubr.msk.bf16.gmra.mrb[12].mxu0 %vm124_vm2, %v77_v36  ;;  %1348 = vmatprep.subr.bf16.mxu1 %v3959_v58  ;;  %v3996_v36 = vld [vmem:[#allocation3 + $0x1e8] ss:$20 sps:$4 sm:$0xff]   ;;  %v4011_v57 = vld [vmem:[#allocation3 + $0x258] ss:$20 sps:$4 sm:$0xff]   ;;  %v4014_v58 = vld [vmem:[#allocation3 + $0x260] ss:$20 sps:$4 sm:$0xff]  }
  0x34   :  { %258 = vmatprep.mubr.bf16.mxu0 %v5611_v0  ;;  %1735 = vmatpush1.bf16.msra.mxu0 %v3960_v59  ;;  %v4019_v59 = vld [vmem:[#allocation3 + $0x284] ss:$20 sps:$4 sm:$0xff]   ;;  %v4028_v26 = vld [vmem:[#allocation3 + $0x2b4] ss:$20 sps:$4 sm:$0xff]  }
  0x35   :  { %1736 = vmatprep.subr.bf16.mxu0 %v3968_v61  ;;  %3601 = vmatmul.mubr.msk.bf16.gmra.mrb[12].mxu1 %vm124_vm2, %v4342_v1  ;;  %v96_v61 = vlaneseq  ;;  %v4029_v38 = vld [vmem:[#allocation3 + $0x150] ss:$20 sps:$4 sm:$0xff]  }
  0x36   :  { %1349 = vmatpush1.bf16.msra.mxu1 %v3957_v63  ;;  %3604 = vmatprep.mubr.msk.bf16.mxu1 %vm124_vm2, %v4344_v4 }
  0x37   :  { %1350 = vmatprep.subr.bf16.mxu1 %v3965_v2  ;;  %v4431_v62 = vshrl.u32 %v96_v61, 7 }
  0x38   :  { %1737 = vmatpush1.bf16.msra.mxu0 %v3966_v3 }
  0x39   :  { %1738 = vmatprep.subr.bf16.mxu0 %v3974_v5  ;;  %v4434_v63 = vsub.s32 0, %v4431_v62  ;;  %v4440_v2 = vsub.s32 1, %v4431_v62 }
  0x3a   :  { %1351 = vmatpush1.bf16.msra.mxu1 %v3963_v8 }
  0x3b   :  { %3273 = vmatmul.mubr.msk.bf16.gmra.mrb[16].mxu0 %vm124_vm2, %v78_v39  ;;  %1352 = vmatprep.subr.bf16.mxu1 %v3971_v11  ;;  %v4004_v39 = vld [vmem:[#allocation3 + $0x214] ss:$20 sps:$4 sm:$0xff]  }
  0x3c   :  { %268 = vmatprep.mubr.bf16.mxu0 %v5611_v0  ;;  %1739 = vmatpush1.bf16.msra.mxu0 %v3972_v12 }
  0x3d   :  { %1740 = vmatprep.subr.bf16.mxu0 %v3980_v14  ;;  %3605 = vmatmul.mubr.msk.bf16.gmra.mrb[16].mxu1 %vm124_vm2, %v4364_v18 }
  0x3e   :  { %1353 = vmatpush1.bf16.msra.mxu1 %v3969_v13  ;;  %3608 = vmatprep.mubr.msk.bf16.mxu1 %vm124_vm2, %v4366_v19 }
  0x3f   :  { %1354 = vmatprep.subr.bf16.mxu1 %v3977_v15 }
  0x40   :  { %1741 = vmatpush1.bf16.msra.mxu0 %v3978_v16 }
  0x41   :  { %1742 = vmatprep.subr.bf16.mxu0 %v3986_v17  ;;  %v4453_v17 = vsub.s32 2, %v4431_v62 }
  0x42   :  { %1355 = vmatpush1.bf16.msra.mxu1 %v3975_v20 }
  0x43   :  { %3274 = vmatmul.mubr.msk.bf16.gmra.mrb[20].mxu0 %vm124_vm2, %v79_v50  ;;  %1356 = vmatprep.subr.bf16.mxu1 %v3983_v21  ;;  %v89_v50 = vpack.c.bf16 %v73_v49, %v72_v48  ;;  %v4017_v21 = vld [vmem:[#allocation3 + $0x280] ss:$20 sps:$4 sm:$0xff]  }
  0x44   :  { %278 = vmatprep.mubr.bf16.mxu0 %v5611_v0  ;;  %1743 = vmatpush1.bf16.msra.mxu0 %v3984_v22  ;;  %v4023_v22 = vld [vmem:[#allocation3 + $0x288] ss:$20 sps:$4 sm:$0xff]  }
  0x45   :  { %1744 = vmatprep.subr.bf16.mxu0 %v3992_v25  ;;  %3609 = vmatmul.mubr.msk.bf16.gmra.mrb[20].mxu1 %vm124_vm2, %v85_v32  ;;  %v4022_v25 = vld [vmem:[#allocation3 + $0x2ac] ss:$20 sps:$4 sm:$0xff]  }
  0x46   :  { %1357 = vmatpush1.bf16.msra.mxu1 %v3981_v28  ;;  %3612 = vmatprep.mubr.msk.bf16.mxu1 %vm124_vm2, %v86_v33 }
  0x47   :  { %1358 = vmatprep.subr.bf16.mxu1 %v3989_v29 }
  0x48   :  { %1745 = vmatpush1.bf16.msra.mxu0 %v3990_v30 }
  0x49   :  { %1746 = vmatprep.subr.bf16.mxu0 %v3998_v31 }
  0x4a   :  { %1359 = vmatpush1.bf16.msra.mxu1 %v3987_v34  ;;  %v4026_v34 = vld [vmem:[#allocation3 + $0x2b0] ss:$20 sps:$4 sm:$0xff]  }
  0x4b   :  { %3275 = vmatmul.mubr.msk.bf16.gmra.mrb[24].mxu0 %vm124_vm2, %v4323_v53  ;;  %1360 = vmatprep.subr.bf16.mxu1 %v3995_v35  ;;  %v4005_v53 = vld [vmem:[#allocation3 + $0x230] ss:$20 sps:$4 sm:$0xff]  }
  0x4c   :  { %288 = vmatprep.mubr.bf16.mxu0 %v5611_v0  ;;  %1747 = vmatpush1.bf16.msra.mxu0 %v3996_v36 }
  0x4d   :  { %1748 = vmatprep.subr.bf16.mxu0 %v4004_v39  ;;  %3613 = vmatmul.mubr.msk.bf16.gmra.mrb[24].mxu1 %vm124_vm2, %v87_v45 }
  0x4e   :  { %1361 = vmatpush1.bf16.msra.mxu1 %v3993_v42  ;;  %3616 = vmatprep.mubr.msk.bf16.mxu1 %vm124_vm2, %v88_v46 }
  0x4f   :  { %1362 = vmatprep.subr.bf16.mxu1 %v4001_v43 }
  0x50   :  { %1749 = vmatpush1.bf16.msra.mxu0 %v4002_v44 }
  0x51   :  { %1750 = vmatprep.subr.bf16.mxu0 %v4010_v52 }
  0x52   :  { %1363 = vmatpush1.bf16.msra.mxu1 %v3999_v47 }
  0x53   :  { %3276 = vmatmul.mubr.msk.bf16.gmra.mrb[28].mxu0 %vm124_vm2, %v4342_v1  ;;  %1364 = vmatprep.subr.bf16.mxu1 %v4007_v51  ;;  %v94_v1 = vld [vmem:[%s5605_s2] sm:$0x7] }
  0x54   :  { %298 = vmatprep.mubr.bf16.mxu0 %v5611_v0  ;;  %1751 = vmatpush1.bf16.msra.mxu0 %v4008_v54  ;;  %v4443_v3 = vrot.slane %v94_v1, %v4434_v63  ;;  %v4464_v29 = vrot.slane %v94_v1, %v4453_v17 }
  0x55   :  { %3617 = vmatmul.mubr.msk.bf16.gmra.mrb[28].mxu1 %vm124_vm2, %v89_v50  ;;  %1752 = vmatprep.subr.bf16.mxu0 %v4016_v56 }
  0x56   :  { %1365 = vmatpush1.bf16.msra.mxu1 %v4005_v53 }
  0x57   :  { %1366 = vmatprep.subr.bf16.mxu1 %v4013_v55 }
  0x58   :  { %1753 = vmatpush1.bf16.msra.mxu0 %v4014_v58 }
  0x59   :  { %1915 = vmatprep.subr.bf16.mxu0 %v4025_v60 }
  0x5a   :  { %1367 = vmatpush1.bf16.msra.mxu1 %v4011_v57 }
  0x5b   :  { %3277 = vmatmul.mubr.msk.bf16.gmra.mrb[32].mxu0 %vm124_vm2, %v4344_v4  ;;  %1529 = vmatprep.subr.bf16.mxu1 %v4019_v59  ;;  %v4446_v4 = vrot.slane %v94_v1, %v4440_v2 }
  0x5c   :  { %308 = vmatprep.mubr.bf16.mxu0 %v5611_v0 }
  0x63   :  { %3278 = vmatmul.mubr.msk.bf16.gmra.mrb[36].mxu0 %vm124_vm2, %v4364_v18 }
  0x64   :  { %318 = vmatprep.mubr.bf16.mxu0 %v5611_v0 }
  0x6b   :  { %3279 = vmatmul.mubr.msk.bf16.gmra.mrb[40].mxu0 %vm124_vm2, %v4366_v19 }
  0x6c   :  { %328 = vmatprep.mubr.bf16.mxu0 %v5611_v0 }
  0x73   :  { %3280 = vmatmul.mubr.msk.bf16.gmra.mrb[44].mxu0 %vm124_vm2, %v85_v32 }
  0x74   :  { %338 = vmatprep.mubr.bf16.mxu0 %v5611_v0 }
  0x7b   :  { %3281 = vmatmul.mubr.msk.bf16.gmra.mrb[48].mxu0 %vm124_vm2, %v86_v33  ;;  %v4020_v33 = vld [vmem:[#allocation3 + $0x2a8] ss:$20 sps:$4 sm:$0xff]  }
  0x7c   :  { %348 = vmatprep.mubr.bf16.mxu0 %v5611_v0 }
  0x83   :  { %3282 = vmatmul.mubr.msk.bf16.gmra.mrb[52].mxu0 %vm124_vm2, %v87_v45 }
  0x84   :  { %358 = vmatprep.mubr.bf16.mxu0 %v5611_v0 }
  0x8b   :  { %3283 = vmatmul.mubr.msk.bf16.gmra.mrb[56].mxu0 %vm124_vm2, %v88_v46 }
  0x8c   :  { %368 = vmatprep.mubr.bf16.mxu0 %v5611_v0 }
  0x93   :  { %3284 = vmatmul.mubr.msk.bf16.gmra.mrb[60].mxu0 %vm124_vm2, %v89_v50 }
  0xee   :  { %v220_v5 = vpop.f32.mrb[0].mxu0 }
  0xef   :  { %v221_v6 = vadd.f32 %v220_v5, %v4443_v3  ;;  %v222_v7 = vpop.f32.mrb[1].mxu0 }
  0xf0   :  { %v223_v8 = vadd.f32 %v222_v7, %v4446_v4  ;;  %v224_v9 = vpop.f32.mrb[2].mxu0  ;;  %v3590_v37 = vpop.f32.mrb[0].mxu1 }
  0xf1   :  { %v225_v10 = vadd.f32 %v224_v9, %v4443_v3  ;;  %v226_v11 = vpop.f32.mrb[3].mxu0  ;;  %v540_v13 = vmax.f32 %v221_v6, 0.0  ;;  %v422_v41 = vadd.f32 %v3590_v37, %v4464_v29  ;;  %v413_v42 = vpop.f32.mrb[1].mxu1 }
  0xf2   :  { %v227_v12 = vadd.f32 %v226_v11, %v4446_v4  ;;  %v541_v15 = vmax.f32 %v223_v8, 0.0  ;;  %v414_v44 = vadd.f32 %v413_v42, %v4464_v29  ;;  %v3591_v45 = vpop.f32.mrb[2].mxu1 }
  0xf3   :  { %v543_v14 = vmax.f32 %v225_v10, 0.0  ;;  %v548_v48 = vmax.f32 %v422_v41, 0.0  ;;  %v425_v49 = vadd.f32 %v3591_v45, %v4464_v29  ;;  %v416_v50 = vpop.f32.mrb[3].mxu1 }
  0xf4   :  { %v544_v16 = vmax.f32 %v227_v12, 0.0  ;;  %v542_v53 = vmax.f32 %v414_v44, 0.0  ;;  %v417_v54 = vadd.f32 %v416_v50, %v4464_v29 }
  0xf5   :  { %v4455_v18 = vpack.c.bf16 %v543_v14, %v540_v13  ;;  %v551_v57 = vmax.f32 %v425_v49, 0.0 }
  0xf6   :  { %v4457_v19 = vpack.c.bf16 %v544_v16, %v541_v15  ;;  %v230_v20 = vpop.f32.mrb[4].mxu0  ;;  %v545_v60 = vmax.f32 %v417_v54, 0.0 }
  0xf7   :  { %v231_v23 = vadd.f32 %v230_v20, %v4443_v3  ;;  %v232_v24 = vpop.f32.mrb[5].mxu0  ;;  %v4486_v1 = vpack.c.bf16 %v551_v57, %v548_v48 }
  0xf8   :  { %v233_v27 = vadd.f32 %v232_v24, %v4446_v4  ;;  %v234_v28 = vpop.f32.mrb[6].mxu0  ;;  %1368 = vmatprep.mubr.bf16.mxu1 %v4457_v19  ;;  %1754 = vmatprep.mubr.bf16.mxu0 %v4457_v19  ;;  %v4488_v7 = vpack.c.bf16 %v545_v60, %v542_v53  ;;  %v3594_v8 = vpop.f32.mrb[4].mxu1 }
  0xf9   :  { %v235_v30 = vadd.f32 %v234_v28, %v4443_v3  ;;  %v236_v31 = vpop.f32.mrb[7].mxu0  ;;  %1369 = vmatmul.mubr.bf16.vlgmr.msra.gmra.mrb[32].mxu1 %v4455_v18  ;;  %1755 = vmatmul.mubr.bf16.vlgmr.msra.gmra.mrb[64].mxu0 %v4455_v18  ;;  %v546_v35 = vmax.f32 %v231_v23, 0.0  ;;  %v438_v11 = vadd.f32 %v3594_v8, %v4464_v29  ;;  %v429_v12 = vpop.f32.mrb[5].mxu1 }
  0xfa   :  { %v237_v32 = vadd.f32 %v236_v31, %v4446_v4  ;;  %1530 = vmatpush1.bf16.msra.mxu1 %v4017_v21  ;;  %1916 = vmatpush1.bf16.msra.mxu0 %v4023_v22  ;;  %v547_v39 = vmax.f32 %v233_v27, 0.0  ;;  %v430_v14 = vadd.f32 %v429_v12, %v4464_v29  ;;  %v3595_v15 = vpop.f32.mrb[6].mxu1 }
  0xfb   :  { %v549_v36 = vmax.f32 %v235_v30, 0.0  ;;  %1531 = vmatprep.subr.bf16.mxu1 %v4022_v25  ;;  %1917 = vmatprep.subr.bf16.mxu0 %v4028_v26  ;;  %v560_v21 = vmax.f32 %v438_v11, 0.0  ;;  %v441_v22 = vadd.f32 %v3595_v15, %v4464_v29  ;;  %v432_v23 = vpop.f32.mrb[7].mxu1 }
  0xfc   :  { %v550_v40 = vmax.f32 %v237_v32, 0.0  ;;  %v554_v26 = vmax.f32 %v430_v14, 0.0  ;;  %v433_v27 = vadd.f32 %v432_v23, %v4464_v29 }
  0xfd   :  { %v4471_v43 = vpack.c.bf16 %v549_v36, %v546_v35  ;;  %v563_v31 = vmax.f32 %v441_v22, 0.0 }
  0xfe   :  { %v4474_v46 = vpack.c.bf16 %v550_v40, %v547_v39  ;;  %v240_v47 = vpop.f32.mrb[8].mxu0  ;;  %1532 = vmatpush1.bf16.msra.mxu1 %v4020_v33  ;;  %1918 = vmatpush1.bf16.msra.mxu0 %v4026_v34  ;;  %v557_v34 = vmax.f32 %v433_v27, 0.0 }
  0xff   :  { %v241_v51 = vadd.f32 %v240_v47, %v4443_v3  ;;  %v242_v52 = vpop.f32.mrb[9].mxu0  ;;  %3456 = vmatprep.subr.bf16.mxu1 %v4029_v38  ;;  %v4506_v36 = vpack.c.bf16 %v563_v31, %v560_v21 }
 0x100   :  { %v243_v55 = vadd.f32 %v242_v52, %v4446_v4  ;;  %v244_v56 = vpop.f32.mrb[10].mxu0  ;;  %1378 = vmatprep.mubr.bf16.mxu1 %v4474_v46  ;;  %1764 = vmatprep.mubr.bf16.mxu0 %v4474_v46  ;;  %v4508_v39 = vpack.c.bf16 %v557_v34, %v554_v26  ;;  %v3598_v40 = vpop.f32.mrb[8].mxu1 }
 0x101   :  { %v245_v58 = vadd.f32 %v244_v56, %v4443_v3  ;;  %v246_v59 = vpop.f32.mrb[11].mxu0  ;;  %1379 = vmatmul.mubr.bf16.gmra.mrb[36].mxu1 %v4471_v43  ;;  %1765 = vmatmul.mubr.bf16.gmra.mrb[68].mxu0 %v4471_v43  ;;  %v552_v5 = vmax.f32 %v241_v51, 0.0  ;;  %v454_v44 = vadd.f32 %v3598_v40, %v4464_v29  ;;  %v445_v45 = vpop.f32.mrb[9].mxu1 }
 0x102   :  { %v247_v61 = vadd.f32 %v246_v59, %v4446_v4  ;;  %v553_v9 = vmax.f32 %v243_v55, 0.0  ;;  %v446_v48 = vadd.f32 %v445_v45, %v4464_v29  ;;  %v3599_v49 = vpop.f32.mrb[10].mxu1 }
 0x103   :  { %v555_v6 = vmax.f32 %v245_v58, 0.0  ;;  %v572_v52 = vmax.f32 %v454_v44, 0.0  ;;  %v457_v53 = vadd.f32 %v3599_v49, %v4464_v29  ;;  %v448_v54 = vpop.f32.mrb[11].mxu1 }
 0x104   :  { %v556_v10 = vmax.f32 %v247_v61, 0.0  ;;  %v566_v57 = vmax.f32 %v446_v48, 0.0  ;;  %v449_v58 = vadd.f32 %v448_v54, %v4464_v29 }
 0x105   :  { %v4491_v13 = vpack.c.bf16 %v555_v6, %v552_v5  ;;  %v575_v61 = vmax.f32 %v457_v53, 0.0 }
 0x106   :  { %v4494_v16 = vpack.c.bf16 %v556_v10, %v553_v9  ;;  %v250_v20 = vpop.f32.mrb[12].mxu0  ;;  %v569_v8 = vmax.f32 %v449_v58, 0.0 }
 0x107   :  { %v251_v24 = vadd.f32 %v250_v20, %v4443_v3  ;;  %v252_v25 = vpop.f32.mrb[13].mxu0  ;;  %v4526_v10 = vpack.c.bf16 %v575_v61, %v572_v52 }
 0x108   :  { %v253_v28 = vadd.f32 %v252_v25, %v4446_v4  ;;  %v254_v30 = vpop.f32.mrb[14].mxu0  ;;  %1388 = vmatprep.mubr.bf16.mxu1 %v4494_v16  ;;  %1774 = vmatprep.mubr.bf16.mxu0 %v4494_v16  ;;  %v4528_v14 = vpack.c.bf16 %v569_v8, %v566_v57  ;;  %v3602_v31 = vpop.f32.mrb[12].mxu1 }
 0x109   :  { %v255_v32 = vadd.f32 %v254_v30, %v4443_v3  ;;  %v256_v33 = vpop.f32.mrb[15].mxu0  ;;  %1389 = vmatmul.mubr.bf16.gmra.mrb[40].mxu1 %v4491_v13  ;;  %1775 = vmatmul.mubr.bf16.gmra.mrb[72].mxu0 %v4491_v13  ;;  %v558_v37 = vmax.f32 %v251_v24, 0.0  ;;  %v461_v34 = vpop.f32.mrb[13].mxu1 }
 0x10a   :  { %v257_v35 = vadd.f32 %v256_v33, %v4446_v4  ;;  %v559_v41 = vmax.f32 %v253_v28, 0.0  ;;  %v470_v33 = vadd.f32 %v3602_v31, %v4464_v29  ;;  %v3603_v40 = vpop.f32.mrb[14].mxu1 }
 0x10b   :  { %v561_v38 = vmax.f32 %v255_v32, 0.0  ;;  %v473_v45 = vadd.f32 %v3603_v40, %v4464_v29  ;;  %v464_v48 = vpop.f32.mrb[15].mxu1 }
 0x10c   :  { %v562_v42 = vmax.f32 %v257_v35, 0.0  ;;  %v584_v44 = vmax.f32 %v470_v33, 0.0  ;;  %v465_v52 = vadd.f32 %v464_v48, %v4464_v29 }
 0x10d   :  { %v4511_v47 = vpack.c.bf16 %v561_v38, %v558_v37  ;;  %v462_v38 = vadd.f32 %v461_v34, %v4464_v29 }
 0x10e   :  { %v4514_v50 = vpack.c.bf16 %v562_v42, %v559_v41  ;;  %v260_v51 = vpop.f32.mrb[16].mxu0  ;;  %v581_v58 = vmax.f32 %v465_v52, 0.0 }
 0x10f   :  { %v261_v55 = vadd.f32 %v260_v51, %v4443_v3  ;;  %v262_v56 = vpop.f32.mrb[17].mxu0  ;;  %v578_v51 = vmax.f32 %v462_v38, 0.0 }
 0x110   :  { %v263_v59 = vadd.f32 %v262_v56, %v4446_v4  ;;  %v264_v60 = vpop.f32.mrb[18].mxu0  ;;  %1398 = vmatprep.mubr.bf16.mxu1 %v4514_v50  ;;  %1784 = vmatprep.mubr.bf16.mxu0 %v4514_v50 }
 0x111   :  { %v265_v5 = vadd.f32 %v264_v60, %v4443_v3  ;;  %v266_v6 = vpop.f32.mrb[19].mxu0  ;;  %1399 = vmatmul.mubr.bf16.gmra.mrb[44].mxu1 %v4511_v47  ;;  %1785 = vmatmul.mubr.bf16.gmra.mrb[76].mxu0 %v4511_v47  ;;  %v564_v11 = vmax.f32 %v261_v55, 0.0  ;;  %v587_v55 = vmax.f32 %v473_v45, 0.0  ;;  %v4559_v8 = vpack.c.bf16 %v581_v58, %v578_v51 }
 0x112   :  { %v267_v9 = vadd.f32 %v266_v6, %v4446_v4  ;;  %v565_v15 = vmax.f32 %v263_v59, 0.0 }
 0x113   :  { %v567_v12 = vmax.f32 %v265_v5, 0.0  ;;  %v4554_v61 = vpack.c.bf16 %v587_v55, %v584_v44 }
 0x114   :  { %v568_v20 = vmax.f32 %v267_v9, 0.0 }
 0x115   :  { %v4530_v21 = vpack.c.bf16 %v567_v12, %v564_v11  ;;  %v3606_v11 = vpop.f32.mrb[16].mxu1 }
 0x116   :  { %v4532_v22 = vpack.c.bf16 %v568_v20, %v565_v15  ;;  %v270_v23 = vpop.f32.mrb[20].mxu0 }
 0x117   :  { %v271_v24 = vadd.f32 %v270_v23, %v4443_v3  ;;  %v272_v25 = vpop.f32.mrb[21].mxu0 }
 0x118   :  { %v273_v26 = vadd.f32 %v272_v25, %v4446_v4  ;;  %v274_v27 = vpop.f32.mrb[22].mxu0  ;;  %1408 = vmatprep.mubr.bf16.mxu1 %v4532_v22  ;;  %1794 = vmatprep.mubr.bf16.mxu0 %v4532_v22 }
 0x119   :  { %v275_v28 = vadd.f32 %v274_v27, %v4443_v3  ;;  %v276_v30 = vpop.f32.mrb[23].mxu0  ;;  %1409 = vmatmul.mubr.bf16.gmra.mrb[48].mxu1 %v4530_v21  ;;  %1795 = vmatmul.mubr.bf16.gmra.mrb[80].mxu0 %v4530_v21  ;;  %v570_v35 = vmax.f32 %v271_v24, 0.0 }
 0x11a   :  { %v277_v32 = vadd.f32 %v276_v30, %v4446_v4  ;;  %v571_v41 = vmax.f32 %v273_v26, 0.0  ;;  %v486_v30 = vadd.f32 %v3606_v11, %v4464_v29 }
 0x11b   :  { %v573_v37 = vmax.f32 %v275_v28, 0.0 }
 0x11c   :  { %v574_v42 = vmax.f32 %v277_v32, 0.0  ;;  %v596_v44 = vmax.f32 %v486_v30, 0.0 }
 0x11d   :  { %v4545_v49 = vpack.c.bf16 %v573_v37, %v570_v35  ;;  %v477_v35 = vpop.f32.mrb[17].mxu1 }
 0x11e   :  { %v4548_v53 = vpack.c.bf16 %v574_v42, %v571_v41  ;;  %v280_v54 = vpop.f32.mrb[24].mxu0  ;;  %v478_v38 = vadd.f32 %v477_v35, %v4464_v29  ;;  %v3607_v40 = vpop.f32.mrb[18].mxu1 }
 0x11f   :  { %v281_v56 = vadd.f32 %v280_v54, %v4443_v3  ;;  %v282_v57 = vpop.f32.mrb[25].mxu0  ;;  %v489_v45 = vadd.f32 %v3607_v40, %v4464_v29  ;;  %v480_v48 = vpop.f32.mrb[19].mxu1 }
 0x120   :  { %v283_v59 = vadd.f32 %v282_v57, %v4446_v4  ;;  %v284_v60 = vpop.f32.mrb[26].mxu0  ;;  %1418 = vmatprep.mubr.bf16.mxu1 %v4548_v53  ;;  %1804 = vmatprep.mubr.bf16.mxu0 %v4548_v53  ;;  %v590_v54 = vmax.f32 %v478_v38, 0.0  ;;  %v481_v55 = vadd.f32 %v480_v48, %v4464_v29 }
 0x121   :  { %v285_v5 = vadd.f32 %v284_v60, %v4443_v3  ;;  %v286_v6 = vpop.f32.mrb[27].mxu0  ;;  %1419 = vmatmul.mubr.bf16.gmra.mrb[52].mxu1 %v4545_v49  ;;  %1805 = vmatmul.mubr.bf16.gmra.mrb[84].mxu0 %v4545_v49  ;;  %v576_v12 = vmax.f32 %v281_v56, 0.0  ;;  %v3610_v56 = vpop.f32.mrb[20].mxu1  ;;  %v599_v58 = vmax.f32 %v489_v45, 0.0 }
 0x122   :  { %v287_v9 = vadd.f32 %v286_v6, %v4446_v4  ;;  %v577_v20 = vmax.f32 %v283_v59, 0.0 }
 0x123   :  { %v579_v15 = vmax.f32 %v285_v5, 0.0  ;;  %v593_v5 = vmax.f32 %v481_v55, 0.0  ;;  %v4583_v11 = vpack.c.bf16 %v599_v58, %v596_v44 }
 0x124   :  { %v580_v23 = vmax.f32 %v287_v9, 0.0 }
 0x125   :  { %v4562_v24 = vpack.c.bf16 %v579_v15, %v576_v12  ;;  %v502_v12 = vadd.f32 %v3610_v56, %v4464_v29 }
 0x126   :  { %v4564_v25 = vpack.c.bf16 %v580_v23, %v577_v20  ;;  %v290_v26 = vpop.f32.mrb[28].mxu0  ;;  %v4589_v23 = vpack.c.bf16 %v593_v5, %v590_v54 }
 0x127   :  { %v291_v27 = vadd.f32 %v290_v26, %v4443_v3  ;;  %v292_v28 = vpop.f32.mrb[29].mxu0 }
 0x128   :  { %v293_v31 = vadd.f32 %v292_v28, %v4446_v4  ;;  %v294_v32 = vpop.f32.mrb[30].mxu0  ;;  %1428 = vmatprep.mubr.bf16.mxu1 %v4564_v25  ;;  %1814 = vmatprep.mubr.bf16.mxu0 %v4564_v25  ;;  %v493_v28 = vpop.f32.mrb[21].mxu1 }
 0x129   :  { %v295_v33 = vadd.f32 %v294_v32, %v4443_v3  ;;  %v296_v34 = vpop.f32.mrb[31].mxu0  ;;  %1429 = vmatmul.mubr.bf16.gmra.mrb[56].mxu1 %v4562_v24  ;;  %1815 = vmatmul.mubr.bf16.gmra.mrb[88].mxu0 %v4562_v24  ;;  %v582_v41 = vmax.f32 %v291_v27, 0.0  ;;  %v3611_v32 = vpop.f32.mrb[22].mxu1 }
 0x12a   :  { %v297_v37 = vadd.f32 %v296_v34, %v4446_v4  ;;  %v583_v51 = vmax.f32 %v293_v31, 0.0  ;;  %v494_v31 = vadd.f32 %v493_v28, %v4464_v29  ;;  %v505_v38 = vadd.f32 %v3611_v32, %v4464_v29  ;;  %v496_v40 = vpop.f32.mrb[23].mxu1 }
 0x12b   :  { %v585_v42 = vmax.f32 %v295_v33, 0.0  ;;  %v4596_v33 = vld [vmem:[#allocation3 + $0x290] ss:$20 sps:$4 sm:$0xff]   ;;  %v497_v45 = vadd.f32 %v496_v40, %v4464_v29  ;;  %v3614_v48 = vpop.f32.mrb[24].mxu1 }
 0x12c   :  { %v586_v52 = vmax.f32 %v297_v37, 0.0  ;;  %v608_v37 = vmax.f32 %v502_v12, 0.0  ;;  %v602_v44 = vmax.f32 %v494_v31, 0.0  ;;  %3620 = vmatprep.subr.bf16.mxu0 %v4596_v33 }
 0x12d   :  { %v4578_v57 = vpack.c.bf16 %v585_v42, %v582_v41  ;;  %v605_v56 = vmax.f32 %v497_v45, 0.0 }
 0x12e   :  { %v4580_v59 = vpack.c.bf16 %v586_v52, %v583_v51  ;;  %v300_v60 = vpop.f32.mrb[32].mxu0  ;;  %v611_v52 = vmax.f32 %v505_v38, 0.0 }
 0x12f   :  { %v301_v6 = vadd.f32 %v300_v60, %v4443_v3  ;;  %v302_v9 = vpop.f32.mrb[33].mxu0 }
 0x130   :  { %v303_v15 = vadd.f32 %v302_v9, %v4446_v4  ;;  %v304_v20 = vpop.f32.mrb[34].mxu0  ;;  %1438 = vmatprep.mubr.bf16.mxu1 %v4580_v59  ;;  %1824 = vmatprep.mubr.bf16.mxu0 %v4580_v59  ;;  %v4606_v5 = vpack.c.bf16 %v611_v52, %v608_v37 }
 0x131   :  { %v305_v26 = vadd.f32 %v304_v20, %v4443_v3  ;;  %v306_v27 = vpop.f32.mrb[35].mxu0  ;;  %1439 = vmatmul.mubr.bf16.gmra.mrb[60].mxu1 %v4578_v57  ;;  %1825 = vmatmul.mubr.bf16.gmra.mrb[92].mxu0 %v4578_v57  ;;  %v588_v34 = vmax.f32 %v301_v6, 0.0  ;;  %v518_v6 = vadd.f32 %v3614_v48, %v4464_v29 }
 0x132   :  { %v307_v30 = vadd.f32 %v306_v27, %v4446_v4  ;;  %v589_v41 = vmax.f32 %v303_v15, 0.0  ;;  %v4612_v15 = vpack.c.bf16 %v605_v56, %v602_v44  ;;  %v509_v27 = vpop.f32.mrb[25].mxu1 }
 0x133   :  { %v591_v35 = vmax.f32 %v305_v26, 0.0  ;;  %v3615_v31 = vpop.f32.mrb[26].mxu1 }
 0x134   :  { %v592_v42 = vmax.f32 %v307_v30, 0.0  ;;  %v510_v30 = vadd.f32 %v509_v27, %v4464_v29  ;;  %v521_v37 = vadd.f32 %v3615_v31, %v4464_v29  ;;  %v512_v38 = vpop.f32.mrb[27].mxu1 }
 0x135   :  { %v4601_v51 = vpack.c.bf16 %v591_v35, %v588_v34  ;;  %v620_v35 = vmax.f32 %v518_v6, 0.0  ;;  %v513_v44 = vadd.f32 %v512_v38, %v4464_v29  ;;  %v3618_v45 = vpop.f32.mrb[28].mxu1 }
 0x136   :  { %v4603_v54 = vpack.c.bf16 %v592_v42, %v589_v41  ;;  %v310_v55 = vpop.f32.mrb[36].mxu0  ;;  %v614_v42 = vmax.f32 %v510_v30, 0.0  ;;  %v623_v52 = vmax.f32 %v521_v37, 0.0  ;;  %v525_v31 = vpop.f32.mrb[29].mxu1 }
 0x137   :  { %v311_v58 = vadd.f32 %v310_v55, %v4443_v3  ;;  %v312_v60 = vpop.f32.mrb[37].mxu0 }
 0x138   :  { %v313_v9 = vadd.f32 %v312_v60, %v4446_v4  ;;  %v314_v12 = vpop.f32.mrb[38].mxu0  ;;  %1448 = vmatprep.mubr.bf16.mxu1 %v4603_v54  ;;  %1834 = vmatprep.mubr.bf16.mxu0 %v4603_v54  ;;  %v617_v60 = vmax.f32 %v513_v44, 0.0  ;;  %v4626_v6 = vpack.c.bf16 %v623_v52, %v620_v35  ;;  %v3619_v35 = vpop.f32.mrb[30].mxu1 }
 0x139   :  { %v315_v20 = vadd.f32 %v314_v12, %v4443_v3  ;;  %v316_v26 = vpop.f32.mrb[39].mxu0  ;;  %1449 = vmatmul.mubr.bf16.gmra.mrb[64].mxu1 %v4601_v51  ;;  %1835 = vmatmul.mubr.bf16.gmra.mrb[96].mxu0 %v4601_v51  ;;  %v594_v32 = vmax.f32 %v311_v58, 0.0 }
 0x13a   :  { %v317_v28 = vadd.f32 %v316_v26, %v4446_v4  ;;  %v595_v40 = vmax.f32 %v313_v9, 0.0  ;;  %v4632_v27 = vpack.c.bf16 %v617_v60, %v614_v42  ;;  %v528_v42 = vpop.f32.mrb[31].mxu1 }
 0x13b   :  { %v597_v34 = vmax.f32 %v315_v20, 0.0  ;;  %v534_v20 = vadd.f32 %v3618_v45, %v4464_v29 }
 0x13c   :  { %v598_v41 = vmax.f32 %v317_v28, 0.0 }
 0x13d   :  { %v4621_v48 = vpack.c.bf16 %v597_v34, %v594_v32  ;;  %v526_v34 = vadd.f32 %v525_v31, %v4464_v29 }
 0x13e   :  { %v4623_v55 = vpack.c.bf16 %v598_v41, %v595_v40  ;;  %v320_v56 = vpop.f32.mrb[40].mxu0  ;;  %v632_v40 = vmax.f32 %v534_v20, 0.0  ;;  %v537_v41 = vadd.f32 %v3619_v35, %v4464_v29 }
 0x13f   :  { %v321_v58 = vadd.f32 %v320_v56, %v4443_v3  ;;  %v322_v12 = vpop.f32.mrb[41].mxu0  ;;  %v626_v52 = vmax.f32 %v526_v34, 0.0  ;;  %v529_v56 = vadd.f32 %v528_v42, %v4464_v29 }
 0x140   :  { %v323_v9 = vadd.f32 %v322_v12, %v4446_v4  ;;  %v324_v26 = vpop.f32.mrb[42].mxu0  ;;  %1458 = vmatprep.mubr.bf16.mxu1 %v4623_v55  ;;  %1844 = vmatprep.mubr.bf16.mxu0 %v4623_v55  ;;  %v635_v12 = vmax.f32 %v537_v41, 0.0 }
 0x141   :  { %v325_v28 = vadd.f32 %v324_v26, %v4443_v3  ;;  %v326_v30 = vpop.f32.mrb[43].mxu0  ;;  %1459 = vmatmul.mubr.bf16.gmra.mrb[68].mxu1 %v4621_v48  ;;  %1845 = vmatmul.mubr.bf16.gmra.mrb[100].mxu0 %v4621_v48  ;;  %v600_v37 = vmax.f32 %v321_v58, 0.0  ;;  %v629_v0 = vmax.f32 %v529_v56, 0.0 }
 0x142   :  { %v327_v32 = vadd.f32 %v326_v30, %v4446_v4  ;;  %v601_v44 = vmax.f32 %v323_v9, 0.0 }
 0x143   :  { %v603_v38 = vmax.f32 %v325_v28, 0.0  ;;  %v4646_v28 = vpack.c.bf16 %v635_v12, %v632_v40  ;;  %v4651_v29 = vpack.c.bf16 %v629_v0, %v626_v52 }
 0x144   :  { %v604_v45 = vmax.f32 %v327_v32, 0.0 }
 0x145   :  { %v4641_v60 = vpack.c.bf16 %v603_v38, %v600_v37 }
 0x146   :  { %v4643_v26 = vpack.c.bf16 %v604_v45, %v601_v44  ;;  %v330_v30 = vpop.f32.mrb[44].mxu0 }
 0x147   :  { %v331_v31 = vadd.f32 %v330_v30, %v4443_v3  ;;  %v332_v58 = vpop.f32.mrb[45].mxu0 }
 0x148   :  { %v333_v20 = vadd.f32 %v332_v58, %v4446_v4  ;;  %v334_v35 = vpop.f32.mrb[46].mxu0  ;;  %1468 = vmatprep.mubr.bf16.mxu1 %v4643_v26  ;;  %1854 = vmatprep.mubr.bf16.mxu0 %v4643_v26 }
 0x149   :  { %v335_v9 = vadd.f32 %v334_v35, %v4443_v3  ;;  %v336_v32 = vpop.f32.mrb[47].mxu0  ;;  %1469 = vmatmul.mubr.bf16.gmra.mrb[72].mxu1 %v4641_v60  ;;  %1855 = vmatmul.mubr.bf16.gmra.mrb[104].mxu0 %v4641_v60  ;;  %v606_v37 = vmax.f32 %v331_v31, 0.0 }
 0x14a   :  { %v337_v34 = vadd.f32 %v336_v32, %v4446_v4  ;;  %v607_v40 = vmax.f32 %v333_v20, 0.0 }
 0x14b   :  { %v609_v38 = vmax.f32 %v335_v9, 0.0 }
 0x14c   :  { %v610_v41 = vmax.f32 %v337_v34, 0.0 }
 0x14d   :  { %v4657_v42 = vpack.c.bf16 %v609_v38, %v606_v37 }
 0x14e   :  { %v4659_v44 = vpack.c.bf16 %v610_v41, %v607_v40  ;;  %v340_v45 = vpop.f32.mrb[48].mxu0 }
 0x14f   :  { %v341_v0 = vadd.f32 %v340_v45, %v4443_v3  ;;  %v342_v52 = vpop.f32.mrb[49].mxu0 }
 0x150   :  { %v343_v56 = vadd.f32 %v342_v52, %v4446_v4  ;;  %v344_v12 = vpop.f32.mrb[50].mxu0  ;;  %1478 = vmatprep.mubr.bf16.mxu1 %v4659_v44  ;;  %1864 = vmatprep.mubr.bf16.mxu0 %v4659_v44 }
 0x151   :  { %v345_v30 = vadd.f32 %v344_v12, %v4443_v3  ;;  %v346_v31 = vpop.f32.mrb[51].mxu0  ;;  %1479 = vmatmul.mubr.bf16.gmra.mrb[76].mxu1 %v4657_v42  ;;  %1865 = vmatmul.mubr.bf16.gmra.mrb[108].mxu0 %v4657_v42  ;;  %v612_v20 = vmax.f32 %v341_v0, 0.0 }
 0x152   :  { %v347_v58 = vadd.f32 %v346_v31, %v4446_v4  ;;  %v613_v9 = vmax.f32 %v343_v56, 0.0 }
 0x153   :  { %v615_v35 = vmax.f32 %v345_v30, 0.0 }
 0x154   :  { %v616_v32 = vmax.f32 %v347_v58, 0.0 }
 0x155   :  { %v4669_v34 = vpack.c.bf16 %v615_v35, %v612_v20 }
 0x156   :  { %v4671_v37 = vpack.c.bf16 %v616_v32, %v613_v9  ;;  %v350_v38 = vpop.f32.mrb[52].mxu0 }
 0x157   :  { %5616 = vst [vmem:[#allocation6_spill] sm:$0xff] %v4669_v34  ;;  %v351_v40 = vadd.f32 %v350_v38, %v4443_v3  ;;  %v352_v41 = vpop.f32.mrb[53].mxu0 }
 0x158   :  { %5617 = vst [vmem:[#allocation7_spill] sm:$0xff] %v4671_v37  ;;  %v353_v45 = vadd.f32 %v352_v41, %v4446_v4  ;;  %v354_v52 = vpop.f32.mrb[54].mxu0  ;;  %1488 = vmatprep.mubr.bf16.mxu1 %v4671_v37  ;;  %1874 = vmatprep.mubr.bf16.mxu0 %v4671_v37 }
 0x159   :  { %v355_v0 = vadd.f32 %v354_v52, %v4443_v3  ;;  %v356_v12 = vpop.f32.mrb[55].mxu0  ;;  %1489 = vmatmul.mubr.bf16.gmra.mrb[80].mxu1 %v4669_v34  ;;  %1875 = vmatmul.mubr.bf16.gmra.mrb[112].mxu0 %v4669_v34  ;;  %v618_v30 = vmax.f32 %v351_v40, 0.0 }
 0x15a   :  { %v357_v56 = vadd.f32 %v356_v12, %v4446_v4  ;;  %v619_v58 = vmax.f32 %v353_v45, 0.0 }
 0x15b   :  { %v621_v31 = vmax.f32 %v355_v0, 0.0 }
 0x15c   :  { %v622_v20 = vmax.f32 %v357_v56, 0.0 }
 0x15d   :  { %v4681_v35 = vpack.c.bf16 %v621_v31, %v618_v30 }
 0x15e   :  { %v4683_v9 = vpack.c.bf16 %v622_v20, %v619_v58  ;;  %v360_v32 = vpop.f32.mrb[56].mxu0 }
 0x15f   :  { %v361_v38 = vadd.f32 %v360_v32, %v4443_v3  ;;  %v362_v41 = vpop.f32.mrb[57].mxu0 }
 0x160   :  { %5618 = vst [vmem:[#allocation8_spill] sm:$0xff] %v4683_v9  ;;  %v363_v52 = vadd.f32 %v362_v41, %v4446_v4  ;;  %v364_v37 = vpop.f32.mrb[58].mxu0  ;;  %1498 = vmatprep.mubr.bf16.mxu1 %v4683_v9  ;;  %1884 = vmatprep.mubr.bf16.mxu0 %v4683_v9 }
 0x161   :  { %v365_v40 = vadd.f32 %v364_v37, %v4443_v3  ;;  %v366_v0 = vpop.f32.mrb[59].mxu0  ;;  %1499 = vmatmul.mubr.bf16.gmra.mrb[84].mxu1 %v4681_v35  ;;  %1885 = vmatmul.mubr.bf16.gmra.mrb[116].mxu0 %v4681_v35  ;;  %v624_v12 = vmax.f32 %v361_v38, 0.0 }
 0x162   :  { %v367_v45 = vadd.f32 %v366_v0, %v4446_v4  ;;  %v625_v30 = vmax.f32 %v363_v52, 0.0 }
 0x163   :  { %v627_v56 = vmax.f32 %v365_v40, 0.0 }
 0x164   :  { %v628_v31 = vmax.f32 %v367_v45, 0.0 }
 0x165   :  { %v4693_v58 = vpack.c.bf16 %v627_v56, %v624_v12 }
 0x166   :  { %v4695_v20 = vpack.c.bf16 %v628_v31, %v625_v30  ;;  %v370_v32 = vpop.f32.mrb[60].mxu0  ;;  %v4046_v31 = vld [vmem:[#allocation3 + $0x2b8] ss:$20 sps:$4 sm:$0xff]  }
 0x167   :  { %v371_v41 = vadd.f32 %v370_v32, %v4443_v3  ;;  %v372_v9 = vpop.f32.mrb[61].mxu0  ;;  %v4032_v32 = vld [vmem:[#allocation3 + $0x38] ss:$20 sps:$4 sm:$0xff]  }
 0x168   :  { %v373_v37 = vadd.f32 %v372_v9, %v4446_v4  ;;  %v374_v34 = vpop.f32.mrb[62].mxu0  ;;  %1508 = vmatprep.mubr.bf16.mxu1 %v4695_v20  ;;  %1894 = vmatprep.mubr.bf16.mxu0 %v4695_v20 }
 0x169   :  { %v375_v38 = vadd.f32 %v374_v34, %v4443_v3  ;;  %v376_v40 = vpop.f32.mrb[63].mxu0  ;;  %1509 = vmatmul.mubr.bf16.gmra.mrb[88].mxu1 %v4693_v58  ;;  %1895 = vmatmul.mubr.bf16.gmra.mrb[120].mxu0 %v4693_v58  ;;  %v630_v0 = vmax.f32 %v371_v41, 0.0  ;;  %v5619_v3 = vmov 0   ;;  %v4031_v34 = vld [vmem:[#allocation3 + $0x178] ss:$20 sps:$4 sm:$0xff]  }
 0x16a   :  { %v377_v52 = vadd.f32 %v376_v40, %v4446_v4  ;;  %v631_v12 = vmax.f32 %v373_v37, 0.0  ;;  %v4030_v4 = vld [vmem:[#allocation3 + $0x10] ss:$20 sps:$4 sm:$0xff]   ;;  %v4033_v41 = vld [vmem:[#allocation3 + $0x1a0] ss:$20 sps:$4 sm:$0xff]  }
 0x16b   :  { %v633_v45 = vmax.f32 %v375_v38, 0.0  ;;  %v4034_v37 = vld [vmem:[#allocation3 + $0x60] ss:$20 sps:$4 sm:$0xff]   ;;  %v4035_v38 = vld [vmem:[#allocation3 + $0x1c8] ss:$20 sps:$4 sm:$0xff]  }
 0x16c   :  { %v634_v56 = vmax.f32 %v377_v52, 0.0  ;;  %v4036_v40 = vld [vmem:[#allocation3 + $0x88] ss:$20 sps:$4 sm:$0xff]   ;;  %v4039_v52 = vld [vmem:[#allocation3 + $0xb0] ss:$20 sps:$4 sm:$0xff]  }
 0x16d   :  { %v4705_v30 = vpack.c.bf16 %v633_v45, %v630_v0  ;;  %v4040_v0 = vld [vmem:[#allocation3 + $0x218] ss:$20 sps:$4 sm:$0xff]  }
 0x16e   :  { %v4707_v9 = vpack.c.bf16 %v634_v56, %v631_v12  ;;  %v4041_v45 = vld [vmem:[#allocation3 + $0xd8] ss:$20 sps:$4 sm:$0xff]   ;;  %v4042_v12 = vld [vmem:[#allocation3 + $0x240] ss:$20 sps:$4 sm:$0xff]  }
 0x16f   :  { %v4043_v56 = vld [vmem:[#allocation3 + $0x100] ss:$20 sps:$4 sm:$0xff]  }
 0x170   :  { %1518 = vmatprep.mubr.bf16.mxu1 %v4707_v9  ;;  %1904 = vmatprep.mubr.bf16.mxu0 %v4707_v9 }
 0x171   :  { %1519 = vmatmul.mubr.bf16.gmra.mrb[92].mxu1 %v4705_v30  ;;  %1905 = vmatmul.mubr.bf16.gmra.mrb[124].mxu0 %v4705_v30 }
 0x172   :  { %1561 = vmatprep.mubr.bf16.mxu1 %v5619_v3  ;;  %1947 = vmatprep.mubr.bf16.mxu0 %v5619_v3 }
 0x179   :  { %3391 = vmatmul.mubr.msk.bf16.vlgmr.msra.gmra.mrb[32].mxu1 %vm1287_vm3, %v4488_v7  ;;  %3407 = vmatmul.mubr.msk.bf16.vlgmr.msra.gmra.mrb[64].mxu0 %vm1287_vm3, %v4488_v7 }
 0x17a   :  { %3457 = vmatpush3.bf16.msra.mxu1 %v4030_v4  ;;  %1571 = vmatprep.mubr.bf16.mxu1 %v5619_v3  ;;  %v4044_v4 = vld [vmem:[#allocation3 + $0x268] ss:$20 sps:$4 sm:$0xff]  }
 0x17b   :  { %1957 = vmatprep.mubr.bf16.mxu0 %v5619_v3  ;;  %3458 = vmatprep.subr.bf16.mxu1 %v4031_v34  ;;  %v4045_v34 = vld [vmem:[#allocation3 + $0x128] ss:$20 sps:$4 sm:$0xff]  }
 0x17c   :  { %3621 = vmatpush3.bf16.msra.mxu0 %v4596_v33  ;;  %v4037_v33 = vld [vmem:[#allocation3 + $0x1f0] ss:$20 sps:$4 sm:$0xff]  }
 0x17d   :  { %3622 = vmatprep.subr.bf16.mxu0 %v4046_v31 }
 0x17e   :  { %3459 = vmatpush3.bf16.msra.mxu1 %v4032_v32 }
 0x17f   :  { %3460 = vmatprep.subr.bf16.mxu1 %v4033_v41 }
 0x180   :  { %3623 = vmatpush3.bf16.msra.mxu0 %v4046_v31 }
 0x181   :  { %3392 = vmatmul.mubr.msk.bf16.gmra.mrb[36].mxu1 %vm1287_vm3, %v4486_v1  ;;  %3408 = vmatmul.mubr.msk.bf16.gmra.mrb[68].mxu0 %vm1287_vm3, %v4486_v1 }
 0x182   :  { %1581 = vmatprep.mubr.bf16.mxu1 %v5619_v3  ;;  %1967 = vmatprep.mubr.bf16.mxu0 %v5619_v3 }
 0x183   :  { %3461 = vmatpush3.bf16.msra.mxu1 %v4034_v37 }
 0x184   :  { %3462 = vmatprep.subr.bf16.mxu1 %v4035_v38 }
 0x187   :  { %3463 = vmatpush3.bf16.msra.mxu1 %v4036_v40 }
 0x188   :  { %3464 = vmatprep.subr.bf16.mxu1 %v4037_v33 }
 0x189   :  { %3393 = vmatmul.mubr.msk.bf16.gmra.mrb[40].mxu1 %vm1287_vm3, %v4508_v39  ;;  %3409 = vmatmul.mubr.msk.bf16.gmra.mrb[72].mxu0 %vm1287_vm3, %v4508_v39 }
 0x18a   :  { %1591 = vmatprep.mubr.bf16.mxu1 %v5619_v3  ;;  %1977 = vmatprep.mubr.bf16.mxu0 %v5619_v3 }
 0x18b   :  { %3465 = vmatpush3.bf16.msra.mxu1 %v4039_v52 }
 0x18c   :  { %3466 = vmatprep.subr.bf16.mxu1 %v4040_v0 }
 0x18f   :  { %3467 = vmatpush3.bf16.msra.mxu1 %v4041_v45 }
 0x190   :  { %3468 = vmatprep.subr.bf16.mxu1 %v4042_v12 }
 0x191   :  { %3394 = vmatmul.mubr.msk.bf16.gmra.mrb[44].mxu1 %vm1287_vm3, %v4506_v36  ;;  %3410 = vmatmul.mubr.msk.bf16.gmra.mrb[76].mxu0 %vm1287_vm3, %v4506_v36 }
 0x192   :  { %1601 = vmatprep.mubr.bf16.mxu1 %v5619_v3  ;;  %1987 = vmatprep.mubr.bf16.mxu0 %v5619_v3 }
 0x193   :  { %3469 = vmatpush3.bf16.msra.mxu1 %v4043_v56 }
 0x194   :  { %3470 = vmatprep.subr.bf16.mxu1 %v4044_v4 }
 0x197   :  { %3471 = vmatpush3.bf16.msra.mxu1 %v4045_v34 }
 0x199   :  { %3395 = vmatmul.mubr.msk.bf16.gmra.mrb[48].mxu1 %vm1287_vm3, %v4528_v14  ;;  %3411 = vmatmul.mubr.msk.bf16.gmra.mrb[80].mxu0 %vm1287_vm3, %v4528_v14 }
 0x19a   :  { %1611 = vmatprep.mubr.bf16.mxu1 %v5619_v3  ;;  %1997 = vmatprep.mubr.bf16.mxu0 %v5619_v3 }
 0x1a1   :  { %3396 = vmatmul.mubr.msk.bf16.gmra.mrb[52].mxu1 %vm1287_vm3, %v4526_v10  ;;  %3412 = vmatmul.mubr.msk.bf16.gmra.mrb[84].mxu0 %vm1287_vm3, %v4526_v10 }
 0x1a2   :  { %1621 = vmatprep.mubr.bf16.mxu1 %v5619_v3  ;;  %2007 = vmatprep.mubr.bf16.mxu0 %v5619_v3 }
 0x1a9   :  { %3397 = vmatmul.mubr.msk.bf16.gmra.mrb[56].mxu1 %vm1287_vm3, %v4559_v8  ;;  %3413 = vmatmul.mubr.msk.bf16.gmra.mrb[88].mxu0 %vm1287_vm3, %v4559_v8 }
 0x1aa   :  { %1631 = vmatprep.mubr.bf16.mxu1 %v5619_v3  ;;  %2017 = vmatprep.mubr.bf16.mxu0 %v5619_v3 }
 0x1b1   :  { %3398 = vmatmul.mubr.msk.bf16.gmra.mrb[60].mxu1 %vm1287_vm3, %v4554_v61  ;;  %3414 = vmatmul.mubr.msk.bf16.gmra.mrb[92].mxu0 %vm1287_vm3, %v4554_v61 }
 0x1b2   :  { %1641 = vmatprep.mubr.bf16.mxu1 %v5619_v3  ;;  %2027 = vmatprep.mubr.bf16.mxu0 %v5619_v3 }
 0x1b9   :  { %3399 = vmatmul.mubr.msk.bf16.gmra.mrb[64].mxu1 %vm1287_vm3, %v4589_v23  ;;  %3415 = vmatmul.mubr.msk.bf16.gmra.mrb[96].mxu0 %vm1287_vm3, %v4589_v23 }
 0x1ba   :  { %1651 = vmatprep.mubr.bf16.mxu1 %v5619_v3  ;;  %2037 = vmatprep.mubr.bf16.mxu0 %v5619_v3 }
 0x1c1   :  { %3400 = vmatmul.mubr.msk.bf16.gmra.mrb[68].mxu1 %vm1287_vm3, %v4583_v11  ;;  %3416 = vmatmul.mubr.msk.bf16.gmra.mrb[100].mxu0 %vm1287_vm3, %v4583_v11 }
 0x1c2   :  { %1661 = vmatprep.mubr.bf16.mxu1 %v5619_v3  ;;  %2047 = vmatprep.mubr.bf16.mxu0 %v5619_v3 }
 0x1c9   :  { %3401 = vmatmul.mubr.msk.bf16.gmra.mrb[72].mxu1 %vm1287_vm3, %v4612_v15  ;;  %3417 = vmatmul.mubr.msk.bf16.gmra.mrb[104].mxu0 %vm1287_vm3, %v4612_v15 }
 0x1ca   :  { %1671 = vmatprep.mubr.bf16.mxu1 %v5619_v3  ;;  %2057 = vmatprep.mubr.bf16.mxu0 %v5619_v3 }
 0x1d1   :  { %3402 = vmatmul.mubr.msk.bf16.gmra.mrb[76].mxu1 %vm1287_vm3, %v4606_v5  ;;  %3418 = vmatmul.mubr.msk.bf16.gmra.mrb[108].mxu0 %vm1287_vm3, %v4606_v5 }
 0x1d2   :  { %1681 = vmatprep.mubr.bf16.mxu1 %v5619_v3  ;;  %2067 = vmatprep.mubr.bf16.mxu0 %v5619_v3 }
 0x1d9   :  { %3403 = vmatmul.mubr.msk.bf16.gmra.mrb[80].mxu1 %vm1287_vm3, %v4632_v27  ;;  %3419 = vmatmul.mubr.msk.bf16.gmra.mrb[112].mxu0 %vm1287_vm3, %v4632_v27 }
 0x1da   :  { %1691 = vmatprep.mubr.bf16.mxu1 %v5619_v3  ;;  %2077 = vmatprep.mubr.bf16.mxu0 %v5619_v3 }
 0x1e1   :  { %3404 = vmatmul.mubr.msk.bf16.gmra.mrb[84].mxu1 %vm1287_vm3, %v4626_v6  ;;  %3420 = vmatmul.mubr.msk.bf16.gmra.mrb[116].mxu0 %vm1287_vm3, %v4626_v6 }
 0x1e2   :  { %1701 = vmatprep.mubr.bf16.mxu1 %v5619_v3  ;;  %2087 = vmatprep.mubr.bf16.mxu0 %v5619_v3 }
 0x1e9   :  { %3405 = vmatmul.mubr.msk.bf16.gmra.mrb[88].mxu1 %vm1287_vm3, %v4651_v29  ;;  %3421 = vmatmul.mubr.msk.bf16.gmra.mrb[120].mxu0 %vm1287_vm3, %v4651_v29 }
 0x1ea   :  { %1711 = vmatprep.mubr.bf16.mxu1 %v5619_v3  ;;  %2097 = vmatprep.mubr.bf16.mxu0 %v5619_v3 }
 0x1f1   :  { %3406 = vmatmul.mubr.msk.bf16.gmra.mrb[92].mxu1 %vm1287_vm3, %v4646_v28  ;;  %3422 = vmatmul.mubr.msk.bf16.gmra.mrb[124].mxu0 %vm1287_vm3, %v4646_v28 }
 0x1f2   :  { %2140 = vmatprep.mubr.bf16.mxu1 %v4457_v19  ;;  %3624 = vmatprep.mubr.msk.bf16.mxu0 %vm1287_vm3, %v4488_v7  ;;  %v808_v19 = vsub.s32 3, %v4431_v62 }
 0x1f9   :  { %2141 = vmatmul.mubr.bf16.vlgmr.msra.gmra.mrb[96].mxu1 %v4455_v18  ;;  %3625 = vmatmul.mubr.msk.bf16.vlgmr.msra.gmra.mrb[128].mxu0 %vm1287_vm3, %v4486_v1  ;;  %v792_v18 = vld [vmem:[%s5607_s4] sm:$0x1f] }
 0x1fa   :  { %2148 = vmatprep.mubr.bf16.mxu1 %v4474_v46  ;;  %3628 = vmatprep.mubr.msk.bf16.mxu0 %vm1287_vm3, %v4508_v39  ;;  %v4872_v46 = vrot.slane %v792_v18, %v4453_v17  ;;  %v2590_v1 = vld [vmem:[%s5608_s5] sm:$0x1f]  ;;  %v4879_v7 = vrot.slane %v792_v18, %v4440_v2 }
 0x201   :  { %2149 = vmatmul.mubr.bf16.gmra.mrb[100].mxu1 %v4471_v43  ;;  %3629 = vmatmul.mubr.msk.bf16.gmra.mrb[132].mxu0 %vm1287_vm3, %v4506_v36  ;;  %v4869_v43 = vrot.slane %v792_v18, %v4434_v63  ;;  %v4881_v36 = vrot.slane %v792_v18, %v808_v19 }
 0x202   :  { %2156 = vmatprep.mubr.bf16.mxu1 %v4494_v16  ;;  %3632 = vmatprep.mubr.msk.bf16.mxu0 %vm1287_vm3, %v4528_v14 }
 0x209   :  { %2157 = vmatmul.mubr.bf16.gmra.mrb[104].mxu1 %v4491_v13  ;;  %3633 = vmatmul.mubr.msk.bf16.gmra.mrb[136].mxu0 %vm1287_vm3, %v4526_v10 }
 0x20a   :  { %2164 = vmatprep.mubr.bf16.mxu1 %v4514_v50  ;;  %3636 = vmatprep.mubr.msk.bf16.mxu0 %vm1287_vm3, %v4559_v8  ;;  %v4893_v8 = vrot.slane %v2590_v1, %v4453_v17 }
 0x211   :  { %2165 = vmatmul.mubr.bf16.gmra.mrb[108].mxu1 %v4511_v47  ;;  %3637 = vmatmul.mubr.msk.bf16.gmra.mrb[140].mxu0 %vm1287_vm3, %v4554_v61  ;;  %v4885_v47 = vrot.slane %v2590_v1, %v4434_v63 }
 0x212   :  { %2172 = vmatprep.mubr.bf16.mxu1 %v4532_v22  ;;  %3640 = vmatprep.mubr.msk.bf16.mxu0 %vm1287_vm3, %v4589_v23  ;;  %v4890_v22 = vrot.slane %v2590_v1, %v4440_v2 }
 0x219   :  { %2173 = vmatmul.mubr.bf16.gmra.mrb[112].mxu1 %v4530_v21  ;;  %3641 = vmatmul.mubr.msk.bf16.gmra.mrb[144].mxu0 %vm1287_vm3, %v4583_v11 }
 0x21a   :  { %2180 = vmatprep.mubr.bf16.mxu1 %v4548_v53  ;;  %3644 = vmatprep.mubr.msk.bf16.mxu0 %vm1287_vm3, %v4612_v15  ;;  %v5620_v15 = vld [vmem:[#allocation7_spill] sm:$0xff] }
 0x221   :  { %2181 = vmatmul.mubr.bf16.gmra.mrb[116].mxu1 %v4545_v49  ;;  %3645 = vmatmul.mubr.msk.bf16.gmra.mrb[148].mxu0 %vm1287_vm3, %v4606_v5 }
 0x222   :  { %2188 = vmatprep.mubr.bf16.mxu1 %v4564_v25  ;;  %3648 = vmatprep.mubr.msk.bf16.mxu0 %vm1287_vm3, %v4632_v27 }
 0x229   :  { %2189 = vmatmul.mubr.bf16.gmra.mrb[120].mxu1 %v4562_v24  ;;  %3649 = vmatmul.mubr.msk.bf16.gmra.mrb[152].mxu0 %vm1287_vm3, %v4626_v6 }
 0x22a   :  { %2196 = vmatprep.mubr.bf16.mxu1 %v4580_v59  ;;  %3652 = vmatprep.mubr.msk.bf16.mxu0 %vm1287_vm3, %v4651_v29 }
 0x231   :  { %2197 = vmatmul.mubr.bf16.gmra.mrb[124].mxu1 %v4578_v57  ;;  %3653 = vmatmul.mubr.msk.bf16.gmra.mrb[156].mxu0 %vm1287_vm3, %v4646_v28 }
 0x232   :  { %2204 = vmatprep.mubr.bf16.mxu1 %v4603_v54 }
 0x239   :  { %2205 = vmatmul.mubr.bf16.gmra.mrb[128].mxu1 %v4601_v51 }
 0x23a   :  { %2212 = vmatprep.mubr.bf16.mxu1 %v4623_v55 }
 0x241   :  { %2213 = vmatmul.mubr.bf16.gmra.mrb[132].mxu1 %v4621_v48  ;;  %v4903_v48 = vrot.slane %v2590_v1, %v808_v19 }
 0x242   :  { %2220 = vmatprep.mubr.bf16.mxu1 %v4643_v26 }
 0x249   :  { %2221 = vmatmul.mubr.bf16.gmra.mrb[136].mxu1 %v4641_v60 }
 0x24a   :  { %2228 = vmatprep.mubr.bf16.mxu1 %v4659_v44 }
 0x24c   :  { %v1563_v13 = vpop.f32.mrb[32].mxu1  ;;  %v1949_v16 = vpop.f32.mrb[64].mxu0 }
 0x24d   :  { %v3656_v39 = vadd.f32 %v1563_v13, %v4869_v43  ;;  %v3720_v50 = vadd.f32 %v1949_v16, %v4872_v46  ;;  %v1565_v10 = vpop.f32.mrb[33].mxu1  ;;  %v1951_v14 = vpop.f32.mrb[65].mxu0 }
 0x24e   :  { %v3657_v21 = vadd.f32 %v1565_v10, %v4879_v7  ;;  %v1567_v49 = vpop.f32.mrb[34].mxu1  ;;  %v1953_v53 = vpop.f32.mrb[66].mxu0  ;;  %v3721_v11 = vadd.f32 %v1951_v14, %v4881_v36  ;;  %v5621_v10 = vld [vmem:[#allocation6_spill] sm:$0xff] }
 0x24f   :  { %v2430_v61 = vmax.f32 %v3656_v39, 0.0  ;;  %v3658_v24 = vadd.f32 %v1567_v49, %v4869_v43  ;;  %v1569_v25 = vpop.f32.mrb[35].mxu1  ;;  %v1955_v63 = vpop.f32.mrb[67].mxu0  ;;  %v2432_v57 = vmax.f32 %v3720_v50, 0.0  ;;  %v3722_v17 = vadd.f32 %v1953_v53, %v4872_v46  ;;  %v5622_v53 = vld [vmem:[#allocation8_spill] sm:$0xff] }
 0x250   :  { %v2431_v59 = vmax.f32 %v3657_v21, 0.0  ;;  %v3659_v23 = vadd.f32 %v1569_v25, %v4879_v7  ;;  %v3723_v6 = vadd.f32 %v1955_v63, %v4881_v36  ;;  %v2433_v26 = vmax.f32 %v3721_v11, 0.0 }
 0x251   :  { %v2617_v51 = vmul.f32 %v4885_v47, %v2430_v61  ;;  %v2435_v2 = vmax.f32 %v3658_v24, 0.0  ;;  %2229 = vmatmul.mubr.bf16.gmra.mrb[140].mxu1 %v4657_v42  ;;  %v2619_v27 = vmul.f32 %v4893_v8, %v2432_v57  ;;  %v2437_v32 = vmax.f32 %v3722_v17, 0.0 }
 0x252   :  { %v2618_v54 = vmul.f32 %v4890_v22, %v2431_v59  ;;  %v2436_v5 = vmax.f32 %v3659_v23, 0.0  ;;  %2236 = vmatprep.mubr.bf16.mxu1 %v5620_v15  ;;  %v2438_v52 = vmax.f32 %v3723_v6, 0.0  ;;  %v2620_v34 = vmul.f32 %v4903_v48, %v2433_v26 }
 0x253   :  { %v2622_v55 = vmul.f32 %v4885_v47, %v2435_v2  ;;  %v2624_v14 = vmul.f32 %v4893_v8, %v2437_v32 }
 0x254   :  { %v2777_v60 = vadd.f32 %v2618_v54, %v2617_v51  ;;  %v2623_v28 = vmul.f32 %v4890_v22, %v2436_v5  ;;  %v1573_v29 = vpop.f32.mrb[36].mxu1  ;;  %v1959_v42 = vpop.f32.mrb[68].mxu0  ;;  %v2625_v61 = vmul.f32 %v4903_v48, %v2438_v52 }
 0x255   :  { %v3660_v44 = vadd.f32 %v1573_v29, %v4869_v43  ;;  %v1575_v3 = vpop.f32.mrb[37].mxu1  ;;  %v1961_v31 = vpop.f32.mrb[69].mxu0  ;;  %v3724_v45 = vadd.f32 %v1959_v42, %v4872_v46 }
 0x256   :  { %v2785_v41 = vadd.f32 %v2623_v28, %v2622_v55  ;;  %v3661_v37 = vadd.f32 %v1575_v3, %v4879_v7  ;;  %v1577_v38 = vpop.f32.mrb[38].mxu1  ;;  %v1963_v40 = vpop.f32.mrb[70].mxu0  ;;  %v2778_v33 = vadd.f32 %v2777_v60, %v2619_v27  ;;  %v3725_v19 = vadd.f32 %v1961_v31, %v4881_v36 }
 0x257   :  { %v2440_v0 = vmax.f32 %v3660_v44, 0.0  ;;  %v3662_v12 = vadd.f32 %v1577_v38, %v4869_v43  ;;  %v1579_v56 = vpop.f32.mrb[39].mxu1  ;;  %v1965_v4 = vpop.f32.mrb[71].mxu0  ;;  %v3726_v39 = vadd.f32 %v1963_v40, %v4872_v46  ;;  %v2442_v24 = vmax.f32 %v3724_v45, 0.0 }
 0x258   :  { %v2441_v18 = vmax.f32 %v3661_v37, 0.0  ;;  %v3663_v1 = vadd.f32 %v1579_v56, %v4879_v7  ;;  %v3727_v50 = vadd.f32 %v1965_v4, %v4881_v36  ;;  %v4925_v63 = vadd.f32 %v2778_v33, %v2620_v34 }
 0x259   :  { %v2627_v13 = vmul.f32 %v4885_v47, %v2440_v0  ;;  %v2445_v16 = vmax.f32 %v3662_v12, 0.0  ;;  %2237 = vmatmul.mubr.bf16.gmra.mrb[144].mxu1 %v5621_v10  ;;  %v2443_v59 = vmax.f32 %v3725_v19, 0.0  ;;  %v2786_v2 = vadd.f32 %v2785_v41, %v2624_v14 }
 0x25a   :  { %v2628_v21 = vmul.f32 %v4890_v22, %v2441_v18  ;;  %v2446_v49 = vmax.f32 %v3663_v1, 0.0  ;;  %2244 = vmatprep.mubr.bf16.mxu1 %v5622_v53  ;;  %v2447_v54 = vmax.f32 %v3726_v39, 0.0  ;;  %v2448_v17 = vmax.f32 %v3727_v50, 0.0 }
 0x25b   :  { %v2632_v25 = vmul.f32 %v4885_v47, %v2445_v16  ;;  %v4932_v42 = vadd.f32 %v2786_v2, %v2625_v61  ;;  %v2629_v44 = vmul.f32 %v4893_v8, %v2442_v24  ;;  %v2630_v0 = vmul.f32 %v4903_v48, %v2443_v59 }
 0x25c   :  { %v2792_v57 = vadd.f32 %v2628_v21, %v2627_v13  ;;  %v2633_v11 = vmul.f32 %v4890_v22, %v2446_v49  ;;  %v1583_v23 = vpop.f32.mrb[40].mxu1  ;;  %v1969_v51 = vpop.f32.mrb[72].mxu0  ;;  %v2634_v45 = vmul.f32 %v4893_v8, %v2447_v54  ;;  %v2635_v4 = vmul.f32 %v4903_v48, %v2448_v17 }
 0x25d   :  { %v3664_v5 = vadd.f32 %v1583_v23, %v4869_v43  ;;  %v3728_v15 = vadd.f32 %v1969_v51, %v4872_v46  ;;  %v1585_v55 = vpop.f32.mrb[41].mxu1  ;;  %v1971_v6 = vpop.f32.mrb[73].mxu0 }
 0x25e   :  { %v2799_v27 = vadd.f32 %v2633_v11, %v2632_v25  ;;  %v3665_v60 = vadd.f32 %v1585_v55, %v4879_v7  ;;  %v3729_v26 = vadd.f32 %v1971_v6, %v4881_v36  ;;  %v1587_v28 = vpop.f32.mrb[42].mxu1  ;;  %v1973_v29 = vpop.f32.mrb[74].mxu0  ;;  %v2793_v16 = vadd.f32 %v2792_v57, %v2629_v44 }
 0x25f   :  { %v2450_v3 = vmax.f32 %v3664_v5, 0.0  ;;  %v2452_v31 = vmax.f32 %v3728_v15, 0.0  ;;  %v3666_v32 = vadd.f32 %v1587_v28, %v4869_v43  ;;  %v1589_v41 = vpop.f32.mrb[43].mxu1  ;;  %v1975_v37 = vpop.f32.mrb[75].mxu0  ;;  %v3730_v40 = vadd.f32 %v1973_v29, %v4872_v46 }
 0x260   :  { %v2451_v38 = vmax.f32 %v3665_v60, 0.0  ;;  %v3667_v33 = vadd.f32 %v1589_v41, %v4879_v7  ;;  %v3731_v52 = vadd.f32 %v1975_v37, %v4881_v36  ;;  %v2453_v18 = vmax.f32 %v3729_v26, 0.0 }
 0x261   :  { %v2637_v12 = vmul.f32 %v4885_v47, %v2450_v3  ;;  %v2455_v56 = vmax.f32 %v3666_v32, 0.0  ;;  %2245 = vmatmul.mubr.bf16.gmra.mrb[148].mxu1 %v4681_v35  ;;  %v2639_v1 = vmul.f32 %v4893_v8, %v2452_v31  ;;  %v2800_v39 = vadd.f32 %v2799_v27, %v2634_v45 }
 0x262   :  { %v2638_v34 = vmul.f32 %v4890_v22, %v2451_v38  ;;  %v2456_v19 = vmax.f32 %v3667_v33, 0.0  ;;  %2252 = vmatprep.mubr.bf16.mxu1 %v4695_v20  ;;  %v2457_v10 = vmax.f32 %v3730_v40, 0.0  ;;  %v2458_v21 = vmax.f32 %v3731_v52, 0.0 }
 0x263   :  { %v2642_v13 = vmul.f32 %v4885_v47, %v2455_v56  ;;  %v4951_v20 = vadd.f32 %v2793_v16, %v2630_v0  ;;  %v4953_v59 = vadd.f32 %v2800_v39, %v2635_v4  ;;  %v2640_v6 = vmul.f32 %v4903_v48, %v2453_v18 }
 0x264   :  { %v2806_v50 = vadd.f32 %v2638_v34, %v2637_v12  ;;  %v2643_v14 = vmul.f32 %v4890_v22, %v2456_v19  ;;  %v1593_v35 = vpop.f32.mrb[44].mxu1  ;;  %v1979_v49 = vpop.f32.mrb[76].mxu0  ;;  %v2644_v28 = vmul.f32 %v4893_v8, %v2457_v10  ;;  %v2645_v31 = vmul.f32 %v4903_v48, %v2458_v21 }
 0x265   :  { %v3668_v53 = vadd.f32 %v1593_v35, %v4869_v43  ;;  %v3732_v61 = vadd.f32 %v1979_v49, %v4872_v46  ;;  %v1595_v24 = vpop.f32.mrb[45].mxu1  ;;  %v1981_v25 = vpop.f32.mrb[77].mxu0 }
 0x266   :  { %v2813_v11 = vadd.f32 %v2643_v14, %v2642_v13  ;;  %v3669_v57 = vadd.f32 %v1595_v24, %v4879_v7  ;;  %v3733_v23 = vadd.f32 %v1981_v25, %v4881_v36  ;;  %v1597_v51 = vpop.f32.mrb[46].mxu1  ;;  %v1983_v2 = vpop.f32.mrb[78].mxu0  ;;  %v2807_v54 = vadd.f32 %v2806_v50, %v2639_v1 }
 0x267   :  { %v2460_v17 = vmax.f32 %v3668_v53, 0.0  ;;  %v3670_v5 = vadd.f32 %v1597_v51, %v4869_v43  ;;  %v1599_v15 = vpop.f32.mrb[47].mxu1  ;;  %v1985_v55 = vpop.f32.mrb[79].mxu0  ;;  %v2462_v27 = vmax.f32 %v3732_v61, 0.0  ;;  %v3734_v3 = vadd.f32 %v1983_v2, %v4872_v46 }
 0x268   :  { %v2461_v60 = vmax.f32 %v3669_v57, 0.0  ;;  %v3671_v26 = vadd.f32 %v1599_v15, %v4879_v7  ;;  %v2463_v41 = vmax.f32 %v3733_v23, 0.0  ;;  %v3735_v40 = vadd.f32 %v1985_v55, %v4881_v36 }
 0x269   :  { %v2647_v29 = vmul.f32 %v4885_v47, %v2460_v17  ;;  %v2465_v44 = vmax.f32 %v3670_v5, 0.0  ;;  %2253 = vmatmul.mubr.bf16.gmra.mrb[152].mxu1 %v4693_v58  ;;  %v4969_v33 = vadd.f32 %v2807_v54, %v2640_v6  ;;  %v2814_v52 = vadd.f32 %v2813_v11, %v2644_v28 }
 0x26a   :  { %v2648_v32 = vmul.f32 %v4890_v22, %v2461_v60  ;;  %v2466_v37 = vmax.f32 %v3671_v26, 0.0  ;;  %2260 = vmatprep.mubr.bf16.mxu1 %v4707_v9  ;;  %v2649_v0 = vmul.f32 %v4893_v8, %v2462_v27  ;;  %v2467_v4 = vmax.f32 %v3734_v3, 0.0 }
 0x26b   :  { %v2652_v38 = vmul.f32 %v4885_v47, %v2465_v44  ;;  %v4975_v1 = vadd.f32 %v2814_v52, %v2645_v31  ;;  %v2650_v14 = vmul.f32 %v4903_v48, %v2463_v41  ;;  %v2468_v21 = vmax.f32 %v3735_v40, 0.0 }
 0x26c   :  { %v2820_v45 = vadd.f32 %v2648_v32, %v2647_v29  ;;  %v2653_v58 = vmul.f32 %v4890_v22, %v2466_v37  ;;  %v1603_v12 = vpop.f32.mrb[48].mxu1  ;;  %v1989_v56 = vpop.f32.mrb[80].mxu0  ;;  %v2654_v23 = vmul.f32 %v4893_v8, %v2467_v4 }
 0x26d   :  { %v3672_v34 = vadd.f32 %v1603_v12, %v4869_v43  ;;  %v3736_v18 = vadd.f32 %v1989_v56, %v4872_v46  ;;  %v1605_v9 = vpop.f32.mrb[49].mxu1  ;;  %v1991_v19 = vpop.f32.mrb[81].mxu0  ;;  %v2655_v55 = vmul.f32 %v4903_v48, %v2468_v21 }
 0x26e   :  { %v2827_v13 = vadd.f32 %v2653_v58, %v2652_v38  ;;  %v3673_v16 = vadd.f32 %v1605_v9, %v4879_v7  ;;  %v1607_v39 = vpop.f32.mrb[50].mxu1  ;;  %v1993_v50 = vpop.f32.mrb[82].mxu0  ;;  %v2821_v10 = vadd.f32 %v2820_v45, %v2649_v0  ;;  %v3737_v11 = vadd.f32 %v1991_v19, %v4881_v36 }
 0x26f   :  { %v2470_v35 = vmax.f32 %v3672_v34, 0.0  ;;  %v3674_v49 = vadd.f32 %v1607_v39, %v4869_v43  ;;  %v1609_v53 = vpop.f32.mrb[51].mxu1  ;;  %v1995_v61 = vpop.f32.mrb[83].mxu0  ;;  %v2472_v24 = vmax.f32 %v3736_v18, 0.0  ;;  %v3738_v54 = vadd.f32 %v1993_v50, %v4872_v46 }
 0x270   :  { %v2471_v25 = vmax.f32 %v3673_v16, 0.0  ;;  %v3675_v57 = vadd.f32 %v1609_v53, %v4879_v7  ;;  %v3739_v15 = vadd.f32 %v1995_v61, %v4881_v36  ;;  %v4990_v27 = vadd.f32 %v2821_v10, %v2650_v14 }
 0x271   :  { %v2657_v51 = vmul.f32 %v4885_v47, %v2470_v35  ;;  %v2475_v2 = vmax.f32 %v3674_v49, 0.0  ;;  %2261 = vmatmul.mubr.bf16.gmra.mrb[156].mxu1 %v4705_v30  ;;  %v2828_v60 = vadd.f32 %v2827_v13, %v2654_v23  ;;  %v2659_v26 = vmul.f32 %v4893_v8, %v2472_v24 }
 0x272   :  { %v2658_v17 = vmul.f32 %v4890_v22, %v2471_v25  ;;  %v2476_v5 = vmax.f32 %v3675_v57, 0.0  ;;  %v2473_v29 = vmax.f32 %v3737_v11, 0.0  ;;  %v2477_v31 = vmax.f32 %v3738_v54, 0.0 }
 0x273   :  { %v2662_v6 = vmul.f32 %v4885_v47, %v2475_v2  ;;  %v4996_v40 = vadd.f32 %v2828_v60, %v2655_v55  ;;  %v2478_v0 = vmax.f32 %v3739_v15, 0.0 }
 0x274   :  { %v2834_v28 = vadd.f32 %v2658_v17, %v2657_v51  ;;  %v2663_v44 = vmul.f32 %v4890_v22, %v2476_v5  ;;  %v1613_v3 = vpop.f32.mrb[52].mxu1  ;;  %v1999_v30 = vpop.f32.mrb[84].mxu0  ;;  %v2660_v13 = vmul.f32 %v4903_v48, %v2473_v29  ;;  %v2664_v10 = vmul.f32 %v4893_v8, %v2477_v31 }
 0x275   :  { %v3676_v32 = vadd.f32 %v1613_v3, %v4869_v43  ;;  %v3740_v41 = vadd.f32 %v1999_v30, %v4872_v46  ;;  %v1615_v37 = vpop.f32.mrb[53].mxu1  ;;  %v2001_v38 = vpop.f32.mrb[85].mxu0  ;;  %v2665_v49 = vmul.f32 %v4903_v48, %v2478_v0 }
 0x276   :  { %v2841_v52 = vadd.f32 %v2663_v44, %v2662_v6  ;;  %v3677_v45 = vadd.f32 %v1615_v37, %v4879_v7  ;;  %v1617_v58 = vpop.f32.mrb[54].mxu1  ;;  %v2003_v12 = vpop.f32.mrb[86].mxu0  ;;  %v2835_v56 = vadd.f32 %v2834_v28, %v2659_v26  ;;  %v3741_v34 = vadd.f32 %v2001_v38, %v4881_v36 }
 0x277   :  { %v2480_v4 = vmax.f32 %v3676_v32, 0.0  ;;  %v3678_v18 = vadd.f32 %v1617_v58, %v4869_v43  ;;  %v1619_v9 = vpop.f32.mrb[55].mxu1  ;;  %v2005_v19 = vpop.f32.mrb[87].mxu0  ;;  %v2482_v16 = vmax.f32 %v3740_v41, 0.0  ;;  %v3742_v35 = vadd.f32 %v2003_v12, %v4872_v46 }
 0x278   :  { %v2481_v39 = vmax.f32 %v3677_v45, 0.0  ;;  %v3679_v50 = vadd.f32 %v1619_v9, %v4879_v7  ;;  %v3743_v24 = vadd.f32 %v2005_v19, %v4881_v36  ;;  %v2483_v25 = vmax.f32 %v3741_v34, 0.0 }
 0x279   :  { %v2667_v14 = vmul.f32 %v4885_v47, %v2480_v4  ;;  %v2485_v21 = vmax.f32 %v3678_v18, 0.0  ;;  %v5010_v57 = vadd.f32 %v2835_v56, %v2660_v13  ;;  %v2842_v23 = vadd.f32 %v2841_v52, %v2664_v10 }
 0x27a   :  { %v2668_v53 = vmul.f32 %v4890_v22, %v2481_v39  ;;  %v2486_v61 = vmax.f32 %v3679_v50, 0.0  ;;  %v2669_v51 = vmul.f32 %v4893_v8, %v2482_v16  ;;  %v2487_v15 = vmax.f32 %v3742_v35, 0.0 }
 0x27b   :  { %v2672_v11 = vmul.f32 %v4885_v47, %v2485_v21  ;;  %v5016_v28 = vadd.f32 %v2842_v23, %v2665_v49  ;;  %v2488_v44 = vmax.f32 %v3743_v24, 0.0  ;;  %v2670_v41 = vmul.f32 %v4903_v48, %v2483_v25 }
 0x27c   :  { %v2848_v2 = vadd.f32 %v2668_v53, %v2667_v14  ;;  %v2673_v54 = vmul.f32 %v4890_v22, %v2486_v61  ;;  %v1623_v17 = vpop.f32.mrb[56].mxu1  ;;  %v2009_v5 = vpop.f32.mrb[88].mxu0  ;;  %v2674_v34 = vmul.f32 %v4893_v8, %v2487_v15 }
 0x27d   :  { %v3680_v55 = vadd.f32 %v1623_v17, %v4869_v43  ;;  %v3744_v6 = vadd.f32 %v2009_v5, %v4872_v46  ;;  %v1625_v60 = vpop.f32.mrb[57].mxu1  ;;  %v2011_v26 = vpop.f32.mrb[89].mxu0  ;;  %v2675_v13 = vmul.f32 %v4903_v48, %v2488_v44 }
 0x27e   :  { %v2855_v29 = vadd.f32 %v2673_v54, %v2672_v11  ;;  %v3681_v3 = vadd.f32 %v1625_v60, %v4879_v7  ;;  %v1627_v30 = vpop.f32.mrb[58].mxu1  ;;  %v2013_v31 = vpop.f32.mrb[90].mxu0  ;;  %v2849_v32 = vadd.f32 %v2848_v2, %v2669_v51  ;;  %v3745_v38 = vadd.f32 %v2011_v26, %v4881_v36 }
 0x27f   :  { %v2490_v37 = vmax.f32 %v3680_v55, 0.0  ;;  %v3682_v52 = vadd.f32 %v1627_v30, %v4869_v43  ;;  %v1629_v0 = vpop.f32.mrb[59].mxu1  ;;  %v2015_v45 = vpop.f32.mrb[91].mxu0  ;;  %v2492_v58 = vmax.f32 %v3744_v6, 0.0  ;;  %v3746_v56 = vadd.f32 %v2013_v31, %v4872_v46 }
 0x280   :  { %v2491_v12 = vmax.f32 %v3681_v3, 0.0  ;;  %v3683_v4 = vadd.f32 %v1629_v0, %v4879_v7  ;;  %v3747_v19 = vadd.f32 %v2015_v45, %v4881_v36  ;;  %v2493_v50 = vmax.f32 %v3745_v38, 0.0 }
 0x281   :  { %v2677_v18 = vmul.f32 %v4885_v47, %v2490_v37  ;;  %v2495_v9 = vmax.f32 %v3682_v52, 0.0  ;;  %v5030_v14 = vadd.f32 %v2849_v32, %v2670_v41  ;;  %v2856_v21 = vadd.f32 %v2855_v29, %v2674_v34 }
 0x282   :  { %v2678_v16 = vmul.f32 %v4890_v22, %v2491_v12  ;;  %v2496_v39 = vmax.f32 %v3683_v4, 0.0  ;;  %v2679_v35 = vmul.f32 %v4893_v8, %v2492_v58  ;;  %v2497_v53 = vmax.f32 %v3746_v56, 0.0 }
 0x283   :  { %v2682_v10 = vmul.f32 %v4885_v47, %v2495_v9  ;;  %v2498_v11 = vmax.f32 %v3747_v19, 0.0  ;;  %v5036_v17 = vadd.f32 %v2856_v21, %v2675_v13  ;;  %v2680_v31 = vmul.f32 %v4903_v48, %v2493_v50 }
 0x284   :  { %v2862_v49 = vadd.f32 %v2678_v16, %v2677_v18  ;;  %v2683_v61 = vmul.f32 %v4890_v22, %v2496_v39  ;;  %v1633_v24 = vpop.f32.mrb[60].mxu1  ;;  %v2019_v25 = vpop.f32.mrb[92].mxu0  ;;  %v2684_v38 = vmul.f32 %v4893_v8, %v2497_v53 }
 0x285   :  { %v3684_v23 = vadd.f32 %v1633_v24, %v4869_v43  ;;  %v3748_v51 = vadd.f32 %v2019_v25, %v4872_v46  ;;  %v1635_v2 = vpop.f32.mrb[61].mxu1  ;;  %v2021_v54 = vpop.f32.mrb[93].mxu0  ;;  %v2685_v58 = vmul.f32 %v4903_v48, %v2498_v11 }
 0x286   :  { %v2869_v5 = vadd.f32 %v2683_v61, %v2682_v10  ;;  %v3685_v15 = vadd.f32 %v1635_v2, %v4879_v7  ;;  %v3749_v55 = vadd.f32 %v2021_v54, %v4881_v36  ;;  %v1637_v6 = vpop.f32.mrb[62].mxu1  ;;  %v2023_v60 = vpop.f32.mrb[94].mxu0  ;;  %v2863_v26 = vadd.f32 %v2862_v49, %v2679_v35 }
 0x287   :  { %v2500_v29 = vmax.f32 %v3684_v23, 0.0  ;;  %v3686_v44 = vadd.f32 %v1637_v6, %v4869_v43  ;;  %v1639_v3 = vpop.f32.mrb[63].mxu1  ;;  %v2025_v30 = vpop.f32.mrb[95].mxu0  ;;  %v2502_v32 = vmax.f32 %v3748_v51, 0.0  ;;  %v3750_v45 = vadd.f32 %v2023_v60, %v4872_v46 }
 0x288   :  { %v2501_v41 = vmax.f32 %v3685_v15, 0.0  ;;  %v3687_v37 = vadd.f32 %v1639_v3, %v4879_v7  ;;  %v2503_v56 = vmax.f32 %v3749_v55, 0.0  ;;  %v3751_v18 = vadd.f32 %v2025_v30, %v4881_v36 }
 0x289   :  { %v2687_v52 = vmul.f32 %v4885_v47, %v2500_v29  ;;  %v2505_v0 = vmax.f32 %v3686_v44, 0.0  ;;  %v5050_v9 = vadd.f32 %v2863_v26, %v2680_v31  ;;  %v2870_v19 = vadd.f32 %v2869_v5, %v2684_v38 }
 0x28a   :  { %v2688_v12 = vmul.f32 %v4890_v22, %v2501_v41  ;;  %v2506_v4 = vmax.f32 %v3687_v37, 0.0  ;;  %v2689_v13 = vmul.f32 %v4893_v8, %v2502_v32  ;;  %v2507_v21 = vmax.f32 %v3750_v45, 0.0 }
 0x28b   :  { %v2692_v34 = vmul.f32 %v4885_v47, %v2505_v0  ;;  %v5056_v24 = vadd.f32 %v2870_v19, %v2685_v58  ;;  %v2690_v54 = vmul.f32 %v4903_v48, %v2503_v56  ;;  %v2508_v5 = vmax.f32 %v3751_v18, 0.0 }
 0x28c   :  { %v2876_v16 = vadd.f32 %v2688_v12, %v2687_v52  ;;  %v2693_v39 = vmul.f32 %v4890_v22, %v2506_v4  ;;  %v1643_v50 = vpop.f32.mrb[64].mxu1  ;;  %v2029_v10 = vpop.f32.mrb[96].mxu0  ;;  %v2694_v30 = vmul.f32 %v4893_v8, %v2507_v21 }
 0x28d   :  { %v3688_v35 = vadd.f32 %v1643_v50, %v4869_v43  ;;  %v3752_v49 = vadd.f32 %v2029_v10, %v4872_v46  ;;  %v1645_v53 = vpop.f32.mrb[65].mxu1  ;;  %v2031_v61 = vpop.f32.mrb[97].mxu0  ;;  %v2695_v0 = vmul.f32 %v4903_v48, %v2508_v5 }
 0x28e   :  { %v2883_v25 = vadd.f32 %v2693_v39, %v2692_v34  ;;  %v3689_v11 = vadd.f32 %v1645_v53, %v4879_v7  ;;  %v1647_v23 = vpop.f32.mrb[66].mxu1  ;;  %v2033_v51 = vpop.f32.mrb[98].mxu0  ;;  %v2877_v2 = vadd.f32 %v2876_v16, %v2689_v13  ;;  %v3753_v44 = vadd.f32 %v2031_v61, %v4881_v36 }
 0x28f   :  { %v2510_v15 = vmax.f32 %v3688_v35, 0.0  ;;  %v3690_v55 = vadd.f32 %v1647_v23, %v4869_v43  ;;  %v1649_v6 = vpop.f32.mrb[67].mxu1  ;;  %v2035_v60 = vpop.f32.mrb[99].mxu0  ;;  %v2512_v26 = vmax.f32 %v3752_v49, 0.0  ;;  %v3754_v41 = vadd.f32 %v2033_v51, %v4872_v46 }
 0x290   :  { %v2511_v29 = vmax.f32 %v3689_v11, 0.0  ;;  %v3691_v3 = vadd.f32 %v1649_v6, %v4879_v7  ;;  %v3755_v52 = vadd.f32 %v2035_v60, %v4881_v36  ;;  %v5070_v58 = vadd.f32 %v2877_v2, %v2690_v54 }
 0x291   :  { %v2697_v31 = vmul.f32 %v4885_v47, %v2510_v15  ;;  %v2515_v32 = vmax.f32 %v3690_v55, 0.0  ;;  %v2884_v12 = vadd.f32 %v2883_v25, %v2694_v30  ;;  %v2699_v56 = vmul.f32 %v4893_v8, %v2512_v26 }
 0x292   :  { %v2698_v37 = vmul.f32 %v4890_v22, %v2511_v29  ;;  %v2516_v38 = vmax.f32 %v3691_v3, 0.0  ;;  %v2513_v34 = vmax.f32 %v3753_v44, 0.0  ;;  %v2517_v16 = vmax.f32 %v3754_v41, 0.0 }
 0x293   :  { %v2702_v45 = vmul.f32 %v4885_v47, %v2515_v32  ;;  %v5076_v35 = vadd.f32 %v2884_v12, %v2695_v0  ;;  %v2518_v53 = vmax.f32 %v3755_v52, 0.0 }
 0x294   :  { %v2890_v4 = vadd.f32 %v2698_v37, %v2697_v31  ;;  %v2703_v18 = vmul.f32 %v4890_v22, %v2516_v38  ;;  %v1653_v19 = vpop.f32.mrb[68].mxu1  ;;  %v2039_v13 = vpop.f32.mrb[100].mxu0  ;;  %v2700_v55 = vmul.f32 %v4903_v48, %v2513_v34  ;;  %v2704_v29 = vmul.f32 %v4893_v8, %v2517_v16 }
 0x295   :  { %v3692_v39 = vadd.f32 %v1653_v19, %v4869_v43  ;;  %v3756_v50 = vadd.f32 %v2039_v13, %v4872_v46  ;;  %v1655_v10 = vpop.f32.mrb[69].mxu1  ;;  %v2041_v21 = vpop.f32.mrb[101].mxu0  ;;  %v2705_v31 = vmul.f32 %v4903_v48, %v2518_v53 }
 0x296   :  { %v2897_v49 = vadd.f32 %v2703_v18, %v2702_v45  ;;  %v3693_v61 = vadd.f32 %v1655_v10, %v4879_v7  ;;  %v1657_v25 = vpop.f32.mrb[70].mxu1  ;;  %v2043_v11 = vpop.f32.mrb[102].mxu0  ;;  %v2891_v23 = vadd.f32 %v2890_v4, %v2699_v56  ;;  %v3757_v2 = vadd.f32 %v2041_v21, %v4881_v36 }
 0x297   :  { %v2520_v51 = vmax.f32 %v3692_v39, 0.0  ;;  %v3694_v54 = vadd.f32 %v1657_v25, %v4869_v43  ;;  %v1659_v5 = vpop.f32.mrb[71].mxu1  ;;  %v2045_v15 = vpop.f32.mrb[103].mxu0  ;;  %v2522_v6 = vmax.f32 %v3756_v50, 0.0  ;;  %v3758_v30 = vadd.f32 %v2043_v11, %v4872_v46 }
 0x298   :  { %v2521_v60 = vmax.f32 %v3693_v61, 0.0  ;;  %v3695_v26 = vadd.f32 %v1659_v5, %v4879_v7  ;;  %v3759_v37 = vadd.f32 %v2045_v15, %v4881_v36  ;;  %v2523_v38 = vmax.f32 %v3757_v2, 0.0 }
 0x299   :  { %v2707_v44 = vmul.f32 %v4885_v47, %v2520_v51  ;;  %v2525_v3 = vmax.f32 %v3694_v54, 0.0  ;;  %v5090_v0 = vadd.f32 %v2891_v23, %v2700_v55  ;;  %v2898_v45 = vadd.f32 %v2897_v49, %v2704_v29 }
 0x29a   :  { %v2708_v32 = vmul.f32 %v4890_v22, %v2521_v60  ;;  %v2526_v41 = vmax.f32 %v3695_v26, 0.0  ;;  %v2709_v12 = vmul.f32 %v4893_v8, %v2522_v6  ;;  %v2527_v19 = vmax.f32 %v3758_v30, 0.0 }
 0x29b   :  { %v2712_v52 = vmul.f32 %v4885_v47, %v2525_v3  ;;  %v5096_v10 = vadd.f32 %v2898_v45, %v2705_v31  ;;  %v2528_v53 = vmax.f32 %v3759_v37, 0.0  ;;  %v2710_v23 = vmul.f32 %v4903_v48, %v2523_v38 }
 0x29c   :  { %v2904_v56 = vadd.f32 %v2708_v32, %v2707_v44  ;;  %v2713_v4 = vmul.f32 %v4890_v22, %v2526_v41  ;;  %v1663_v34 = vpop.f32.mrb[72].mxu1  ;;  %v2049_v18 = vpop.f32.mrb[104].mxu0  ;;  %v2714_v29 = vmul.f32 %v4893_v8, %v2527_v19 }
 0x29d   :  { %v3696_v13 = vadd.f32 %v1663_v34, %v4869_v43  ;;  %v3760_v16 = vadd.f32 %v2049_v18, %v4872_v46  ;;  %v1665_v39 = vpop.f32.mrb[73].mxu1  ;;  %v2051_v50 = vpop.f32.mrb[105].mxu0  ;;  %v2715_v31 = vmul.f32 %v4903_v48, %v2528_v53 }
 0x29e   :  { %v2911_v21 = vadd.f32 %v2713_v4, %v2712_v52  ;;  %v3697_v49 = vadd.f32 %v1665_v39, %v4879_v7  ;;  %v1667_v61 = vpop.f32.mrb[74].mxu1  ;;  %v2053_v25 = vpop.f32.mrb[106].mxu0  ;;  %v2905_v11 = vadd.f32 %v2904_v56, %v2709_v12  ;;  %v3761_v2 = vadd.f32 %v2051_v50, %v4881_v36 }
 0x29f   :  { %v2530_v51 = vmax.f32 %v3696_v13, 0.0  ;;  %v3698_v54 = vadd.f32 %v1667_v61, %v4869_v43  ;;  %v1669_v5 = vpop.f32.mrb[75].mxu1  ;;  %v2055_v15 = vpop.f32.mrb[107].mxu0  ;;  %v2532_v55 = vmax.f32 %v3760_v16, 0.0  ;;  %v3762_v60 = vadd.f32 %v2053_v25, %v4872_v46 }
 0x2a0   :  { %v2531_v6 = vmax.f32 %v3697_v49, 0.0  ;;  %v3699_v26 = vadd.f32 %v1669_v5, %v4879_v7  ;;  %v3763_v30 = vadd.f32 %v2055_v15, %v4881_v36  ;;  %v2533_v37 = vmax.f32 %v3761_v2, 0.0 }
 0x2a1   :  { %v2717_v44 = vmul.f32 %v4885_v47, %v2530_v51  ;;  %v2535_v3 = vmax.f32 %v3698_v54, 0.0  ;;  %v5110_v52 = vadd.f32 %v2905_v11, %v2710_v23  ;;  %v2912_v45 = vadd.f32 %v2911_v21, %v2714_v29 }
 0x2a2   :  { %v2718_v32 = vmul.f32 %v4890_v22, %v2531_v6  ;;  %v2536_v41 = vmax.f32 %v3699_v26, 0.0  ;;  %v2719_v12 = vmul.f32 %v4893_v8, %v2532_v55  ;;  %v2537_v4 = vmax.f32 %v3762_v60, 0.0 }
 0x2a3   :  { %v2722_v38 = vmul.f32 %v4885_v47, %v2535_v3  ;;  %v2538_v13 = vmax.f32 %v3763_v30, 0.0  ;;  %v5116_v49 = vadd.f32 %v2912_v45, %v2715_v31  ;;  %v2720_v55 = vmul.f32 %v4903_v48, %v2533_v37 }
 0x2a4   :  { %v2918_v56 = vadd.f32 %v2718_v32, %v2717_v44  ;;  %v2723_v34 = vmul.f32 %v4890_v22, %v2536_v41  ;;  %v1673_v18 = vpop.f32.mrb[76].mxu1  ;;  %v2059_v19 = vpop.f32.mrb[108].mxu0  ;;  %v2724_v29 = vmul.f32 %v4893_v8, %v2537_v4 }
 0x2a5   :  { %v3700_v16 = vadd.f32 %v1673_v18, %v4869_v43  ;;  %v3764_v39 = vadd.f32 %v2059_v19, %v4872_v46  ;;  %v1675_v50 = vpop.f32.mrb[77].mxu1  ;;  %v2061_v53 = vpop.f32.mrb[109].mxu0  ;;  %v2725_v31 = vmul.f32 %v4903_v48, %v2538_v13 }
 0x2a6   :  { %v2925_v61 = vadd.f32 %v2723_v34, %v2722_v38  ;;  %v3701_v21 = vadd.f32 %v1675_v50, %v4879_v7  ;;  %v3765_v25 = vadd.f32 %v2061_v53, %v4881_v36  ;;  %v1677_v11 = vpop.f32.mrb[78].mxu1  ;;  %v2063_v23 = vpop.f32.mrb[110].mxu0  ;;  %v2919_v51 = vadd.f32 %v2918_v56, %v2719_v12 }
 0x2a7   :  { %v2540_v2 = vmax.f32 %v3700_v16, 0.0  ;;  %v3702_v54 = vadd.f32 %v1677_v11, %v4869_v43  ;;  %v1679_v5 = vpop.f32.mrb[79].mxu1  ;;  %v2065_v15 = vpop.f32.mrb[111].mxu0  ;;  %v2542_v6 = vmax.f32 %v3764_v39, 0.0  ;;  %v3766_v30 = vadd.f32 %v2063_v23, %v4872_v46 }
 0x2a8   :  { %v2541_v60 = vmax.f32 %v3701_v21, 0.0  ;;  %v3703_v26 = vadd.f32 %v1679_v5, %v4879_v7  ;;  %v2543_v41 = vmax.f32 %v3765_v25, 0.0  ;;  %v3767_v37 = vadd.f32 %v2065_v15, %v4881_v36 }
 0x2a9   :  { %v2727_v44 = vmul.f32 %v4885_v47, %v2540_v2  ;;  %v2545_v3 = vmax.f32 %v3702_v54, 0.0  ;;  %v5130_v12 = vadd.f32 %v2919_v51, %v2720_v55  ;;  %v2926_v56 = vadd.f32 %v2925_v61, %v2724_v29 }
 0x2aa   :  { %v2728_v32 = vmul.f32 %v4890_v22, %v2541_v60  ;;  %v2546_v38 = vmax.f32 %v3703_v26, 0.0  ;;  %v2729_v4 = vmul.f32 %v4893_v8, %v2542_v6  ;;  %v2547_v39 = vmax.f32 %v3766_v30, 0.0 }
 0x2ab   :  { %v2732_v45 = vmul.f32 %v4885_v47, %v2545_v3  ;;  %v5136_v25 = vadd.f32 %v2926_v56, %v2725_v31  ;;  %v2730_v54 = vmul.f32 %v4903_v48, %v2543_v41  ;;  %v2548_v5 = vmax.f32 %v3767_v37, 0.0 }
 0x2ac   :  { %v2932_v34 = vadd.f32 %v2728_v32, %v2727_v44  ;;  %v2733_v18 = vmul.f32 %v4890_v22, %v2546_v38  ;;  %v1683_v19 = vpop.f32.mrb[80].mxu1  ;;  %v2069_v16 = vpop.f32.mrb[112].mxu0  ;;  %v2734_v30 = vmul.f32 %v4893_v8, %v2547_v39 }
 0x2ad   :  { %v3704_v13 = vadd.f32 %v1683_v19, %v4869_v43  ;;  %v3768_v50 = vadd.f32 %v2069_v16, %v4872_v46  ;;  %v1685_v53 = vpop.f32.mrb[81].mxu1  ;;  %v2071_v21 = vpop.f32.mrb[113].mxu0  ;;  %v2735_v56 = vmul.f32 %v4903_v48, %v2548_v5 }
 0x2ae   :  { %v2939_v11 = vadd.f32 %v2733_v18, %v2732_v45  ;;  %v3705_v23 = vadd.f32 %v1685_v53, %v4879_v7  ;;  %v1687_v61 = vpop.f32.mrb[82].mxu1  ;;  %v2073_v51 = vpop.f32.mrb[114].mxu0  ;;  %v2933_v2 = vadd.f32 %v2932_v34, %v2729_v4  ;;  %v3769_v44 = vadd.f32 %v2071_v21, %v4881_v36 }
 0x2af   :  { %v2550_v15 = vmax.f32 %v3704_v13, 0.0  ;;  %v3706_v55 = vadd.f32 %v1687_v61, %v4869_v43  ;;  %v1689_v6 = vpop.f32.mrb[83].mxu1  ;;  %v2075_v60 = vpop.f32.mrb[115].mxu0  ;;  %v2552_v26 = vmax.f32 %v3768_v50, 0.0  ;;  %v3770_v38 = vadd.f32 %v2073_v51, %v4872_v46 }
 0x2b0   :  { %v2551_v29 = vmax.f32 %v3705_v23, 0.0  ;;  %v3707_v3 = vadd.f32 %v1689_v6, %v4879_v7  ;;  %v3771_v37 = vadd.f32 %v2075_v60, %v4881_v36  ;;  %v5150_v34 = vadd.f32 %v2933_v2, %v2730_v54 }
 0x2b1   :  { %v2737_v31 = vmul.f32 %v4885_v47, %v2550_v15  ;;  %v2555_v32 = vmax.f32 %v3706_v55, 0.0  ;;  %v2940_v18 = vadd.f32 %v2939_v11, %v2734_v30  ;;  %v2739_v19 = vmul.f32 %v4893_v8, %v2552_v26 }
 0x2b2   :  { %v2738_v41 = vmul.f32 %v4890_v22, %v2551_v29  ;;  %v2556_v45 = vmax.f32 %v3707_v3, 0.0  ;;  %v2553_v39 = vmax.f32 %v3769_v44, 0.0  ;;  %v2557_v21 = vmax.f32 %v3770_v38, 0.0 }
 0x2b3   :  { %v2742_v4 = vmul.f32 %v4885_v47, %v2555_v32  ;;  %v5156_v15 = vadd.f32 %v2940_v18, %v2735_v56  ;;  %v2558_v54 = vmax.f32 %v3771_v37, 0.0 }
 0x2b4   :  { %v2946_v16 = vadd.f32 %v2738_v41, %v2737_v31  ;;  %v2743_v13 = vmul.f32 %v4890_v22, %v2556_v45  ;;  %v1693_v50 = vpop.f32.mrb[84].mxu1  ;;  %v2079_v53 = vpop.f32.mrb[116].mxu0  ;;  %v2740_v31 = vmul.f32 %v4903_v48, %v2553_v39  ;;  %v2744_v45 = vmul.f32 %v4893_v8, %v2557_v21 }
 0x2b5   :  { %v3708_v23 = vadd.f32 %v1693_v50, %v4869_v43  ;;  %v3772_v61 = vadd.f32 %v2079_v53, %v4872_v46  ;;  %v1695_v51 = vpop.f32.mrb[85].mxu1  ;;  %v2081_v5 = vpop.f32.mrb[117].mxu0  ;;  %v2745_v18 = vmul.f32 %v4903_v48, %v2558_v54 }
 0x2b6   :  { %v2953_v2 = vadd.f32 %v2743_v13, %v2742_v4  ;;  %v3709_v11 = vadd.f32 %v1695_v51, %v4879_v7  ;;  %v1697_v55 = vpop.f32.mrb[86].mxu1  ;;  %v2083_v6 = vpop.f32.mrb[118].mxu0  ;;  %v2947_v60 = vadd.f32 %v2946_v16, %v2739_v19  ;;  %v3773_v29 = vadd.f32 %v2081_v5, %v4881_v36 }
 0x2b7   :  { %v2560_v26 = vmax.f32 %v3708_v23, 0.0  ;;  %v3710_v44 = vadd.f32 %v1697_v55, %v4869_v43  ;;  %v1699_v3 = vpop.f32.mrb[87].mxu1  ;;  %v2085_v30 = vpop.f32.mrb[119].mxu0  ;;  %v2562_v32 = vmax.f32 %v3772_v61, 0.0  ;;  %v3774_v4 = vadd.f32 %v2083_v6, %v4872_v46 }
 0x2b8   :  { %v2561_v38 = vmax.f32 %v3709_v11, 0.0  ;;  %v3711_v41 = vadd.f32 %v1699_v3, %v4879_v7  ;;  %v3775_v13 = vadd.f32 %v2085_v30, %v4881_v36  ;;  %v2563_v50 = vmax.f32 %v3773_v29, 0.0 }
 0x2b9   :  { %v2747_v37 = vmul.f32 %v4885_v47, %v2560_v26  ;;  %v2565_v56 = vmax.f32 %v3710_v44, 0.0  ;;  %v5170_v53 = vadd.f32 %v2947_v60, %v2740_v31  ;;  %v2954_v23 = vadd.f32 %v2953_v2, %v2744_v45 }
 0x2ba   :  { %v2748_v19 = vmul.f32 %v4890_v22, %v2561_v38  ;;  %v2566_v16 = vmax.f32 %v3711_v41, 0.0  ;;  %v2749_v21 = vmul.f32 %v4893_v8, %v2562_v32  ;;  %v2567_v55 = vmax.f32 %v3774_v4, 0.0 }
 0x2bb   :  { %v2752_v39 = vmul.f32 %v4885_v47, %v2565_v56  ;;  %v5176_v29 = vadd.f32 %v2954_v23, %v2745_v18  ;;  %v2568_v60 = vmax.f32 %v3775_v13, 0.0  ;;  %v2750_v38 = vmul.f32 %v4903_v48, %v2563_v50 }
 0x2bc   :  { %v2960_v61 = vadd.f32 %v2748_v19, %v2747_v37  ;;  %v2753_v51 = vmul.f32 %v4890_v22, %v2566_v16  ;;  %v1703_v5 = vpop.f32.mrb[88].mxu1  ;;  %v2089_v11 = vpop.f32.mrb[120].mxu0 }
 0x2bd   :  { %v3712_v54 = vadd.f32 %v1703_v5, %v4869_v43  ;;  %v3776_v6 = vadd.f32 %v2089_v11, %v4872_v46  ;;  %v1705_v26 = vpop.f32.mrb[89].mxu1  ;;  %v2091_v44 = vpop.f32.mrb[121].mxu0  ;;  %v812_v11 = vsub.s32 4, %v4431_v62 }
 0x2be   :  { %v2967_v3 = vadd.f32 %v2753_v51, %v2752_v39  ;;  %v3713_v2 = vadd.f32 %v1705_v26, %v4879_v7  ;;  %v1707_v30 = vpop.f32.mrb[90].mxu1  ;;  %v2093_v31 = vpop.f32.mrb[122].mxu0  ;;  %v2961_v32 = vadd.f32 %v2960_v61, %v2749_v21  ;;  %v3777_v45 = vadd.f32 %v2091_v44, %v4881_v36 }
 0x2bf   :  { %v2570_v41 = vmax.f32 %v3712_v54, 0.0  ;;  %v3714_v37 = vadd.f32 %v1707_v30, %v4869_v43  ;;  %v1709_v56 = vpop.f32.mrb[91].mxu1  ;;  %v2095_v4 = vpop.f32.mrb[123].mxu0  ;;  %v2572_v19 = vmax.f32 %v3776_v6, 0.0  ;;  %v3778_v18 = vadd.f32 %v2093_v31, %v4872_v46 }
 0x2c0   :  { %v2571_v16 = vmax.f32 %v3713_v2, 0.0  ;;  %v3715_v13 = vadd.f32 %v1709_v56, %v4879_v7  ;;  %v2754_v39 = vmul.f32 %v4893_v8, %v2567_v55  ;;  %v3779_v50 = vadd.f32 %v2095_v4, %v4881_v36 }
 0x2c1   :  { %v2757_v23 = vmul.f32 %v4885_v47, %v2570_v41  ;;  %v2575_v21 = vmax.f32 %v3714_v37, 0.0  ;;  %v2755_v61 = vmul.f32 %v4903_v48, %v2568_v60  ;;  %v2573_v54 = vmax.f32 %v3777_v45, 0.0 }
 0x2c2   :  { %v2758_v51 = vmul.f32 %v4890_v22, %v2571_v16  ;;  %v2576_v5 = vmax.f32 %v3715_v13, 0.0  ;;  %v5191_v26 = vadd.f32 %v2961_v32, %v2750_v38  ;;  %v2968_v44 = vadd.f32 %v2967_v3, %v2754_v39 }
 0x2c3   :  { %v2762_v6 = vmul.f32 %v4885_v47, %v2575_v21  ;;  %v2759_v55 = vmul.f32 %v4893_v8, %v2572_v19  ;;  %v2577_v30 = vmax.f32 %v3778_v18, 0.0  ;;  %v2578_v60 = vmax.f32 %v3779_v50, 0.0 }
 0x2c4   :  { %v2974_v2 = vadd.f32 %v2758_v51, %v2757_v23  ;;  %v2763_v31 = vmul.f32 %v4890_v22, %v2576_v5  ;;  %v1713_v41 = vpop.f32.mrb[92].mxu1  ;;  %v2099_v37 = vpop.f32.mrb[124].mxu0  ;;  %v5197_v13 = vadd.f32 %v2968_v44, %v2755_v61  ;;  %v2760_v23 = vmul.f32 %v4903_v48, %v2573_v54 }
 0x2c5   :  { %v3716_v56 = vadd.f32 %v1713_v41, %v4869_v43  ;;  %v3780_v4 = vadd.f32 %v2099_v37, %v4872_v46  ;;  %v1715_v16 = vpop.f32.mrb[93].mxu1  ;;  %v2101_v45 = vpop.f32.mrb[125].mxu0  ;;  %v2765_v54 = vmul.f32 %v4903_v48, %v2578_v60  ;;  %v4175_v60 = vld [vmem:[%s5607_s4] sm:$0x1f] }
 0x2c6   :  { %v2981_v32 = vadd.f32 %v2763_v31, %v2762_v6  ;;  %v3717_v3 = vadd.f32 %v1715_v16, %v4879_v7  ;;  %v3781_v38 = vadd.f32 %v2101_v45, %v4881_v36  ;;  %v1717_v19 = vpop.f32.mrb[94].mxu1  ;;  %v2103_v18 = vpop.f32.mrb[126].mxu0  ;;  %v2975_v39 = vadd.f32 %v2974_v2, %v2759_v55 }
 0x2c7   :  { %v2580_v21 = vmax.f32 %v3716_v56, 0.0  ;;  %v3718_v50 = vadd.f32 %v1717_v19, %v4869_v43  ;;  %v3782_v51 = vadd.f32 %v2103_v18, %v4872_v46  ;;  %v1719_v5 = vpop.f32.mrb[95].mxu1  ;;  %v2105_v41 = vpop.f32.mrb[127].mxu0  ;;  %v2582_v37 = vmax.f32 %v3780_v4, 0.0 }
 0x2c8   :  { %v2581_v61 = vmax.f32 %v3717_v3, 0.0  ;;  %v3719_v6 = vadd.f32 %v1719_v5, %v4879_v7  ;;  %v3783_v44 = vadd.f32 %v2105_v41, %v4881_v36  ;;  %v2764_v31 = vmul.f32 %v4893_v8, %v2577_v30 }
 0x2c9   :  { %v2767_v16 = vmul.f32 %v4885_v47, %v2580_v21  ;;  %v2583_v55 = vmax.f32 %v3781_v38, 0.0  ;;  %v2585_v2 = vmax.f32 %v3718_v50, 0.0  ;;  %v2587_v56 = vmax.f32 %v3782_v51, 0.0 }
 0x2ca   :  { %v2768_v43 = vmul.f32 %v4890_v22, %v2581_v61  ;;  %v2586_v46 = vmax.f32 %v3719_v6, 0.0  ;;  %v2588_v4 = vmax.f32 %v3783_v44, 0.0  ;;  %v5211_v3 = vadd.f32 %v2975_v39, %v2760_v23 }
 0x2cb   :  { %v2772_v45 = vmul.f32 %v4885_v47, %v2585_v2  ;;  %v2982_v7 = vadd.f32 %v2981_v32, %v2764_v31  ;;  %v2769_v36 = vmul.f32 %v4893_v8, %v2582_v37  ;;  %v5220_v21 = vrot.slane %v4175_v60, %v812_v11 }
 0x2cc   :  { %v2988_v19 = vadd.f32 %v2768_v43, %v2767_v16  ;;  %v2773_v30 = vmul.f32 %v4890_v22, %v2586_v46  ;;  %v3472_v18 = vpop.f32.mrb[96].mxu1  ;;  %v3626_v38 = vpop.f32.mrb[128].mxu0  ;;  %v2770_v47 = vmul.f32 %v4903_v48, %v2583_v55  ;;  %v2774_v50 = vmul.f32 %v4893_v8, %v2587_v56  ;;  %v4176_v8 = vld [vmem:[%s5608_s5] sm:$0x1f] }
 0x2cd   :  { %v3473_v39 = vpop.f32.mrb[97].mxu1  ;;  %v2303_v23 = vpop.f32.mrb[129].mxu0  ;;  %v5223_v32 = vadd.f32 %v2982_v7, %v2765_v54  ;;  %v2775_v61 = vmul.f32 %v4903_v48, %v2588_v4  ;;  %v5236_v56 = vrot.slane %v4176_v8, %v812_v11 }
 0x2ce   :  { %v2995_v51 = vadd.f32 %v2773_v30, %v2772_v45  ;;  %v3474_v22 = vadd.f32 %v3473_v39, %v3472_v18  ;;  %v3475_v5 = vpop.f32.mrb[98].mxu1  ;;  %v3627_v41 = vpop.f32.mrb[130].mxu0  ;;  %v2989_v37 = vadd.f32 %v2988_v19, %v2769_v36 }
 0x2cf   :  { %v3476_v6 = vpop.f32.mrb[99].mxu1  ;;  %v2306_v44 = vpop.f32.mrb[131].mxu0 }
 0x2d0   :  { %v2143_v31 = vadd.f32 %v3474_v22, %v5220_v21  ;;  %v3477_v16 = vadd.f32 %v3476_v6, %v3475_v5  ;;  %v5228_v2 = vadd.f32 %v2989_v37, %v2770_v47  ;;  %v2996_v55 = vadd.f32 %v2995_v51, %v2774_v50 }
 0x2d2   :  { %v2304_v43 = vadd.f32 %v2303_v23, %v2143_v31  ;;  %v2146_v54 = vadd.f32 %v3477_v16, %v5220_v21  ;;  %v5238_v48 = vadd.f32 %v2996_v55, %v2775_v61 }
 0x2d4   :  { %v2434_v46 = vmax.f32 %v2304_v43, 0.0  ;;  %v2307_v45 = vadd.f32 %v2306_v44, %v2146_v54  ;;  %v3478_v4 = vpop.f32.mrb[100].mxu1  ;;  %v5240_v7 = vpop.f32.mrb[132].mxu0 }
 0x2d5   :  { %v3479_v36 = vpop.f32.mrb[101].mxu1  ;;  %v2319_v19 = vpop.f32.mrb[133].mxu0 }
 0x2d6   :  { %v2439_v30 = vmax.f32 %v2307_v45, 0.0  ;;  %v3480_v18 = vadd.f32 %v3479_v36, %v3478_v4  ;;  %v3481_v60 = vpop.f32.mrb[102].mxu1  ;;  %v5242_v47 = vpop.f32.mrb[134].mxu0  ;;  %v2621_v39 = vmul.f32 %v5236_v56, %v2434_v46 }
 0x2d7   :  { %v3482_v62 = vpop.f32.mrb[103].mxu1  ;;  %v2322_v11 = vpop.f32.mrb[135].mxu0 }
 0x2d8   :  { %v2626_v23 = vmul.f32 %v5236_v56, %v2439_v30  ;;  %v2151_v50 = vadd.f32 %v3480_v18, %v5220_v21  ;;  %v3483_v51 = vadd.f32 %v3482_v62, %v3481_v60  ;;  %v2781_v22 = vsel %vm2780_vm4, %v2621_v39, 0.0 }
 0x2d9   :  { %v2782_v5 = vadd.f32 %v2781_v22, %v4925_v63 }
 0x2da   :  { %v2312_v37 = vadd.f32 %v3626_v38, %v2151_v50  ;;  %v2154_v61 = vadd.f32 %v3483_v51, %v5220_v21  ;;  %v2788_v6 = vsel %vm2780_vm4, %v2626_v23, 0.0 }
 0x2db   :  { %2783 = vadd.xlane.f32.xlu0 %v2782_v5  ;;  %v2789_v44 = vadd.f32 %v2788_v6, %v4932_v42 }
 0x2dc   :  { %v2315_v31 = vadd.f32 %v3627_v41, %v2154_v61  ;;  %v3484_v16 = vpop.f32.mrb[104].mxu1  ;;  %v5252_v55 = vpop.f32.mrb[136].mxu0  ;;  %v2444_v43 = vmax.f32 %v2312_v37, 0.0 }
 0x2dd   :  { %v3485_v54 = vpop.f32.mrb[105].mxu1  ;;  %v2335_v8 = vpop.f32.mrb[137].mxu0 }
 0x2de   :  { %v2449_v46 = vmax.f32 %v2315_v31, 0.0  ;;  %v3486_v45 = vadd.f32 %v3485_v54, %v3484_v16  ;;  %v3487_v4 = vpop.f32.mrb[106].mxu1  ;;  %v5254_v36 = vpop.f32.mrb[138].mxu0  ;;  %v2631_v63 = vmul.f32 %v5236_v56, %v2444_v43 }
 0x2df   :  { %v3488_v38 = vpop.f32.mrb[107].mxu1  ;;  %v2338_v30 = vpop.f32.mrb[139].mxu0  ;;  %2790 = vadd.xlane.f32.xlu0 %v2789_v44 }
 0x2e0   :  { %v2159_v18 = vadd.f32 %v3486_v45, %v5220_v21  ;;  %v3489_v42 = vadd.f32 %v3488_v38, %v3487_v4  ;;  %v2795_v41 = vsel %vm2780_vm4, %v2631_v63, 0.0  ;;  %v2636_v60 = vmul.f32 %v5236_v56, %v2449_v46 }
 0x2e1   :  { %v2796_v39 = vadd.f32 %v2795_v41, %v4951_v20 }
 0x2e2   :  { %v2320_v62 = vadd.f32 %v2319_v19, %v2159_v18  ;;  %v2162_v23 = vadd.f32 %v3489_v42, %v5220_v21  ;;  %v2802_v50 = vsel %vm2780_vm4, %v2636_v60, 0.0 }
 0x2e3   :  { %2797 = vadd.xlane.f32.xlu1 %v2796_v39  ;;  %v2803_v51 = vadd.f32 %v2802_v50, %v4953_v59 }
 0x2e4   :  { %v2454_v22 = vmax.f32 %v2320_v62, 0.0  ;;  %v2323_v5 = vadd.f32 %v2322_v11, %v2162_v23  ;;  %v3490_v37 = vpop.f32.mrb[108].mxu1  ;;  %v5264_v61 = vpop.f32.mrb[140].mxu0 }
 0x2e5   :  { %v3491_v6 = vpop.f32.mrb[109].mxu1  ;;  %v5266_v44 = vpop.f32.mrb[141].mxu0 }
 0x2e6   :  { %v2459_v31 = vmax.f32 %v2323_v5, 0.0  ;;  %v3492_v16 = vadd.f32 %v3491_v6, %v3490_v37  ;;  %v3493_v43 = vpop.f32.mrb[110].mxu1  ;;  %v5268_v20 = vpop.f32.mrb[142].mxu0  ;;  %v2641_v19 = vmul.f32 %v5236_v56, %v2454_v22 }
 0x2e7   :  { %v3494_v54 = vpop.f32.mrb[111].mxu1  ;;  %v5271_v46 = vpop.f32.mrb[143].mxu0  ;;  %2804 = vadd.xlane.f32.xlu1 %v2803_v51 }
 0x2e8   :  { %v2167_v59 = vadd.f32 %v3492_v16, %v5220_v21  ;;  %v3495_v11 = vadd.f32 %v3494_v54, %v3493_v43  ;;  %v2809_v45 = vsel %vm2780_vm4, %v2641_v19, 0.0  ;;  %v2646_v4 = vmul.f32 %v5236_v56, %v2459_v31 }
 0x2e9   :  { %v2810_v63 = vadd.f32 %v2809_v45, %v4969_v33 }
 0x2ea   :  { %v2328_v38 = vadd.f32 %v5240_v7, %v2167_v59  ;;  %v2170_v18 = vadd.f32 %v3495_v11, %v5220_v21  ;;  %v2816_v42 = vsel %vm2780_vm4, %v2646_v4, 0.0 }
 0x2eb   :  { %2811 = vadd.xlane.f32.xlu0 %v2810_v63  ;;  %v2817_v41 = vadd.f32 %v2816_v42, %v4975_v1 }
 0x2ec   :  { %v2464_v60 = vmax.f32 %v2328_v38, 0.0  ;;  %v2331_v39 = vadd.f32 %v5242_v47, %v2170_v18  ;;  %v3496_v62 = vpop.f32.mrb[112].mxu1  ;;  %v5282_v23 = vpop.f32.mrb[144].mxu0 }
 0x2ed   :  { %v3497_v50 = vpop.f32.mrb[113].mxu1  ;;  %v5284_v51 = vpop.f32.mrb[145].mxu0  ;;  %2818 = vadd.xlane.f32.xlu1 %v2817_v41 }
 0x2ee   :  { %v2469_v33 = vmax.f32 %v2331_v39, 0.0  ;;  %v3498_v22 = vadd.f32 %v3497_v50, %v3496_v62  ;;  %v3499_v7 = vpop.f32.mrb[114].mxu1  ;;  %v5286_v5 = vpop.f32.mrb[146].mxu0  ;;  %v2651_v37 = vmul.f32 %v5236_v56, %v2464_v60 }
 0x2ef   :  { %v3500_v6 = vpop.f32.mrb[115].mxu1  ;;  %v5289_v31 = vpop.f32.mrb[147].mxu0 }
 0x2f0   :  { %v2175_v1 = vadd.f32 %v3498_v22, %v5220_v21  ;;  %v3501_v47 = vadd.f32 %v3500_v6, %v3499_v7  ;;  %v2823_v16 = vsel %vm2780_vm4, %v2651_v37, 0.0  ;;  %v2656_v43 = vmul.f32 %v5236_v56, %v2469_v33 }
 0x2f1   :  { %v2824_v19 = vadd.f32 %v2823_v16, %v4990_v27 }
 0x2f2   :  { %v2336_v54 = vadd.f32 %v2335_v8, %v2175_v1  ;;  %v2178_v59 = vadd.f32 %v3501_v47, %v5220_v21  ;;  %v2830_v11 = vsel %vm2780_vm4, %v2656_v43, 0.0 }
 0x2f3   :  { %2825 = vadd.xlane.f32.xlu0 %v2824_v19  ;;  %v2831_v45 = vadd.f32 %v2830_v11, %v4996_v40 }
 0x2f4   :  { %v2474_v4 = vmax.f32 %v2336_v54, 0.0  ;;  %v2339_v63 = vadd.f32 %v2338_v30, %v2178_v59  ;;  %v3502_v38 = vpop.f32.mrb[116].mxu1  ;;  %v5298_v18 = vpop.f32.mrb[148].mxu0 }
 0x2f5   :  { %v3503_v42 = vpop.f32.mrb[117].mxu1  ;;  %v5300_v41 = vpop.f32.mrb[149].mxu0  ;;  %2832 = vadd.xlane.f32.xlu1 %v2831_v45 }
 0x2f6   :  { %v2479_v60 = vmax.f32 %v2339_v63, 0.0  ;;  %v3504_v39 = vadd.f32 %v3503_v42, %v3502_v38  ;;  %v3505_v27 = vpop.f32.mrb[118].mxu1  ;;  %v5302_v8 = vpop.f32.mrb[150].mxu0  ;;  %v2661_v62 = vmul.f32 %v5236_v56, %v2474_v4 }
 0x2f7   :  { %v3506_v50 = vpop.f32.mrb[119].mxu1  ;;  %v5305_v33 = vpop.f32.mrb[151].mxu0 }
 0x2f8   :  { %v2183_v40 = vadd.f32 %v3504_v39, %v5220_v21  ;;  %v3507_v30 = vadd.f32 %v3506_v50, %v3505_v27  ;;  %v2837_v22 = vsel %vm2780_vm4, %v2661_v62, 0.0  ;;  %v2666_v7 = vmul.f32 %v5236_v56, %v2479_v60 }
 0x2f9   :  { %v2838_v37 = vadd.f32 %v2837_v22, %v5010_v57 }
 0x2fa   :  { %v2344_v6 = vadd.f32 %v5252_v55, %v2183_v40  ;;  %v2186_v1 = vadd.f32 %v3507_v30, %v5220_v21  ;;  %v2844_v47 = vsel %vm2780_vm4, %v2666_v7, 0.0 }
 0x2fb   :  { %2839 = vadd.xlane.f32.xlu0 %v2838_v37  ;;  %v2845_v16 = vadd.f32 %v2844_v47, %v5016_v28 }
 0x2fc   :  { %v2484_v43 = vmax.f32 %v2344_v6, 0.0  ;;  %v2347_v19 = vadd.f32 %v5254_v36, %v2186_v1  ;;  %v3508_v54 = vpop.f32.mrb[120].mxu1  ;;  %v5316_v59 = vpop.f32.mrb[152].mxu0 }
 0x2fd   :  { %v3509_v11 = vpop.f32.mrb[121].mxu1  ;;  %v5318_v45 = vpop.f32.mrb[153].mxu0  ;;  %2846 = vadd.xlane.f32.xlu1 %v2845_v16 }
 0x2fe   :  { %v2489_v57 = vmax.f32 %v2347_v19, 0.0  ;;  %v3510_v4 = vadd.f32 %v3509_v11, %v3508_v54  ;;  %v3511_v55 = vpop.f32.mrb[122].mxu1  ;;  %v5320_v63 = vpop.f32.mrb[154].mxu0  ;;  %v2671_v38 = vmul.f32 %v5236_v56, %v2484_v43 }
 0x2ff   :  { %v3512_v42 = vpop.f32.mrb[123].mxu1  ;;  %v5323_v60 = vpop.f32.mrb[155].mxu0 }
 0x300   :  { %v2191_v28 = vadd.f32 %v3510_v4, %v5220_v21  ;;  %v3513_v36 = vadd.f32 %v3512_v42, %v3511_v55  ;;  %v2851_v39 = vsel %vm2780_vm4, %v2671_v38, 0.0  ;;  %v2676_v27 = vmul.f32 %v5236_v56, %v2489_v57 }
 0x301   :  { %v2852_v62 = vadd.f32 %v2851_v39, %v5030_v14 }
 0x302   :  { %v2352_v50 = vadd.f32 %v5266_v44, %v2191_v28  ;;  %v2194_v40 = vadd.f32 %v3513_v36, %v5220_v21  ;;  %v2858_v30 = vsel %vm2780_vm4, %v2676_v27, 0.0 }
 0x303   :  { %2853 = vadd.xlane.f32.xlu0 %v2852_v62  ;;  %v2859_v22 = vadd.f32 %v2858_v30, %v5036_v17 }
 0x304   :  { %v2494_v7 = vmax.f32 %v2352_v50, 0.0  ;;  %v2355_v37 = vadd.f32 %v5271_v46, %v2194_v40  ;;  %v3514_v6 = vpop.f32.mrb[124].mxu1  ;;  %v5334_v1 = vpop.f32.mrb[156].mxu0 }
 0x305   :  { %v3515_v47 = vpop.f32.mrb[125].mxu1  ;;  %v5336_v16 = vpop.f32.mrb[157].mxu0  ;;  %2860 = vadd.xlane.f32.xlu1 %v2859_v22 }
 0x306   :  { %v2499_v14 = vmax.f32 %v2355_v37, 0.0  ;;  %v3516_v43 = vadd.f32 %v3515_v47, %v3514_v6  ;;  %v3517_v44 = vpop.f32.mrb[126].mxu1  ;;  %v5338_v19 = vpop.f32.mrb[158].mxu0  ;;  %v2681_v54 = vmul.f32 %v5236_v56, %v2494_v7 }
 0x307   :  { %v3518_v11 = vpop.f32.mrb[127].mxu1  ;;  %v5341_v57 = vpop.f32.mrb[159].mxu0 }
 0x308   :  { %v2199_v17 = vadd.f32 %v3516_v43, %v5220_v21  ;;  %v3519_v46 = vadd.f32 %v3518_v11, %v3517_v44  ;;  %v2865_v4 = vsel %vm2780_vm4, %v2681_v54, 0.0  ;;  %v2686_v55 = vmul.f32 %v5236_v56, %v2499_v14 }
 0x309   :  { %v2866_v38 = vadd.f32 %v2865_v4, %v5050_v9 }
 0x30a   :  { %v2360_v42 = vadd.f32 %v5264_v61, %v2199_v17  ;;  %v2202_v28 = vadd.f32 %v3519_v46, %v5220_v21  ;;  %v2872_v36 = vsel %vm2780_vm4, %v2686_v55, 0.0 }
 0x30b   :  { %2867 = vadd.xlane.f32.xlu0 %v2866_v38  ;;  %v2873_v39 = vadd.f32 %v2872_v36, %v5056_v24 }
 0x30c   :  { %v2504_v27 = vmax.f32 %v2360_v42, 0.0  ;;  %v2363_v62 = vadd.f32 %v5268_v20, %v2202_v28  ;;  %v3520_v50 = vpop.f32.mrb[128].mxu1 }
 0x30d   :  { %v3521_v40 = vpop.f32.mrb[129].mxu1  ;;  %2874 = vadd.xlane.f32.xlu1 %v2873_v39 }
 0x30e   :  { %v2509_v30 = vmax.f32 %v2363_v62, 0.0  ;;  %v3522_v22 = vadd.f32 %v3521_v40, %v3520_v50  ;;  %v3523_v7 = vpop.f32.mrb[130].mxu1  ;;  %v2691_v9 = vmul.f32 %v5236_v56, %v2504_v27 }
 0x30f   :  { %v3524_v37 = vpop.f32.mrb[131].mxu1 }
 0x310   :  { %v2207_v61 = vadd.f32 %v3522_v22, %v5220_v21  ;;  %v3525_v6 = vadd.f32 %v3524_v37, %v3523_v7  ;;  %v2879_v47 = vsel %vm2780_vm4, %v2691_v9, 0.0  ;;  %v2696_v14 = vmul.f32 %v5236_v56, %v2509_v30 }
 0x311   :  { %v2880_v24 = vadd.f32 %v2879_v47, %v5070_v58 }
 0x312   :  { %v2368_v20 = vadd.f32 %v5284_v51, %v2207_v61  ;;  %v2210_v43 = vadd.f32 %v3525_v6, %v5220_v21  ;;  %v2886_v44 = vsel %vm2780_vm4, %v2696_v14, 0.0 }
 0x313   :  { %2881 = vadd.xlane.f32.xlu0 %v2880_v24  ;;  %v2887_v54 = vadd.f32 %v2886_v44, %v5076_v35 }
 0x314   :  { %v2514_v11 = vmax.f32 %v2368_v20, 0.0  ;;  %v2371_v17 = vadd.f32 %v5289_v31, %v2210_v43  ;;  %v3526_v46 = vpop.f32.mrb[132].mxu1 }
 0x315   :  { %v3527_v4 = vpop.f32.mrb[133].mxu1  ;;  %2888 = vadd.xlane.f32.xlu1 %v2887_v54 }
 0x316   :  { %v2519_v55 = vmax.f32 %v2371_v17, 0.0  ;;  %v3528_v38 = vadd.f32 %v3527_v4, %v3526_v46  ;;  %v3529_v42 = vpop.f32.mrb[134].mxu1  ;;  %v2701_v58 = vmul.f32 %v5236_v56, %v2514_v11 }
 0x317   :  { %v3530_v28 = vpop.f32.mrb[135].mxu1 }
 0x318   :  { %v2215_v51 = vadd.f32 %v3528_v38, %v5220_v21  ;;  %v3531_v36 = vadd.f32 %v3530_v28, %v3529_v42  ;;  %v2893_v39 = vsel %vm2780_vm4, %v2701_v58, 0.0  ;;  %v2706_v27 = vmul.f32 %v5236_v56, %v2519_v55 }
 0x319   :  { %v2894_v35 = vadd.f32 %v2893_v39, %v5090_v0 }
 0x31a   :  { %v2376_v31 = vadd.f32 %v5282_v23, %v2215_v51  ;;  %v2218_v62 = vadd.f32 %v3531_v36, %v5220_v21  ;;  %v2900_v50 = vsel %vm2780_vm4, %v2706_v27, 0.0 }
 0x31b   :  { %2895 = vadd.xlane.f32.xlu0 %v2894_v35  ;;  %v2901_v40 = vadd.f32 %v2900_v50, %v5096_v10 }
 0x31c   :  { %v2524_v30 = vmax.f32 %v2376_v31, 0.0  ;;  %v2379_v22 = vadd.f32 %v5286_v5, %v2218_v62  ;;  %v3532_v7 = vpop.f32.mrb[136].mxu1 }
 0x31d   :  { %v3533_v9 = vpop.f32.mrb[137].mxu1  ;;  %2902 = vadd.xlane.f32.xlu1 %v2901_v40 }
 0x31e   :  { %v2529_v37 = vmax.f32 %v2379_v22, 0.0  ;;  %v3534_v61 = vadd.f32 %v3533_v9, %v3532_v7  ;;  %v3535_v6 = vpop.f32.mrb[138].mxu1  ;;  %v2711_v0 = vmul.f32 %v5236_v56, %v2524_v30 }
 0x31f   :  { %v3536_v47 = vpop.f32.mrb[139].mxu1 }
 0x320   :  { %v2223_v23 = vadd.f32 %v3534_v61, %v5220_v21  ;;  %v3537_v14 = vadd.f32 %v3536_v47, %v3535_v6  ;;  %v2907_v24 = vsel %vm2780_vm4, %v2711_v0, 0.0  ;;  %v2716_v20 = vmul.f32 %v5236_v56, %v2529_v37 }
 0x321   :  { %v2908_v10 = vadd.f32 %v2907_v24, %v5110_v52 }
 0x322   :  { %v2384_v5 = vadd.f32 %v5300_v41, %v2223_v23  ;;  %v2226_v43 = vadd.f32 %v3537_v14, %v5220_v21  ;;  %v2914_v44 = vsel %vm2780_vm4, %v2716_v20, 0.0 }
 0x323   :  { %2909 = vadd.xlane.f32.xlu0 %v2908_v10  ;;  %v2915_v54 = vadd.f32 %v2914_v44, %v5116_v49 }
 0x324   :  { %v2534_v11 = vmax.f32 %v2384_v5, 0.0  ;;  %v2387_v17 = vadd.f32 %v5305_v33, %v2226_v43  ;;  %v3538_v46 = vpop.f32.mrb[140].mxu1 }
 0x325   :  { %v3539_v4 = vpop.f32.mrb[141].mxu1  ;;  %2916 = vadd.xlane.f32.xlu1 %v2915_v54 }
 0x326   :  { %v2539_v55 = vmax.f32 %v2387_v17, 0.0  ;;  %v3540_v38 = vadd.f32 %v3539_v4, %v3538_v46  ;;  %v3541_v42 = vpop.f32.mrb[142].mxu1  ;;  %v2721_v52 = vmul.f32 %v5236_v56, %v2534_v11 }
 0x327   :  { %v3542_v58 = vpop.f32.mrb[143].mxu1 }
 0x328   :  { %v2231_v41 = vadd.f32 %v3540_v38, %v5220_v21  ;;  %v3543_v28 = vadd.f32 %v3542_v58, %v3541_v42  ;;  %v2921_v51 = vsel %vm2780_vm4, %v2721_v52, 0.0  ;;  %v2726_v36 = vmul.f32 %v5236_v56, %v2539_v55 }
 0x329   :  { %v2922_v49 = vadd.f32 %v2921_v51, %v5130_v12 }
 0x32a   :  { %v2392_v33 = vadd.f32 %v5298_v18, %v2231_v41  ;;  %v2234_v39 = vadd.f32 %v3543_v28, %v5220_v21  ;;  %v2928_v27 = vsel %vm2780_vm4, %v2726_v36, 0.0 }
 0x32b   :  { %2923 = vadd.xlane.f32.xlu0 %v2922_v49  ;;  %v2929_v35 = vadd.f32 %v2928_v27, %v5136_v25 }
 0x32c   :  { %v2544_v31 = vmax.f32 %v2392_v33, 0.0  ;;  %v2395_v62 = vadd.f32 %v5302_v8, %v2234_v39  ;;  %v3544_v50 = vpop.f32.mrb[144].mxu1 }
 0x32d   :  { %v3545_v40 = vpop.f32.mrb[145].mxu1  ;;  %2930 = vadd.xlane.f32.xlu1 %v2929_v35 }
 0x32e   :  { %v2549_v30 = vmax.f32 %v2395_v62, 0.0  ;;  %v3546_v22 = vadd.f32 %v3545_v40, %v3544_v50  ;;  %v3547_v7 = vpop.f32.mrb[146].mxu1  ;;  %v2731_v12 = vmul.f32 %v5236_v56, %v2544_v31 }
 0x32f   :  { %v3548_v9 = vpop.f32.mrb[147].mxu1 }
 0x330   :  { %v2239_v18 = vadd.f32 %v3546_v22, %v5220_v21  ;;  %v3549_v37 = vadd.f32 %v3548_v9, %v3547_v7  ;;  %v2935_v61 = vsel %vm2780_vm4, %v2731_v12, 0.0  ;;  %v2736_v6 = vmul.f32 %v5236_v56, %v2549_v30 }
 0x331   :  { %v2936_v25 = vadd.f32 %v2935_v61, %v5150_v34 }
 0x332   :  { %v2400_v8 = vadd.f32 %v5318_v45, %v2239_v18  ;;  %v2242_v0 = vadd.f32 %v3549_v37, %v5220_v21  ;;  %v2942_v47 = vsel %vm2780_vm4, %v2736_v6, 0.0 }
 0x333   :  { %2937 = vadd.xlane.f32.xlu0 %v2936_v25  ;;  %v2943_v23 = vadd.f32 %v2942_v47, %v5156_v15 }
 0x334   :  { %v2554_v14 = vmax.f32 %v2400_v8, 0.0  ;;  %v2403_v24 = vadd.f32 %v5323_v60, %v2242_v0  ;;  %v3550_v20 = vpop.f32.mrb[148].mxu1 }
 0x335   :  { %v3551_v10 = vpop.f32.mrb[149].mxu1  ;;  %2944 = vadd.xlane.f32.xlu1 %v2943_v23 }
 0x336   :  { %v2559_v5 = vmax.f32 %v2403_v24, 0.0  ;;  %v3552_v43 = vadd.f32 %v3551_v10, %v3550_v20  ;;  %v3553_v44 = vpop.f32.mrb[150].mxu1  ;;  %v2741_v34 = vmul.f32 %v5236_v56, %v2554_v14 }
 0x337   :  { %v3554_v54 = vpop.f32.mrb[151].mxu1 }
 0x338   :  { %v2247_v45 = vadd.f32 %v3552_v43, %v5220_v21  ;;  %v3555_v11 = vadd.f32 %v3554_v54, %v3553_v44  ;;  %v2949_v17 = vsel %vm2780_vm4, %v2741_v34, 0.0  ;;  %v2746_v46 = vmul.f32 %v5236_v56, %v2559_v5 }
 0x339   :  { %v2950_v15 = vadd.f32 %v2949_v17, %v5170_v53 }
 0x33a   :  { %v2408_v60 = vadd.f32 %v5316_v59, %v2247_v45  ;;  %v2250_v4 = vadd.f32 %v3555_v11, %v5220_v21  ;;  %v2956_v55 = vsel %vm2780_vm4, %v2746_v46, 0.0 }
 0x33b   :  { %2951 = vadd.xlane.f32.xlu0 %v2950_v15  ;;  %v2957_v38 = vadd.f32 %v2956_v55, %v5176_v29 }
 0x33c   :  { %v2564_v42 = vmax.f32 %v2408_v60, 0.0  ;;  %v2411_v52 = vadd.f32 %v5320_v63, %v2250_v4  ;;  %v3556_v58 = vpop.f32.mrb[152].mxu1 }
 0x33d   :  { %v3557_v41 = vpop.f32.mrb[153].mxu1  ;;  %2958 = vadd.xlane.f32.xlu1 %v2957_v38 }
 0x33e   :  { %v2569_v28 = vmax.f32 %v2411_v52, 0.0  ;;  %v3558_v51 = vadd.f32 %v3557_v41, %v3556_v58  ;;  %v3559_v36 = vpop.f32.mrb[154].mxu1  ;;  %v2751_v53 = vmul.f32 %v5236_v56, %v2564_v42 }
 0x33f   :  { %v3560_v49 = vpop.f32.mrb[155].mxu1 }
 0x340   :  { %v2255_v59 = vadd.f32 %v3558_v51, %v5220_v21  ;;  %v3561_v33 = vadd.f32 %v3560_v49, %v3559_v36  ;;  %v2963_v39 = vsel %vm2780_vm4, %v2751_v53, 0.0  ;;  %v2756_v27 = vmul.f32 %v5236_v56, %v2569_v28 }
 0x341   :  { %v2964_v29 = vadd.f32 %v2963_v39, %v5191_v26 }
 0x342   :  { %v2416_v63 = vadd.f32 %v5336_v16, %v2255_v59  ;;  %v2258_v35 = vadd.f32 %v3561_v33, %v5220_v21  ;;  %v2970_v31 = vsel %vm2780_vm4, %v2756_v27, 0.0 }
 0x343   :  { %2965 = vadd.xlane.f32.xlu0 %v2964_v29  ;;  %v2971_v62 = vadd.f32 %v2970_v31, %v5197_v13 }
 0x344   :  { %v2574_v50 = vmax.f32 %v2416_v63, 0.0  ;;  %v2419_v40 = vadd.f32 %v5341_v57, %v2258_v35  ;;  %v3562_v30 = vpop.f32.mrb[156].mxu1 }
 0x345   :  { %v3563_v22 = vpop.f32.mrb[157].mxu1  ;;  %2972 = vadd.xlane.f32.xlu1 %v2971_v62 }
 0x346   :  { %v2579_v7 = vmax.f32 %v2419_v40, 0.0  ;;  %v3564_v12 = vadd.f32 %v3563_v22, %v3562_v30  ;;  %v3565_v9 = vpop.f32.mrb[158].mxu1  ;;  %v2761_v26 = vmul.f32 %v5236_v56, %v2574_v50 }
 0x347   :  { %v3566_v18 = vpop.f32.mrb[159].mxu1 }
 0x348   :  { %v2263_v16 = vadd.f32 %v3564_v12, %v5220_v21  ;;  %v3567_v37 = vadd.f32 %v3566_v18, %v3565_v9  ;;  %v2977_v61 = vsel %vm2780_vm4, %v2761_v26, 0.0  ;;  %v2766_v6 = vmul.f32 %v5236_v56, %v2579_v7 }
 0x349   :  { %v2978_v13 = vadd.f32 %v2977_v61, %v5211_v3 }
 0x34a   :  { %v2424_v57 = vadd.f32 %v5334_v1, %v2263_v16  ;;  %v2266_v25 = vadd.f32 %v3567_v37, %v5220_v21  ;;  %v2984_v8 = vsel %vm2780_vm4, %v2766_v6, 0.0 }
 0x34b   :  { %2979 = vadd.xlane.f32.xlu0 %v2978_v13  ;;  %v2985_v0 = vadd.f32 %v2984_v8, %v5223_v32  ;;  %v5441_v32 = vstv %s5609_s6 }
 0x34c   :  { %v2584_v47 = vmax.f32 %v2424_v57, 0.0  ;;  %v2427_v23 = vadd.f32 %v5338_v19, %v2266_v25 }
 0x34d   :  { %2986 = vadd.xlane.f32.xlu1 %v2985_v0 }
 0x34e   :  { %v2589_v14 = vmax.f32 %v2427_v23, 0.0  ;;  %v2771_v24 = vmul.f32 %v5236_v56, %v2584_v47 }
 0x350   :  { %v2991_v20 = vsel %vm2780_vm4, %v2771_v24, 0.0  ;;  %v2776_v3 = vmul.f32 %v5236_v56, %v2589_v14 }
 0x351   :  { %v2992_v1 = vadd.f32 %v2991_v20, %v5228_v2 }
 0x352   :  { %v2998_v21 = vsel %vm2780_vm4, %v2776_v3, 0.0 }
 0x353   :  { %2993 = vadd.xlane.f32.xlu0 %v2992_v1  ;;  %v2999_v10 = vadd.f32 %v2998_v21, %v5238_v48 }
 0x355   :  { %3000 = vadd.xlane.f32.xlu1 %v2999_v10 }
 0x368   :  { %v2784_v19 = vpop.xlane.xlu0 %2783 }
 0x369   :  { %v3004_v5 = vadd.f32 %v5441_v32, %v2784_v19 }
 0x36b   :  { %v3036_v43 = vsub.f32 0.0, %v3004_v5 }
 0x36c   :  { %v2791_v44 = vpop.xlane.xlu0 %2790 }
 0x36d   :  { %v3068_v34 = vmul.f32 1.442695, %v3036_v43  ;;  %v3005_v56 = vadd.f32 %v5441_v32, %v2791_v44 }
 0x36f   :  { %4047 = vpow2.f32 %v3068_v34  ;;  %v3037_v2 = vsub.f32 0.0, %v3005_v56 }
 0x370   :  { %v2798_v54 = vpop.xlane.xlu1 %2797 }
 0x371   :  { %v3070_v45 = vmul.f32 1.442695, %v3037_v2  ;;  %v3006_v48 = vadd.f32 %v5441_v32, %v2798_v54 }
 0x373   :  { %4049 = vpow2.f32 %v3070_v45  ;;  %v3038_v11 = vsub.f32 0.0, %v3006_v48 }
 0x374   :  { %v2805_v17 = vpop.xlane.xlu1 %2804 }
 0x375   :  { %v3072_v46 = vmul.f32 1.442695, %v3038_v11  ;;  %v3007_v15 = vadd.f32 %v5441_v32, %v2805_v17 }
 0x377   :  { %4051 = vpow2.f32 %v3072_v46  ;;  %v3039_v60 = vsub.f32 0.0, %v3007_v15 }
 0x378   :  { %v2812_v4 = vpop.xlane.xlu0 %2811 }
 0x379   :  { %v4048_v55 = vpop.eup %4047  ;;  %v3074_v38 = vmul.f32 1.442695, %v3039_v60  ;;  %v3008_v42 = vadd.f32 %v5441_v32, %v2812_v4 }
 0x37a   :  { %v3132_v52 = vadd.f32 1.0, %v4048_v55  ;;  %v2819_v58 = vpop.xlane.xlu1 %2818 }
 0x37b   :  { %4053 = vpow2.f32 %v3074_v38  ;;  %v3040_v41 = vsub.f32 0.0, %v3008_v42  ;;  %v3009_v28 = vadd.f32 %v5441_v32, %v2819_v58 }
 0x37c   :  { %4055 = vrcp.f32 %v3132_v52 }
 0x37d   :  { %v4050_v51 = vpop.eup %4049  ;;  %v3076_v36 = vmul.f32 1.442695, %v3040_v41  ;;  %v3041_v53 = vsub.f32 0.0, %v3009_v28 }
 0x37e   :  { %v3133_v49 = vadd.f32 1.0, %v4050_v51 }
 0x37f   :  { %4057 = vpow2.f32 %v3076_v36  ;;  %v3078_v59 = vmul.f32 1.442695, %v3041_v53 }
 0x380   :  { %4059 = vrcp.f32 %v3133_v49  ;;  %v2826_v33 = vpop.xlane.xlu0 %2825 }
 0x381   :  { %v4052_v39 = vpop.eup %4051  ;;  %4061 = vpow2.f32 %v3078_v59  ;;  %v3010_v27 = vadd.f32 %v5441_v32, %v2826_v33 }
 0x382   :  { %v3134_v29 = vadd.f32 1.0, %v4052_v39  ;;  %v2833_v63 = vpop.xlane.xlu1 %2832 }
 0x383   :  { %v3042_v35 = vsub.f32 0.0, %v3010_v27  ;;  %v3011_v31 = vadd.f32 %v5441_v32, %v2833_v63 }
 0x384   :  { %4063 = vrcp.f32 %v3134_v29 }
 0x385   :  { %v4054_v62 = vpop.eup %4053  ;;  %v3080_v50 = vmul.f32 1.442695, %v3042_v35  ;;  %v3043_v40 = vsub.f32 0.0, %v3011_v31 }
 0x386   :  { %v4056_v30 = vpop.eup %4055  ;;  %v3135_v22 = vadd.f32 1.0, %v4054_v62 }
 0x387   :  { %3229 = vst.msk [vmem:[%s5610_s7] sm:$0xff] %vm3228_vm5, %v4056_v30  ;;  %4065 = vpow2.f32 %v3080_v50  ;;  %v3082_v7 = vmul.f32 1.442695, %v3043_v40 }
 0x388   :  { %4067 = vrcp.f32 %v3135_v22  ;;  %v2840_v12 = vpop.xlane.xlu0 %2839 }
 0x389   :  { %v4058_v9 = vpop.eup %4057  ;;  %4069 = vpow2.f32 %v3082_v7  ;;  %v3012_v26 = vadd.f32 %v5441_v32, %v2840_v12 }
 0x38a   :  { %v4060_v18 = vpop.eup %4059  ;;  %v3136_v16 = vadd.f32 1.0, %v4058_v9  ;;  %v2847_v37 = vpop.xlane.xlu1 %2846 }
 0x38b   :  { %v4062_v61 = vpop.eup %4061  ;;  %3230 = vst.msk [vmem:[%s5610_s7 + $0x8] sm:$0xff] %vm3228_vm5, %v4060_v18  ;;  %v3044_v6 = vsub.f32 0.0, %v3012_v26  ;;  %v3013_v13 = vadd.f32 %v5441_v32, %v2847_v37 }
 0x38c   :  { %4071 = vrcp.f32 %v3136_v16  ;;  %v3137_v57 = vadd.f32 1.0, %v4062_v61 }
 0x38d   :  { %v3084_v25 = vmul.f32 1.442695, %v3044_v6  ;;  %v3045_v8 = vsub.f32 0.0, %v3013_v13 }
 0x38e   :  { %v4064_v0 = vpop.eup %4063  ;;  %4073 = vrcp.f32 %v3137_v57 }
 0x38f   :  { %3231 = vst.msk [vmem:[%s5610_s7 + $0x10] sm:$0xff] %vm3228_vm5, %v4064_v0  ;;  %4075 = vpow2.f32 %v3084_v25  ;;  %v3086_v47 = vmul.f32 1.442695, %v3045_v8 }
 0x390   :  { %v2854_v23 = vpop.xlane.xlu0 %2853 }
 0x391   :  { %v4066_v14 = vpop.eup %4065  ;;  %4077 = vpow2.f32 %v3086_v47  ;;  %v3014_v24 = vadd.f32 %v5441_v32, %v2854_v23 }
 0x392   :  { %v4068_v20 = vpop.eup %4067  ;;  %v3138_v3 = vadd.f32 1.0, %v4066_v14  ;;  %v2861_v1 = vpop.xlane.xlu1 %2860 }
 0x393   :  { %v4070_v21 = vpop.eup %4069  ;;  %3232 = vst.msk [vmem:[%s5610_s7 + $0x18] sm:$0xff] %vm3228_vm5, %v4068_v20  ;;  %v3046_v10 = vsub.f32 0.0, %v3014_v24  ;;  %v3015_v19 = vadd.f32 %v5441_v32, %v2861_v1 }
 0x394   :  { %4079 = vrcp.f32 %v3138_v3  ;;  %v3139_v5 = vadd.f32 1.0, %v4070_v21 }
 0x395   :  { %v3088_v43 = vmul.f32 1.442695, %v3046_v10  ;;  %v3047_v44 = vsub.f32 0.0, %v3015_v19 }
 0x396   :  { %v4072_v34 = vpop.eup %4071  ;;  %4081 = vrcp.f32 %v3139_v5 }
 0x397   :  { %3233 = vst.msk [vmem:[%s5610_s7 + $0x20] sm:$0xff] %vm3228_vm5, %v4072_v34  ;;  %4083 = vpow2.f32 %v3088_v43  ;;  %v3090_v56 = vmul.f32 1.442695, %v3047_v44 }
 0x398   :  { %v4074_v2 = vpop.eup %4073  ;;  %v2868_v54 = vpop.xlane.xlu0 %2867 }
 0x399   :  { %v4076_v45 = vpop.eup %4075  ;;  %3234 = vst.msk [vmem:[%s5610_s7 + $0x28] sm:$0xff] %vm3228_vm5, %v4074_v2  ;;  %4085 = vpow2.f32 %v3090_v56  ;;  %v3016_v48 = vadd.f32 %v5441_v32, %v2868_v54 }
 0x39a   :  { %v3140_v11 = vadd.f32 1.0, %v4076_v45  ;;  %v2875_v17 = vpop.xlane.xlu1 %2874 }
 0x39b   :  { %v4078_v46 = vpop.eup %4077  ;;  %v3048_v15 = vsub.f32 0.0, %v3016_v48  ;;  %v3017_v60 = vadd.f32 %v5441_v32, %v2875_v17 }
 0x39c   :  { %4087 = vrcp.f32 %v3140_v11  ;;  %v3141_v4 = vadd.f32 1.0, %v4078_v46 }
 0x39d   :  { %v3092_v55 = vmul.f32 1.442695, %v3048_v15  ;;  %v3049_v38 = vsub.f32 0.0, %v3017_v60 }
 0x39e   :  { %v4080_v42 = vpop.eup %4079  ;;  %4089 = vrcp.f32 %v3141_v4 }
 0x39f   :  { %3235 = vst.msk [vmem:[%s5610_s7 + $0x30] sm:$0xff] %vm3228_vm5, %v4080_v42  ;;  %4091 = vpow2.f32 %v3092_v55  ;;  %v3094_v52 = vmul.f32 1.442695, %v3049_v38 }
 0x3a0   :  { %v4082_v58 = vpop.eup %4081  ;;  %v2882_v41 = vpop.xlane.xlu0 %2881 }
 0x3a1   :  { %v4084_v28 = vpop.eup %4083  ;;  %3236 = vst.msk [vmem:[%s5610_s7 + $0x38] sm:$0xff] %vm3228_vm5, %v4082_v58  ;;  %4093 = vpow2.f32 %v3094_v52  ;;  %v3018_v51 = vadd.f32 %v5441_v32, %v2882_v41 }
 0x3a2   :  { %v3142_v36 = vadd.f32 1.0, %v4084_v28  ;;  %v2889_v53 = vpop.xlane.xlu1 %2888 }
 0x3a3   :  { %v4086_v49 = vpop.eup %4085  ;;  %v3050_v59 = vsub.f32 0.0, %v3018_v51  ;;  %v3019_v33 = vadd.f32 %v5441_v32, %v2889_v53 }
 0x3a4   :  { %4095 = vrcp.f32 %v3142_v36  ;;  %v3143_v39 = vadd.f32 1.0, %v4086_v49 }
 0x3a5   :  { %v3096_v27 = vmul.f32 1.442695, %v3050_v59  ;;  %v3051_v29 = vsub.f32 0.0, %v3019_v33 }
 0x3a6   :  { %v4088_v63 = vpop.eup %4087  ;;  %4097 = vrcp.f32 %v3143_v39 }
 0x3a7   :  { %3237 = vst.msk [vmem:[%s5610_s7 + $0x40] sm:$0xff] %vm3228_vm5, %v4088_v63  ;;  %4099 = vpow2.f32 %v3096_v27  ;;  %v3098_v35 = vmul.f32 1.442695, %v3051_v29 }
 0x3a8   :  { %v4090_v31 = vpop.eup %4089  ;;  %v2896_v62 = vpop.xlane.xlu0 %2895 }
 0x3a9   :  { %v4092_v50 = vpop.eup %4091  ;;  %3238 = vst.msk [vmem:[%s5610_s7 + $0x48] sm:$0xff] %vm3228_vm5, %v4090_v31  ;;  %4101 = vpow2.f32 %v3098_v35  ;;  %v3020_v40 = vadd.f32 %v5441_v32, %v2896_v62 }
 0x3aa   :  { %v3144_v30 = vadd.f32 1.0, %v4092_v50  ;;  %v2903_v22 = vpop.xlane.xlu1 %2902 }
 0x3ab   :  { %v4094_v7 = vpop.eup %4093  ;;  %v3052_v12 = vsub.f32 0.0, %v3020_v40  ;;  %v3021_v9 = vadd.f32 %v5441_v32, %v2903_v22 }
 0x3ac   :  { %4103 = vrcp.f32 %v3144_v30  ;;  %v3145_v26 = vadd.f32 1.0, %v4094_v7 }
 0x3ad   :  { %v3100_v18 = vmul.f32 1.442695, %v3052_v12  ;;  %v3053_v16 = vsub.f32 0.0, %v3021_v9 }
 0x3ae   :  { %v4096_v37 = vpop.eup %4095  ;;  %4105 = vrcp.f32 %v3145_v26 }
 0x3af   :  { %3239 = vst.msk [vmem:[%s5610_s7 + $0x50] sm:$0xff] %vm3228_vm5, %v4096_v37  ;;  %4107 = vpow2.f32 %v3100_v18  ;;  %v3102_v61 = vmul.f32 1.442695, %v3053_v16 }
 0x3b0   :  { %v4098_v6 = vpop.eup %4097  ;;  %v2910_v13 = vpop.xlane.xlu0 %2909 }
 0x3b1   :  { %v4100_v57 = vpop.eup %4099  ;;  %3240 = vst.msk [vmem:[%s5610_s7 + $0x58] sm:$0xff] %vm3228_vm5, %v4098_v6  ;;  %4109 = vpow2.f32 %v3102_v61  ;;  %v3022_v25 = vadd.f32 %v5441_v32, %v2910_v13 }
 0x3b2   :  { %v3146_v8 = vadd.f32 1.0, %v4100_v57  ;;  %v2917_v0 = vpop.xlane.xlu1 %2916 }
 0x3b3   :  { %v4102_v47 = vpop.eup %4101  ;;  %v3054_v23 = vsub.f32 0.0, %v3022_v25  ;;  %v3023_v14 = vadd.f32 %v5441_v32, %v2917_v0 }
 0x3b4   :  { %4111 = vrcp.f32 %v3146_v8  ;;  %v3147_v24 = vadd.f32 1.0, %v4102_v47 }
 0x3b5   :  { %v3104_v20 = vmul.f32 1.442695, %v3054_v23  ;;  %v3055_v3 = vsub.f32 0.0, %v3023_v14 }
 0x3b6   :  { %v4104_v1 = vpop.eup %4103  ;;  %4113 = vrcp.f32 %v3147_v24 }
 0x3b7   :  { %3241 = vst.msk [vmem:[%s5610_s7 + $0x60] sm:$0xff] %vm3228_vm5, %v4104_v1  ;;  %4115 = vpow2.f32 %v3104_v20  ;;  %v3106_v21 = vmul.f32 1.442695, %v3055_v3 }
 0x3b8   :  { %v4106_v10 = vpop.eup %4105  ;;  %v2924_v19 = vpop.xlane.xlu0 %2923 }
 0x3b9   :  { %v4108_v5 = vpop.eup %4107  ;;  %3242 = vst.msk [vmem:[%s5610_s7 + $0x68] sm:$0xff] %vm3228_vm5, %v4106_v10  ;;  %4117 = vpow2.f32 %v3106_v21  ;;  %v3024_v43 = vadd.f32 %v5441_v32, %v2924_v19 }
 0x3ba   :  { %v3148_v44 = vadd.f32 1.0, %v4108_v5  ;;  %v2931_v34 = vpop.xlane.xlu1 %2930 }
 0x3bb   :  { %v4110_v56 = vpop.eup %4109  ;;  %v3056_v2 = vsub.f32 0.0, %v3024_v43  ;;  %v3025_v54 = vadd.f32 %v5441_v32, %v2931_v34 }
 0x3bc   :  { %4119 = vrcp.f32 %v3148_v44  ;;  %v3149_v45 = vadd.f32 1.0, %v4110_v56 }
 0x3bd   :  { %v3108_v48 = vmul.f32 1.442695, %v3056_v2  ;;  %v3057_v11 = vsub.f32 0.0, %v3025_v54 }
 0x3be   :  { %v4112_v17 = vpop.eup %4111  ;;  %4121 = vrcp.f32 %v3149_v45 }
 0x3bf   :  { %3243 = vst.msk [vmem:[%s5610_s7 + $0x70] sm:$0xff] %vm3228_vm5, %v4112_v17  ;;  %4123 = vpow2.f32 %v3108_v48  ;;  %v3110_v46 = vmul.f32 1.442695, %v3057_v11 }
 0x3c0   :  { %v4114_v15 = vpop.eup %4113  ;;  %v2938_v60 = vpop.xlane.xlu0 %2937 }
 0x3c1   :  { %v4116_v4 = vpop.eup %4115  ;;  %3244 = vst.msk [vmem:[%s5610_s7 + $0x78] sm:$0xff] %vm3228_vm5, %v4114_v15  ;;  %4125 = vpow2.f32 %v3110_v46  ;;  %v3026_v55 = vadd.f32 %v5441_v32, %v2938_v60 }
 0x3c2   :  { %v3150_v38 = vadd.f32 1.0, %v4116_v4  ;;  %v2945_v42 = vpop.xlane.xlu1 %2944 }
 0x3c3   :  { %v4118_v52 = vpop.eup %4117  ;;  %v3058_v58 = vsub.f32 0.0, %v3026_v55  ;;  %v3027_v41 = vadd.f32 %v5441_v32, %v2945_v42 }
 0x3c4   :  { %4127 = vrcp.f32 %v3150_v38  ;;  %v3151_v28 = vadd.f32 1.0, %v4118_v52 }
 0x3c5   :  { %v3112_v51 = vmul.f32 1.442695, %v3058_v58  ;;  %v3059_v36 = vsub.f32 0.0, %v3027_v41 }
 0x3c6   :  { %v4120_v53 = vpop.eup %4119  ;;  %4129 = vrcp.f32 %v3151_v28 }
 0x3c7   :  { %3245 = vst.msk [vmem:[%s5610_s7 + $0x80] sm:$0xff] %vm3228_vm5, %v4120_v53  ;;  %4131 = vpow2.f32 %v3112_v51  ;;  %v3114_v49 = vmul.f32 1.442695, %v3059_v36 }
 0x3c8   :  { %v4122_v59 = vpop.eup %4121  ;;  %v2952_v33 = vpop.xlane.xlu0 %2951 }
 0x3c9   :  { %v4124_v39 = vpop.eup %4123  ;;  %3246 = vst.msk [vmem:[%s5610_s7 + $0x88] sm:$0xff] %vm3228_vm5, %v4122_v59  ;;  %4133 = vpow2.f32 %v3114_v49  ;;  %v3028_v27 = vadd.f32 %v5441_v32, %v2952_v33 }
 0x3ca   :  { %v3152_v29 = vadd.f32 1.0, %v4124_v39  ;;  %v2959_v63 = vpop.xlane.xlu1 %2958 }
 0x3cb   :  { %v4126_v35 = vpop.eup %4125  ;;  %v3060_v31 = vsub.f32 0.0, %v3028_v27  ;;  %v3029_v62 = vadd.f32 %v5441_v32, %v2959_v63 }
 0x3cc   :  { %4135 = vrcp.f32 %v3152_v29  ;;  %v3153_v50 = vadd.f32 1.0, %v4126_v35 }
 0x3cd   :  { %v3116_v40 = vmul.f32 1.442695, %v3060_v31  ;;  %v3061_v30 = vsub.f32 0.0, %v3029_v62 }
 0x3ce   :  { %v4128_v22 = vpop.eup %4127  ;;  %4137 = vrcp.f32 %v3153_v50 }
 0x3cf   :  { %3247 = vst.msk [vmem:[%s5610_s7 + $0x90] sm:$0xff] %vm3228_vm5, %v4128_v22  ;;  %4139 = vpow2.f32 %v3116_v40  ;;  %v3118_v7 = vmul.f32 1.442695, %v3061_v30 }
 0x3d0   :  { %v4130_v12 = vpop.eup %4129  ;;  %v2966_v9 = vpop.xlane.xlu0 %2965 }
 0x3d1   :  { %v4132_v26 = vpop.eup %4131  ;;  %3248 = vst.msk [vmem:[%s5610_s7 + $0x98] sm:$0xff] %vm3228_vm5, %v4130_v12  ;;  %4141 = vpow2.f32 %v3118_v7  ;;  %v3030_v18 = vadd.f32 %v5441_v32, %v2966_v9 }
 0x3d2   :  { %v3154_v16 = vadd.f32 1.0, %v4132_v26  ;;  %v2973_v37 = vpop.xlane.xlu1 %2972 }
 0x3d3   :  { %v4134_v61 = vpop.eup %4133  ;;  %v3062_v6 = vsub.f32 0.0, %v3030_v18  ;;  %v3031_v13 = vadd.f32 %v5441_v32, %v2973_v37 }
 0x3d4   :  { %4143 = vrcp.f32 %v3154_v16  ;;  %v3155_v57 = vadd.f32 1.0, %v4134_v61 }
 0x3d5   :  { %v3120_v25 = vmul.f32 1.442695, %v3062_v6  ;;  %v3063_v8 = vsub.f32 0.0, %v3031_v13 }
 0x3d6   :  { %v4136_v0 = vpop.eup %4135  ;;  %4145 = vrcp.f32 %v3155_v57 }
 0x3d7   :  { %3249 = vst.msk [vmem:[%s5610_s7 + $0xa0] sm:$0xff] %vm3228_vm5, %v4136_v0  ;;  %4147 = vpow2.f32 %v3120_v25  ;;  %v3122_v47 = vmul.f32 1.442695, %v3063_v8 }
 0x3d8   :  { %v4138_v23 = vpop.eup %4137  ;;  %v2980_v14 = vpop.xlane.xlu0 %2979 }
 0x3d9   :  { %v4140_v24 = vpop.eup %4139  ;;  %3250 = vst.msk [vmem:[%s5610_s7 + $0xa8] sm:$0xff] %vm3228_vm5, %v4138_v23  ;;  %4149 = vpow2.f32 %v3122_v47  ;;  %v3032_v20 = vadd.f32 %v5441_v32, %v2980_v14 }
 0x3da   :  { %v3156_v3 = vadd.f32 1.0, %v4140_v24  ;;  %v2987_v1 = vpop.xlane.xlu1 %2986 }
 0x3db   :  { %v4142_v21 = vpop.eup %4141  ;;  %v3064_v10 = vsub.f32 0.0, %v3032_v20  ;;  %v3033_v19 = vadd.f32 %v5441_v32, %v2987_v1 }
 0x3dc   :  { %4151 = vrcp.f32 %v3156_v3  ;;  %v3157_v5 = vadd.f32 1.0, %v4142_v21 }
 0x3dd   :  { %v3124_v43 = vmul.f32 1.442695, %v3064_v10  ;;  %v3065_v44 = vsub.f32 0.0, %v3033_v19 }
 0x3de   :  { %v4144_v34 = vpop.eup %4143  ;;  %4153 = vrcp.f32 %v3157_v5 }
 0x3df   :  { %3251 = vst.msk [vmem:[%s5610_s7 + $0xb0] sm:$0xff] %vm3228_vm5, %v4144_v34  ;;  %4155 = vpow2.f32 %v3124_v43  ;;  %v3126_v56 = vmul.f32 1.442695, %v3065_v44 }
 0x3e0   :  { %v4146_v2 = vpop.eup %4145  ;;  %v2994_v54 = vpop.xlane.xlu0 %2993 }
 0x3e1   :  { %v4148_v45 = vpop.eup %4147  ;;  %3252 = vst.msk [vmem:[%s5610_s7 + $0xb8] sm:$0xff] %vm3228_vm5, %v4146_v2  ;;  %4157 = vpow2.f32 %v3126_v56  ;;  %v3034_v48 = vadd.f32 %v5441_v32, %v2994_v54 }
 0x3e2   :  { %v3158_v11 = vadd.f32 1.0, %v4148_v45  ;;  %v3001_v17 = vpop.xlane.xlu1 %3000 }
 0x3e3   :  { %v4150_v46 = vpop.eup %4149  ;;  %v3066_v15 = vsub.f32 0.0, %v3034_v48  ;;  %v3035_v60 = vadd.f32 %v5441_v32, %v3001_v17 }
 0x3e4   :  { %4159 = vrcp.f32 %v3158_v11  ;;  %v3159_v4 = vadd.f32 1.0, %v4150_v46 }
 0x3e5   :  { %v3128_v55 = vmul.f32 1.442695, %v3066_v15  ;;  %v3067_v38 = vsub.f32 0.0, %v3035_v60 }
 0x3e6   :  { %v4152_v42 = vpop.eup %4151  ;;  %4161 = vrcp.f32 %v3159_v4 }
 0x3e7   :  { %3253 = vst.msk [vmem:[%s5610_s7 + $0xc0] sm:$0xff] %vm3228_vm5, %v4152_v42  ;;  %4163 = vpow2.f32 %v3128_v55  ;;  %v3130_v52 = vmul.f32 1.442695, %v3067_v38 }
 0x3e8   :  { %v4154_v58 = vpop.eup %4153 }
 0x3e9   :  { %v4156_v41 = vpop.eup %4155  ;;  %3254 = vst.msk [vmem:[%s5610_s7 + $0xc8] sm:$0xff] %vm3228_vm5, %v4154_v58  ;;  %4165 = vpow2.f32 %v3130_v52 }
 0x3ea   :  { %v3160_v32 = vadd.f32 1.0, %v4156_v41 }
 0x3eb   :  { %v4158_v28 = vpop.eup %4157 }
 0x3ec   :  { %4167 = vrcp.f32 %v3160_v32  ;;  %v3161_v51 = vadd.f32 1.0, %v4158_v28 }
 0x3ee   :  { %v4160_v36 = vpop.eup %4159  ;;  %4169 = vrcp.f32 %v3161_v51 }
 0x3ef   :  { %3255 = vst.msk [vmem:[%s5610_s7 + $0xd0] sm:$0xff] %vm3228_vm5, %v4160_v36 }
 0x3f0   :  { %v4162_v53 = vpop.eup %4161 }
 0x3f1   :  { %v4164_v49 = vpop.eup %4163  ;;  %3256 = vst.msk [vmem:[%s5610_s7 + $0xd8] sm:$0xff] %vm3228_vm5, %v4162_v53 }
 0x3f2   :  { %v3162_v59 = vadd.f32 1.0, %v4164_v49 }
 0x3f3   :  { %v4166_v33 = vpop.eup %4165 }
 0x3f4   :  { %4171 = vrcp.f32 %v3162_v59  ;;  %v3163_v39 = vadd.f32 1.0, %v4166_v33 }
 0x3f6   :  { %v4168_v27 = vpop.eup %4167  ;;  %4173 = vrcp.f32 %v3163_v39 }
 0x3f7   :  { %3257 = vst.msk [vmem:[%s5610_s7 + $0xe0] sm:$0xff] %vm3228_vm5, %v4168_v27 }
 0x3f8   :  { %v4170_v29 = vpop.eup %4169 }
 0x3f9   :  { %3258 = vst.msk [vmem:[%s5610_s7 + $0xe8] sm:$0xff] %vm3228_vm5, %v4170_v29 }
 0x3fe   :  { %v4172_v63 = vpop.eup %4171 }
 0x3ff   :  { %3259 = vst.msk [vmem:[%s5610_s7 + $0xf0] sm:$0xff] %vm3228_vm5, %v4172_v63 }
 0x400   :  { %v4174_v35 = vpop.eup %4173 }
 0x401   :  { %3260 = vst.msk [vmem:[%s5610_s7 + $0xf8] sm:$0xff] %vm3228_vm5, %v4174_v35 }
 0x402   :  { %3265 = vsyncpa [#allocation4], 1 }

</bundles_post_ra>
